<compile_context>
chip_gen: v7x
topology: tpu7x:2x2x1
jax: 0.10.0
libtpu: 0.0.40
codegen_flags: <defaults>
</compile_context>

<pallas_src>
import functools

import jax
import jax.numpy as jnp
from jax import lax
from jax.experimental import pallas as pl
from jax.experimental.pallas import tpu as pltpu


# Generation-aware tiling knobs (fall back to the conservative setting if the
# hardware query is unavailable).
try:
    _VMEM_BYTES = pltpu.get_tpu_info().vmem_capacity_bytes
except Exception:  # pragma: no cover - conservative fallback
    _VMEM_BYTES = 64 * 1024 * 1024
_TN_CAP = 2048 if _VMEM_BYTES >= 100 * 1024 * 1024 else 1024
_VMEM_LIMIT = (64 if _TN_CAP >= 2048 else 32) * 1024 * 1024


def _round_up(x, m):
    return ((x + m - 1) // m) * m


def _choose_tile_n(n, cap):
    """Points-axis tile: a multiple of 128, <= cap, preferring exact divisors."""
    n128 = _round_up(n, 128)
    if n128 <= cap:
        return n128
    for t in (cap, cap // 2):
        if n % t == 0:
            return t
    return cap


# ---------------------------------------------------------------------------
# Fused kernel: per-point MLP (3x conv1x1+BN+ReLU) + running max-pool over the
# tiled points axis + (at the last chunk) the global head producing the 3x3
# transform (eye(3) folded into the last bias).
# grid = (B, n_chunks); batch "parallel", points "arbitrary".
# ---------------------------------------------------------------------------
def stn3d_fused_kernel(x_ref, w1_ref, b1_ref, w2_ref, b2_ref, w3_ref, b3_ref,
                       w4_ref, b4_ref, w5_ref, b5_ref, w6_ref, b6_ref,
                       o_ref, acc_ref, *, n_points, tile_n):
    nk = pl.program_id(1)

    @pl.when(nk == 0)
    def _init():
        # Safe floor: every pooled value is a ReLU output, hence >= 0.
        acc_ref[...] = jnp.zeros_like(acc_ref)

    # ---- per-point MLP (channels-first; bf16 MXU operands, f32 accumulate) ----
    x = x_ref[0].astype(jnp.bfloat16)                          # (Cin, TN)
    h = jnp.dot(w1_ref[...], x, preferred_element_type=jnp.float32)
    h = jnp.maximum(h + b1_ref[...], 0.0)                      # (64,   TN) f32
    h = jnp.dot(w2_ref[...], h.astype(jnp.bfloat16),
                preferred_element_type=jnp.float32)
    h = jnp.maximum(h + b2_ref[...], 0.0)                      # (128,  TN) f32
    h = jnp.dot(w3_ref[...], h.astype(jnp.bfloat16),
                preferred_element_type=jnp.float32)
    h = jnp.maximum(h + b3_ref[...], 0.0)                      # (1024, TN) f32

    if n_points % tile_n != 0:
        # Ragged tail: zero out padded / out-of-range point columns AFTER
        # layer 3 (folded-BN biases can make padded columns positive).
        col = lax.broadcasted_iota(jnp.int32, (1, tile_n), 1)
        h = jnp.where(nk * tile_n + col < n_points, h, 0.0)

    # ---- VPU-only partial max into the resident (1024, 128) accumulator ----
    acc = acc_ref[...]
    for j in range(tile_n // 128):                             # static unroll
        acc = jnp.maximum(acc, h[:, j * 128:(j + 1) * 128])
    acc_ref[...] = acc

    # ---- last chunk: single cross-lane reduce + fused head (channels-first) --
    @pl.when(nk == pl.num_programs(1) - 1)
    def _head():
        pooled = jnp.max(acc, axis=1, keepdims=True)           # (1024, 1) f32
        f = jnp.dot(w4_ref[...], pooled.astype(jnp.bfloat16),
                    preferred_element_type=jnp.float32)
        f = jnp.maximum(f + b4_ref[...], 0.0)                  # (512, 1)
        f = jnp.dot(w5_ref[...], f.astype(jnp.bfloat16),
                    preferred_element_type=jnp.float32)
        f = jnp.maximum(f + b5_ref[...], 0.0)                  # (256, 1)
        out = jnp.dot(w6_ref[...], f.astype(jnp.bfloat16),
                      preferred_element_type=jnp.float32) + b6_ref[...]
        o_ref[0] = out                                         # (16, 1)


def stn3d_input_forward(x_ncw, params):
    """x_ncw: (B, C_in, N) float32  ->  (B, 3, 3) float32"""
    B, Cin, N = x_ncw.shape
    (w1, b1), (w2, b2), (w3, b3), (w4, b4), (w5, b5), (w6, b6) = params

    bf16 = jnp.bfloat16
    # Channels-first (Cout, Cin_prev) bf16 weights, (Cout, 1) f32 bias columns.
    w1t, w2t, w3t = w1.T.astype(bf16), w2.T.astype(bf16), w3.T.astype(bf16)
    w4t, w5t = w4.T.astype(bf16), w5.T.astype(bf16)
    b1c, b2c, b3c = b1.reshape(-1, 1), b2.reshape(-1, 1), b3.reshape(-1, 1)
    b4c, b5c = b4.reshape(-1, 1), b5.reshape(-1, 1)

    # Fold eye(3) into the last bias; pad the 9-wide head to 16 rows.
    eye9 = jnp.eye(3, dtype=jnp.float32).reshape(9)
    w6p = jnp.zeros((16, 256), bf16).at[:9, :].set(w6.T.astype(bf16))
    b6p = jnp.zeros((16, 1), jnp.float32).at[:9, 0].set(b6.reshape(9) + eye9)

    tn = _choose_tile_n(N, _TN_CAP)
    # Only pad x up to a 128-lane multiple (no full-array pad in common cases);
    # the in-kernel mask (using the true N) handles any remaining ragged tail.
    n128 = _round_up(N, 128)
    if n128 != N:
        x_ncw = jnp.pad(x_ncw, ((0, 0), (0, 0), (0, n128 - N)))
    n_chunks = pl.cdiv(n128, tn)

    kernel = functools.partial(stn3d_fused_kernel, n_points=N, tile_n=tn)
    const = lambda shape: pl.BlockSpec(shape, lambda b_, nk: (0, 0))

    # Note: grid-invariant weight blocks could use pipeline_mode=pl.Buffered(1)
    # to avoid double-buffer VMEM; omitted here for maximum version portability.
    out16 = pl.pallas_call(
        kernel,
        out_shape=jax.ShapeDtypeStruct((B, 16, 1), jnp.float32),
        grid=(B, n_chunks),
        in_specs=[
            pl.BlockSpec((1, Cin, tn), lambda b_, nk: (b_, 0, nk)),
            const((64, Cin)), const((64, 1)),
            const((128, 64)), const((128, 1)),
            const((1024, 128)), const((1024, 1)),
            const((512, 1024)), const((512, 1)),
            const((256, 512)), const((256, 1)),
            const((16, 256)), const((16, 1)),
        ],
        out_specs=pl.BlockSpec((1, 16, 1), lambda b_, nk: (b_, 0, 0)),
        scratch_shapes=[pltpu.VMEM((1024, 128), jnp.float32)],
        compiler_params=pltpu.CompilerParams(
            dimension_semantics=("parallel", "arbitrary"),
            vmem_limit_bytes=_VMEM_LIMIT),
    )(x_ncw, w1t, b1c, w2t, b2c, w3t, b3c, w4t, b4c, w5t, b5c, w6p, b6p)

    return out16[:, :9, 0].reshape(B, 3, 3)


def _fold_bn(w, b, gamma, beta, mean, var, eps=1e-5):
    """Fold eval-mode BatchNorm into the preceding (w, b)."""
    scale = gamma / jnp.sqrt(var + eps)                        # (Cout,)
    return w * scale[None, :], b * scale + (beta - mean * scale)


def init_params(key, input_channels=3):
    """Deterministic synthetic parameters; BN (eval-mode) folded into w/b."""
    dims = [(input_channels, 64), (64, 128), (128, 1024),
            (1024, 512), (512, 256), (256, 9)]
    has_bn = [True, True, True, True, True, False]
    params = []
    for (cin, cout), bn in zip(dims, has_bn):
        key, kw, kb, kg, kbe, km, kv = jax.random.split(key, 7)
        w = jax.random.normal(kw, (cin, cout), jnp.float32) * 0.05
        b = jax.random.normal(kb, (cout,), jnp.float32) * 0.05
        if bn:
            gamma = 1.0 + 0.1 * jax.random.normal(kg, (cout,), jnp.float32)
            beta = 0.1 * jax.random.normal(kbe, (cout,), jnp.float32)
            mean = 0.1 * jax.random.normal(km, (cout,), jnp.float32)
            var = 1.0 + 0.1 * jax.random.uniform(kv, (cout,), jnp.float32)
            w, b = _fold_bn(w, b, gamma, beta, mean, var)
        params.append((w, b.reshape(1, cout)))
    return params


if __name__ == "__main__":
    key = jax.random.PRNGKey(0)
    kx, kp, kx2, kx3 = jax.random.split(key, 4)

    B, Cin = 2, 3
    params = init_params(kp, input_channels=Cin)
    fwd = jax.jit(stn3d_input_forward)

    # pure-JAX f32 reference of the same folded-BN forward (channels-last math)
    def ref(x_ncw):
        h = jnp.transpose(x_ncw, (0, 2, 1))
        (w1, b1), (w2, b2), (w3, b3), (w4, b4), (w5, b5), (w6, b6) = params
        h = jnp.maximum(h @ w1 + b1, 0.0)
        h = jnp.maximum(h @ w2 + b2, 0.0)
        h = jnp.maximum(h @ w3 + b3, 0.0)
        p = jnp.max(h, axis=1)
        f = jnp.maximum(p @ w4 + b4, 0.0)
        f = jnp.maximum(f @ w5 + b5, 0.0)
        o = f @ w6 + b6 + jnp.eye(3, dtype=jnp.float32).reshape(1, 9)
        return o.reshape(-1, 3, 3)

    tol = dict(atol=2e-2, rtol=2e-2)  # bf16 MXU operands, f32 accumulation

    # Case 1: tiny, single point-chunk (N < 128, padded + masked).
    x = jax.random.normal(kx, (B, Cin, 16), jnp.float32)
    out = fwd(x, params)
    jax.block_until_ready(out)
    assert out.shape == (B, 3, 3)
    assert jnp.allclose(out, ref(x), **tol), "mismatch (N=16)"

    # Case 2: single chunk with a masked ragged tail (N=160).
    x2 = jax.random.normal(kx2, (B, Cin, 160), jnp.float32)
    out2 = fwd(x2, params)
    jax.block_until_ready(out2)
    assert jnp.allclose(out2, ref(x2), **tol), "mismatch (N=160)"

    # Case 3: multiple point-chunks with a masked ragged last chunk (N=2688).
    x3 = jax.random.normal(kx3, (B, Cin, 2688), jnp.float32)
    out3 = fwd(x3, params)
    jax.block_until_ready(out3)
    assert jnp.allclose(out3, ref(x3), **tol), "mismatch (N=2688)"

    print("KERNEL_OK")
</pallas_src>

<mosaic_0001>
module attributes {stable_mosaic.version = 11 : i64} {
  func.func @stn3d_fused_kernel(%arg0: i32, %arg1: i32, %arg2: memref<1x3x128xf32, #tpu.memory_space<vmem>>, %arg3: memref<64x3xbf16, #tpu.memory_space<vmem>>, %arg4: memref<64x1xf32, #tpu.memory_space<vmem>>, %arg5: memref<128x64xbf16, #tpu.memory_space<vmem>>, %arg6: memref<128x1xf32, #tpu.memory_space<vmem>>, %arg7: memref<1024x128xbf16, #tpu.memory_space<vmem>>, %arg8: memref<1024x1xf32, #tpu.memory_space<vmem>>, %arg9: memref<512x1024xbf16, #tpu.memory_space<vmem>>, %arg10: memref<512x1xf32, #tpu.memory_space<vmem>>, %arg11: memref<256x512xbf16, #tpu.memory_space<vmem>>, %arg12: memref<256x1xf32, #tpu.memory_space<vmem>>, %arg13: memref<16x256xbf16, #tpu.memory_space<vmem>>, %arg14: memref<16x1xf32, #tpu.memory_space<vmem>>, %arg15: memref<1x16x1xf32, #tpu.memory_space<vmem>>, %arg16: memref<1024x128xf32, #tpu.memory_space<vmem>>) attributes {dimension_semantics = [#tpu.dimension_semantics<parallel>, #tpu.dimension_semantics<arbitrary>], iteration_bounds = array<i64: 2, 1>, scalar_prefetch = 0 : i64, scratch_operands = 1 : i64, tpu.core_type = #tpu.core_type<tc>, window_params = [{transform_indices = @transform_0, window_bounds = array<i64: 1, 3, 128>}, {pipeline_mode = #tpu.pipeline_mode<synchronous>, transform_indices = @transform_1, window_bounds = array<i64: 64, 3>}, {pipeline_mode = #tpu.pipeline_mode<synchronous>, transform_indices = @transform_2, window_bounds = array<i64: 64, 1>}, {pipeline_mode = #tpu.pipeline_mode<synchronous>, transform_indices = @transform_3, window_bounds = array<i64: 128, 64>}, {pipeline_mode = #tpu.pipeline_mode<synchronous>, transform_indices = @transform_4, window_bounds = array<i64: 128, 1>}, {pipeline_mode = #tpu.pipeline_mode<synchronous>, transform_indices = @transform_5, window_bounds = array<i64: 1024, 128>}, {pipeline_mode = #tpu.pipeline_mode<synchronous>, transform_indices = @transform_6, window_bounds = array<i64: 1024, 1>}, {pipeline_mode = #tpu.pipeline_mode<synchronous>, transform_indices = @transform_7, window_bounds = array<i64: 512, 1024>}, {pipeline_mode = #tpu.pipeline_mode<synchronous>, transform_indices = @transform_8, window_bounds = array<i64: 512, 1>}, {pipeline_mode = #tpu.pipeline_mode<synchronous>, transform_indices = @transform_9, window_bounds = array<i64: 256, 512>}, {pipeline_mode = #tpu.pipeline_mode<synchronous>, transform_indices = @transform_10, window_bounds = array<i64: 256, 1>}, {pipeline_mode = #tpu.pipeline_mode<synchronous>, transform_indices = @transform_11, window_bounds = array<i64: 16, 256>}, {pipeline_mode = #tpu.pipeline_mode<synchronous>, transform_indices = @transform_12, window_bounds = array<i64: 16, 1>}, {transform_indices = @transform_13, window_bounds = array<i64: 1, 16, 1>}]} {
    %c0_i32 = arith.constant 0 : i32
    %0 = arith.cmpi eq, %arg1, %c0_i32 : i32
    %1 = arith.extui %0 : i1 to i32
    %c0_i32_0 = arith.constant 0 : i32
    %2 = arith.cmpi ne, %1, %c0_i32_0 : i32
    scf.if %2 {
      %cst_27 = arith.constant 0.000000e+00 : f32
      %45 = vector.broadcast %cst_27 : f32 to vector<1024x128xf32>
      %c0_28 = arith.constant 0 : index
      %c0_29 = arith.constant 0 : index
      %46 = vector.load %arg16[%c0_28, %c0_29] : memref<1024x128xf32, #tpu.memory_space<vmem>>, vector<1024x128xf32>
      tpu.vector_store %arg16[%c0_28, %c0_29], %45 {strides = array<i32>} : memref<1024x128xf32, #tpu.memory_space<vmem>>, vector<1024x128xf32>,
    } else {
    }
    %c0 = arith.constant 0 : index
    %c0_1 = arith.constant 0 : index
    %c0_2 = arith.constant 0 : index
    %3 = vector.load %arg2[%c0, %c0_1, %c0_2] : memref<1x3x128xf32, #tpu.memory_space<vmem>>, vector<1x3x128xf32>
    %4 = vector.shape_cast %3 : vector<1x3x128xf32> to vector<3x128xf32>
    %5 = arith.truncf %4 : vector<3x128xf32> to vector<3x128xbf16>
    %c0_3 = arith.constant 0 : index
    %c0_4 = arith.constant 0 : index
    %6 = vector.load %arg3[%c0_3, %c0_4] : memref<64x3xbf16, #tpu.memory_space<vmem>>, vector<64x3xbf16>
    %cst = arith.constant dense<0.000000e+00> : vector<64x128xf32>
    %7 = tpu.matmul %6, %5, %cst {dimension_numbers = #tpu.dot_dimension_numbers<[1], [0], [0], [1], [0, 0, 1, 1], [], []>} : vector<64x3xbf16>, vector<3x128xbf16>, vector<64x128xf32> -> vector<64x128xf32>
    %c0_5 = arith.constant 0 : index
    %c0_6 = arith.constant 0 : index
    %8 = vector.load %arg4[%c0_5, %c0_6] : memref<64x1xf32, #tpu.memory_space<vmem>>, vector<64x1xf32>
    %9 = vector.broadcast %8 : vector<64x1xf32> to vector<64x128xf32>
    %10 = arith.addf %7, %9 : vector<64x128xf32>
    %cst_7 = arith.constant 0.000000e+00 : f32
    %11 = vector.broadcast %cst_7 : f32 to vector<64x128xf32>
    %12 = arith.maximumf %10, %11 : vector<64x128xf32>
    %c0_8 = arith.constant 0 : index
    %c0_9 = arith.constant 0 : index
    %13 = vector.load %arg5[%c0_8, %c0_9] : memref<128x64xbf16, #tpu.memory_space<vmem>>, vector<128x64xbf16>
    %14 = arith.truncf %12 : vector<64x128xf32> to vector<64x128xbf16>
    %cst_10 = arith.constant dense<0.000000e+00> : vector<128x128xf32>
    %15 = tpu.matmul %13, %14, %cst_10 {dimension_numbers = #tpu.dot_dimension_numbers<[1], [0], [0], [1], [0, 0, 1, 1], [], []>} : vector<128x64xbf16>, vector<64x128xbf16>, vector<128x128xf32> -> vector<128x128xf32>
    %c0_11 = arith.constant 0 : index
    %c0_12 = arith.constant 0 : index
    %16 = vector.load %arg6[%c0_11, %c0_12] : memref<128x1xf32, #tpu.memory_space<vmem>>, vector<128x1xf32>
    %17 = vector.broadcast %16 : vector<128x1xf32> to vector<128x128xf32>
    %18 = arith.addf %15, %17 : vector<128x128xf32>
    %cst_13 = arith.constant 0.000000e+00 : f32
    %19 = vector.broadcast %cst_13 : f32 to vector<128x128xf32>
    %20 = arith.maximumf %18, %19 : vector<128x128xf32>
    %c0_14 = arith.constant 0 : index
    %c0_15 = arith.constant 0 : index
    %21 = vector.load %arg7[%c0_14, %c0_15] : memref<1024x128xbf16, #tpu.memory_space<vmem>>, vector<1024x128xbf16>
    %22 = arith.truncf %20 : vector<128x128xf32> to vector<128x128xbf16>
    %cst_16 = arith.constant dense<0.000000e+00> : vector<1024x128xf32>
    %23 = tpu.matmul %21, %22, %cst_16 {dimension_numbers = #tpu.dot_dimension_numbers<[1], [0], [0], [1], [0, 0, 1, 1], [], []>} : vector<1024x128xbf16>, vector<128x128xbf16>, vector<1024x128xf32> -> vector<1024x128xf32>
    %c0_17 = arith.constant 0 : index
    %c0_18 = arith.constant 0 : index
    %24 = vector.load %arg8[%c0_17, %c0_18] : memref<1024x1xf32, #tpu.memory_space<vmem>>, vector<1024x1xf32>
    %25 = vector.broadcast %24 : vector<1024x1xf32> to vector<1024x128xf32>
    %26 = arith.addf %23, %25 : vector<1024x128xf32>
    %cst_19 = arith.constant 0.000000e+00 : f32
    %27 = vector.broadcast %cst_19 : f32 to vector<1024x128xf32>
    %28 = arith.maximumf %26, %27 : vector<1024x128xf32>
    %29 = tpu.iota {dimensions = array<i32: 1>} : vector<1x128xi32>
    %c128_i32 = arith.constant 128 : i32
    %30 = arith.muli %arg1, %c128_i32 : i32
    %31 = vector.broadcast %30 : i32 to vector<1x128xi32>
    %32 = arith.addi %31, %29 : vector<1x128xi32>
    %c16_i32 = arith.constant 16 : i32
    %33 = vector.broadcast %c16_i32 : i32 to vector<1x128xi32>
    %34 = arith.cmpi slt, %32, %33 : vector<1x128xi32>
    %cst_20 = arith.constant 0.000000e+00 : f32
    %35 = vector.shape_cast %34 : vector<1x128xi1> to vector<1x128xi1>
    %36 = vector.broadcast %35 : vector<1x128xi1> to vector<1024x128xi1>
    %37 = vector.broadcast %cst_20 : f32 to vector<1024x128xf32>
    %38 = arith.select %36, %28, %37 : vector<1024x128xi1>, vector<1024x128xf32>
    %c0_21 = arith.constant 0 : index
    %c0_22 = arith.constant 0 : index
    %39 = vector.load %arg16[%c0_21, %c0_22] : memref<1024x128xf32, #tpu.memory_space<vmem>>, vector<1024x128xf32>
    %40 = arith.maximumf %39, %38 : vector<1024x128xf32>
    %c0_23 = arith.constant 0 : index
    %c0_24 = arith.constant 0 : index
    %41 = vector.load %arg16[%c0_23, %c0_24] : memref<1024x128xf32, #tpu.memory_space<vmem>>, vector<1024x128xf32>
    tpu.vector_store %arg16[%c0_23, %c0_24], %40 {strides = array<i32>} : memref<1024x128xf32, #tpu.memory_space<vmem>>, vector<1024x128xf32>,
    %c0_i32_25 = arith.constant 0 : i32
    %42 = arith.cmpi eq, %arg1, %c0_i32_25 : i32
    %43 = arith.extui %42 : i1 to i32
    %c0_i32_26 = arith.constant 0 : i32
    %44 = arith.cmpi ne, %43, %c0_i32_26 : i32
    scf.if %44 {
      %cst_27 = arith.constant dense<0xFF800000> : vector<1024xf32>
      %45 = vector.multi_reduction <maximumf>, %40, %cst_27 [1] : vector<1024x128xf32> to vector<1024xf32>
      %46 = vector.shape_cast %45 : vector<1024xf32> to vector<1024x1xf32>
      %c0_28 = arith.constant 0 : index
      %c0_29 = arith.constant 0 : index
      %47 = vector.load %arg9[%c0_28, %c0_29] : memref<512x1024xbf16, #tpu.memory_space<vmem>>, vector<512x1024xbf16>
      %48 = arith.truncf %46 : vector<1024x1xf32> to vector<1024x1xbf16>
      %cst_30 = arith.constant dense<0.000000e+00> : vector<512x1xf32>
      %49 = tpu.matmul %47, %48, %cst_30 {dimension_numbers = #tpu.dot_dimension_numbers<[1], [0], [0], [1], [0, 0, 1, 1], [], []>} : vector<512x1024xbf16>, vector<1024x1xbf16>, vector<512x1xf32> -> vector<512x1xf32>
      %c0_31 = arith.constant 0 : index
      %c0_32 = arith.constant 0 : index
      %50 = vector.load %arg10[%c0_31, %c0_32] : memref<512x1xf32, #tpu.memory_space<vmem>>, vector<512x1xf32>
      %51 = arith.addf %49, %50 : vector<512x1xf32>
      %cst_33 = arith.constant 0.000000e+00 : f32
      %52 = vector.broadcast %cst_33 : f32 to vector<512x1xf32>
      %53 = arith.maximumf %51, %52 : vector<512x1xf32>
      %c0_34 = arith.constant 0 : index
      %c0_35 = arith.constant 0 : index
      %54 = vector.load %arg11[%c0_34, %c0_35] : memref<256x512xbf16, #tpu.memory_space<vmem>>, vector<256x512xbf16>
      %55 = arith.truncf %53 : vector<512x1xf32> to vector<512x1xbf16>
      %cst_36 = arith.constant dense<0.000000e+00> : vector<256x1xf32>
      %56 = tpu.matmul %54, %55, %cst_36 {dimension_numbers = #tpu.dot_dimension_numbers<[1], [0], [0], [1], [0, 0, 1, 1], [], []>} : vector<256x512xbf16>, vector<512x1xbf16>, vector<256x1xf32> -> vector<256x1xf32>
      %c0_37 = arith.constant 0 : index
      %c0_38 = arith.constant 0 : index
      %57 = vector.load %arg12[%c0_37, %c0_38] : memref<256x1xf32, #tpu.memory_space<vmem>>, vector<256x1xf32>
      %58 = arith.addf %56, %57 : vector<256x1xf32>
      %cst_39 = arith.constant 0.000000e+00 : f32
      %59 = vector.broadcast %cst_39 : f32 to vector<256x1xf32>
      %60 = arith.maximumf %58, %59 : vector<256x1xf32>
      %c0_40 = arith.constant 0 : index
      %c0_41 = arith.constant 0 : index
      %61 = vector.load %arg13[%c0_40, %c0_41] : memref<16x256xbf16, #tpu.memory_space<vmem>>, vector<16x256xbf16>
      %62 = arith.truncf %60 : vector<256x1xf32> to vector<256x1xbf16>
      %cst_42 = arith.constant dense<0.000000e+00> : vector<16x1xf32>
      %63 = tpu.matmul %61, %62, %cst_42 {dimension_numbers = #tpu.dot_dimension_numbers<[1], [0], [0], [1], [0, 0, 1, 1], [], []>} : vector<16x256xbf16>, vector<256x1xbf16>, vector<16x1xf32> -> vector<16x1xf32>
      %c0_43 = arith.constant 0 : index
      %c0_44 = arith.constant 0 : index
      %64 = vector.load %arg14[%c0_43, %c0_44] : memref<16x1xf32, #tpu.memory_space<vmem>>, vector<16x1xf32>
      %65 = arith.addf %63, %64 : vector<16x1xf32>
      %c0_45 = arith.constant 0 : index
      %c0_46 = arith.constant 0 : index
      %c0_47 = arith.constant 0 : index
      %66 = vector.load %arg15[%c0_45, %c0_46, %c0_47] : memref<1x16x1xf32, #tpu.memory_space<vmem>>, vector<1x16x1xf32>
      %67 = vector.shape_cast %66 : vector<1x16x1xf32> to vector<16x1xf32>
      %68 = vector.shape_cast %65 : vector<16x1xf32> to vector<1x16x1xf32>
      tpu.vector_store %arg15[%c0_45, %c0_46, %c0_47], %68 {strides = array<i32>} : memref<1x16x1xf32, #tpu.memory_space<vmem>>, vector<1x16x1xf32>,
    } else {
    }
    return
  }
  func.func @transform_0(%arg0: i32, %arg1: i32) -> (i32, i32, i32) {
    %c0_i32 = arith.constant 0 : i32
    %c0_i32_0 = arith.constant 0 : i32
    return %arg0, %c0_i32, %arg1 : i32, i32, i32
  }
  func.func @transform_1(%arg0: i32, %arg1: i32) -> (i32, i32) {
    %c0_i32 = arith.constant 0 : i32
    %c0_i32_0 = arith.constant 0 : i32
    %c0_i32_1 = arith.constant 0 : i32
    return %c0_i32, %c0_i32_0 : i32, i32
  }
  func.func @transform_2(%arg0: i32, %arg1: i32) -> (i32, i32) {
    %c0_i32 = arith.constant 0 : i32
    %c0_i32_0 = arith.constant 0 : i32
    %c0_i32_1 = arith.constant 0 : i32
    return %c0_i32, %c0_i32_0 : i32, i32
  }
  func.func @transform_3(%arg0: i32, %arg1: i32) -> (i32, i32) {
    %c0_i32 = arith.constant 0 : i32
    %c0_i32_0 = arith.constant 0 : i32
    %c0_i32_1 = arith.constant 0 : i32
    return %c0_i32, %c0_i32_0 : i32, i32
  }
  func.func @transform_4(%arg0: i32, %arg1: i32) -> (i32, i32) {
    %c0_i32 = arith.constant 0 : i32
    %c0_i32_0 = arith.constant 0 : i32
    %c0_i32_1 = arith.constant 0 : i32
    return %c0_i32, %c0_i32_0 : i32, i32
  }
  func.func @transform_5(%arg0: i32, %arg1: i32) -> (i32, i32) {
    %c0_i32 = arith.constant 0 : i32
    %c0_i32_0 = arith.constant 0 : i32
    %c0_i32_1 = arith.constant 0 : i32
    return %c0_i32, %c0_i32_0 : i32, i32
  }
  func.func @transform_6(%arg0: i32, %arg1: i32) -> (i32, i32) {
    %c0_i32 = arith.constant 0 : i32
    %c0_i32_0 = arith.constant 0 : i32
    %c0_i32_1 = arith.constant 0 : i32
    return %c0_i32, %c0_i32_0 : i32, i32
  }
  func.func @transform_7(%arg0: i32, %arg1: i32) -> (i32, i32) {
    %c0_i32 = arith.constant 0 : i32
    %c0_i32_0 = arith.constant 0 : i32
    %c0_i32_1 = arith.constant 0 : i32
    return %c0_i32, %c0_i32_0 : i32, i32
  }
  func.func @transform_8(%arg0: i32, %arg1: i32) -> (i32, i32) {
    %c0_i32 = arith.constant 0 : i32
    %c0_i32_0 = arith.constant 0 : i32
    %c0_i32_1 = arith.constant 0 : i32
    return %c0_i32, %c0_i32_0 : i32, i32
  }
  func.func @transform_9(%arg0: i32, %arg1: i32) -> (i32, i32) {
    %c0_i32 = arith.constant 0 : i32
    %c0_i32_0 = arith.constant 0 : i32
    %c0_i32_1 = arith.constant 0 : i32
    return %c0_i32, %c0_i32_0 : i32, i32
  }
  func.func @transform_10(%arg0: i32, %arg1: i32) -> (i32, i32) {
    %c0_i32 = arith.constant 0 : i32
    %c0_i32_0 = arith.constant 0 : i32
    %c0_i32_1 = arith.constant 0 : i32
    return %c0_i32, %c0_i32_0 : i32, i32
  }
  func.func @transform_11(%arg0: i32, %arg1: i32) -> (i32, i32) {
    %c0_i32 = arith.constant 0 : i32
    %c0_i32_0 = arith.constant 0 : i32
    %c0_i32_1 = arith.constant 0 : i32
    return %c0_i32, %c0_i32_0 : i32, i32
  }
  func.func @transform_12(%arg0: i32, %arg1: i32) -> (i32, i32) {
    %c0_i32 = arith.constant 0 : i32
    %c0_i32_0 = arith.constant 0 : i32
    %c0_i32_1 = arith.constant 0 : i32
    return %c0_i32, %c0_i32_0 : i32, i32
  }
  func.func @transform_13(%arg0: i32, %arg1: i32) -> (i32, i32, i32) {
    %c0_i32 = arith.constant 0 : i32
    %c0_i32_0 = arith.constant 0 : i32
    %c0_i32_1 = arith.constant 0 : i32
    return %arg0, %c0_i32, %c0_i32_0 : i32, i32, i32
  }
}

</mosaic_0001>

<bundles_post_ra>
// kernel: squeeze.1
= control target key start
LH: loop header
LB: loop body
LE: loop exit
PB: predicated region body
PF: predicated region fallthrough
CT: control target
= control target key end

     0   :  { %vm7_vm0 = vcmask 23552   ;;  %s36_s8 = smov 122   ;;  %s56_s0 = inlined_call_operand.vmem [shape: f32[2,9], index: 0, kind: input, shape index: {}]   ;;  %s57_s1 = inlined_call_operand.vmem [shape: f32[2,3,3], index: 1, kind: output, shape index: {}]  }
   0x1   :  { %v4_v0 = vld [vmem:[%s56_s0] sm:$0x3]  ;;  %s35_s0 = smov 125  }
   0x2   :  { %5 = vst [vmem:[#allocation1] sm:$0x3] %v4_v0 }
   0x9   :  { %v9_v1 = vld [vmem:[#allocation1] sm:$0x3]  }
   0xa   :  { %v6_v2 = vld [vmem:[#allocation1] sm:$0x3]   ;;  %10 = vrot.lane.b32.xlu0 %v9_v1, %s35_s0 }
   0xb   :  { %8 = vst.msk [vmem:[#allocation0] ss:$8 sm:$0x3] %vm7_vm0, %v6_v2   ;;  %v15_v3 = vld [vmem:[#allocation1] sm:$0x3]  }
   0xe   :  { %16 = vrot.lane.b32.xlu0 %v15_v3, %s36_s8 }
  0x7c   :  { %v11_v4 = vpop.permute.xlu0 %10  }
  0x7d   :  { %14 = vst.msk [vmem:[#allocation0 + $0x1] ss:$8 sm:$0x3] %vm7_vm0, %v11_v4  }
  0x80   :  { %v17_v5 = vpop.permute.xlu0 %16  }
  0x81   :  { %20 = vst.msk [vmem:[#allocation0 + $0x2] ss:$8 sm:$0x3] %vm7_vm0, %v17_v5  }
  0x88   :  { %v24_v6 = vld [vmem:[#allocation0] sm:$0xf]  ;;  %v28_v7 = vld [vmem:[#allocation0 + $0x8] sm:$0xf] }
  0x89   :  { %26 = vst [vmem:[%s57_s1] sm:$0xf] %v24_v6  ;;  %32 = vst [vmem:[%s57_s1 + $0x4] sm:$0xf] %v28_v7 }

// kernel: stn3d_input_forward.1
= control target key start
LH: loop header
LB: loop body
LE: loop exit
PB: predicated region body
PF: predicated region fallthrough
CT: control target
= control target key end

     0   :  { %s9242_s25 = smov 0   ;;  %s9244_s26 = smov 0   ;;  %s12197_s0 = inlined_call_operand.vmem [shape: f32[2,3,128], index: 0, kind: input, shape index: {}]   ;;  %s12198_s1 = inlined_call_operand.vmem [shape: bf16[64,3], index: 1, kind: input, shape index: {}]   ;;  %s12199_s2 = inlined_call_operand.vmem [shape: f32[64,1], index: 2, kind: input, shape index: {}]   ;;  %s12200_s3 = inlined_call_operand.vmem [shape: bf16[128,64], index: 3, kind: input, shape index: {}]   ;;  %s12201_s4 = inlined_call_operand.vmem [shape: f32[128,1], index: 4, kind: input, shape index: {}]   ;;  %s12202_s5 = inlined_call_operand.vmem [shape: bf16[1024,128], index: 5, kind: input, shape index: {}]   ;;  %s12203_s6 = inlined_call_operand.vmem [shape: f32[1024,1], index: 6, kind: input, shape index: {}]   ;;  %s12204_s7 = inlined_call_operand.vmem [shape: bf16[512,1024], index: 7, kind: input, shape index: {}]   ;;  %s12205_s8 = inlined_call_operand.vmem [shape: f32[512,1], index: 8, kind: input, shape index: {}]   ;;  %s12206_s9 = inlined_call_operand.vmem [shape: bf16[256,512], index: 9, kind: input, shape index: {}]   ;;  %s12207_s10 = inlined_call_operand.vmem [shape: f32[256,1], index: 10, kind: input, shape index: {}]   ;;  %s12208_s11 = inlined_call_operand.vmem [shape: bf16[16,256], index: 11, kind: input, shape index: {}]   ;;  %s12209_s12 = inlined_call_operand.vmem [shape: f32[16,1], index: 12, kind: input, shape index: {}]   ;;  %s12210_s13 = inlined_call_operand.vmem [shape: f32[2,16,1], index: 13, kind: output, shape index: {}]  }
   0x1   :  { %s9246_s27 = smov 0  }
   0x2 LB: > { %s35_s28 = sadd.s32 1, %s9164_s26  ;;  %p7629_p0 = scmp.ge.s32.totalorder %s9168_s27, 1  ;;  %s9168_s27 = sphi %s9246_s27, %s23_s27   ;;  %s9164_s26 = sphi %s9244_s26, %s12294_s26   ;;  %s9160_s25 = sphi %s9242_s25, %s12293_s25  }
   0x3   : > { %p37_p1 = scmp.ge.s32.totalorder %s35_s28, 2  ;;  %p403_p2 = scmp.lt.s32.totalorder %s9168_s27, 3 }
   0x5   : > { %s12296_s28 = smov (%p37_p1, %s35_s28), 0  ;;  %p404_p3 = pnand %p7629_p0, %p403_p2 }
   0x7   : > { %407 = sbr.rel (%p404_p3) target bundleno = 2645 (0xa55), region = 72 }
   0xe   : > { %v606_v0 = vld [vmem:[%s12199_s2 + $0x10] sm:$0xff]  ;;  %v604_v1 = vld [vmem:[%s12199_s2] sm:$0xff]  ;;  %p449_p4 = scmp.lt.s32.totalorder %s9160_s25, 1  ;;  %vm685_vm0 = vcmask 1040384   ;;  %v12211_v2 = vmov 0   ;;  %v607_v3 = vld [vmem:[%s12199_s2 + $0x18] sm:$0xff] }
   0xf   : > { %8970 = vset.pattern.permute.xlu1 %v12211_v2  ;;  %8969 = vset.pattern.permute.xlu0 %v12211_v2  ;;  %v605_v4 = vld [vmem:[%s12199_s2 + $0x8] sm:$0xff]  ;;  %vm686_vm1 = vcmask 1041408   ;;  %v9171_v5 = vmov 65535   ;;  %vm672_vm2 = vcmask 23552   ;;  %v8971_v7 = vld [vmem:[%s12198_s1] sm:$0xff]   ;;  %v611_v14 = vld [vmem:[%s12199_s2 + $0x38] sm:$0xff] }
  0x10   : > { %624 = vperm.xlu1 %8970, %v606_v0   ;;  %614 = vperm.xlu0 %8969, %v604_v1   ;;  %s12298_s25 = smov (!%p449_p4, %s9160_s25), 1  ;;  %v687_v6 = vsel %vm685_vm0, 4294967295, %v9171_v5  ;;  %v609_v8 = vld [vmem:[%s12199_s2 + $0x28] sm:$0xff]  ;;  %v608_v11 = vld [vmem:[%s12199_s2 + $0x20] sm:$0xff]  ;;  %v610_v15 = vld [vmem:[%s12199_s2 + $0x30] sm:$0xff]  ;;  %vm921_vm3 = vcmask 523264  }
  0x11   : > { %5752 = vmatprep.subr.bf16.mxu1 %v12211_v2  ;;  %s7630_s22 = sshll.u32 %s12298_s25, 2  ;;  %v688_v9 = vsel %vm686_vm1, %v687_v6, 0  ;;  %8383 = vmatprep.mubr.msk.bf16.mxu0 %vm672_vm2, %v8971_v7  ;;  %v8972_v16 = vld [vmem:[%s12198_s1 + $0x8] sm:$0xff]   ;;  %v8973_v17 = vld [vmem:[%s12198_s1 + $0x10] sm:$0xff]   ;;  %v785_v19 = vld [vmem:[%s12201_s4] sm:$0xff]  ;;  %s8045_s21 = sshll.u32 %s12298_s25, 4 }
  0x12   : > { %s455_s14 = scalar_lea.vmem %s12197_s0, %s7630_s22  ;;  %v786_v18 = vld [vmem:[%s12201_s4 + $0x8] sm:$0xff]  ;;  %v788_v20 = vld [vmem:[%s12201_s4 + $0x18] sm:$0xff]  ;;  %v787_v21 = vld [vmem:[%s12201_s4 + $0x10] sm:$0xff]  ;;  %s460_s30 = scalar_lea.vmem %s12210_s13, %s8045_s21  ;;  %vm7556_vm5 = vcmask 7168  }
  0x13   : > { %v594_v10 = vld [vmem:[%s455_s14] sm:$0x7]  ;;  %v8974_v22 = vld [vmem:[%s12198_s1 + $0x18] sm:$0xff]   ;;  %v790_v23 = vld [vmem:[%s12201_s4 + $0x28] sm:$0xff] }
  0x14   : > { %629 = vperm.xlu1 %8970, %v607_v3   ;;  %619 = vperm.xlu0 %8969, %v605_v4   ;;  %v595_v12 = vpack.c.bf16 %v594_v10, %v594_v10  ;;  %v789_v24 = vld [vmem:[%s12201_s4 + $0x20] sm:$0xff]  ;;  %v792_v25 = vld [vmem:[%s12201_s4 + $0x38] sm:$0xff]  ;;  %v791_v26 = vld [vmem:[%s12201_s4 + $0x30] sm:$0xff] }
  0x15   : > { %v794_v27 = vld [vmem:[%s12201_s4 + $0x48] sm:$0xff]  ;;  %v793_v28 = vld [vmem:[%s12201_s4 + $0x40] sm:$0xff]  ;;  %v796_v29 = vld [vmem:[%s12201_s4 + $0x58] sm:$0xff] }
  0x16   : > { %v690_v13 = vand.u32 %v688_v9, %v595_v12  ;;  %v795_v30 = vld [vmem:[%s12201_s4 + $0x50] sm:$0xff]  ;;  %v798_v31 = vld [vmem:[%s12201_s4 + $0x68] sm:$0xff]  ;;  %v797_v32 = vld [vmem:[%s12201_s4 + $0x60] sm:$0xff] }
  0x17   : > { %v800_v33 = vld [vmem:[%s12201_s4 + $0x78] sm:$0xff]  ;;  %v799_v34 = vld [vmem:[%s12201_s4 + $0x70] sm:$0xff]  ;;  %v1228_v35 = vld [vmem:[%s12203_s6 + $0x108] sm:$0xff] }
  0x18   : > { %639 = vperm.xlu1 %8970, %v609_v8   ;;  %634 = vperm.xlu0 %8969, %v608_v11   ;;  %v1227_v36 = vld [vmem:[%s12203_s6 + $0x100] sm:$0xff]  ;;  %v1230_v37 = vld [vmem:[%s12203_s6 + $0x118] sm:$0xff]  ;;  %v1229_v38 = vld [vmem:[%s12203_s6 + $0x110] sm:$0xff] }
  0x19   : > { %8381 = vmatprep.subr.bf16.mxu0 %v690_v13  ;;  %v1232_v39 = vld [vmem:[%s12203_s6 + $0x128] sm:$0xff]  ;;  %v1231_v40 = vld [vmem:[%s12203_s6 + $0x120] sm:$0xff]  ;;  %v1234_v41 = vld [vmem:[%s12203_s6 + $0x138] sm:$0xff] }
  0x1a   : > { %8382 = vmatpush3.bf16.msra.mxu0 %v690_v13  ;;  %v1233_v42 = vld [vmem:[%s12203_s6 + $0x130] sm:$0xff]  ;;  %v1236_v43 = vld [vmem:[%s12203_s6 + $0x148] sm:$0xff]  ;;  %v1235_v44 = vld [vmem:[%s12203_s6 + $0x140] sm:$0xff] }
  0x1b   : > { %v1238_v45 = vld [vmem:[%s12203_s6 + $0x158] sm:$0xff]  ;;  %v1237_v46 = vld [vmem:[%s12203_s6 + $0x150] sm:$0xff]  ;;  %v1240_v47 = vld [vmem:[%s12203_s6 + $0x168] sm:$0xff] }
  0x1c   : > { %649 = vperm.xlu1 %8970, %v611_v14   ;;  %644 = vperm.xlu0 %8969, %v610_v15   ;;  %v1239_v48 = vld [vmem:[%s12203_s6 + $0x160] sm:$0xff]  ;;  %v1242_v49 = vld [vmem:[%s12203_s6 + $0x178] sm:$0xff]  ;;  %v1241_v50 = vld [vmem:[%s12203_s6 + $0x170] sm:$0xff] }
  0x1d   : > { %8384 = vmatmul.mubr.msk.bf16.vlgmr.msra.gmra.mrb[0].mxu0 %vm672_vm2, %v8972_v16  ;;  %v1244_v51 = vld [vmem:[%s12203_s6 + $0x188] sm:$0xff]  ;;  %v1243_v52 = vld [vmem:[%s12203_s6 + $0x180] sm:$0xff]  ;;  %v1246_v53 = vld [vmem:[%s12203_s6 + $0x198] sm:$0xff] }
  0x1e   : > { %8387 = vmatprep.mubr.msk.bf16.mxu0 %vm672_vm2, %v8973_v17  ;;  %v1245_v54 = vld [vmem:[%s12203_s6 + $0x190] sm:$0xff]  ;;  %v1248_v55 = vld [vmem:[%s12203_s6 + $0x1a8] sm:$0xff]  ;;  %v1247_v56 = vld [vmem:[%s12203_s6 + $0x1a0] sm:$0xff] }
  0x1f   : > { %v1250_v57 = vld [vmem:[%s12203_s6 + $0x1b8] sm:$0xff]  ;;  %v1249_v58 = vld [vmem:[%s12203_s6 + $0x1b0] sm:$0xff]  ;;  %v1252_v59 = vld [vmem:[%s12203_s6 + $0x1c8] sm:$0xff] }
  0x20   : > { %808 = vperm.xlu1 %8970, %v786_v18   ;;  %803 = vperm.xlu0 %8969, %v785_v19   ;;  %v1251_v60 = vld [vmem:[%s12203_s6 + $0x1c0] sm:$0xff]  ;;  %v1254_v61 = vld [vmem:[%s12203_s6 + $0x1d8] sm:$0xff]  ;;  %v1253_v62 = vld [vmem:[%s12203_s6 + $0x1d0] sm:$0xff] }
  0x21   : > { %v1256_v63 = vld [vmem:[%s12203_s6 + $0x1e8] sm:$0xff]  ;;  %v1255_v0 = vld [vmem:[%s12203_s6 + $0x1e0] sm:$0xff]  ;;  %v1258_v1 = vld [vmem:[%s12203_s6 + $0x1f8] sm:$0xff] }
  0x22   : > { %v1257_v3 = vld [vmem:[%s12203_s6 + $0x1f0] sm:$0xff]  ;;  %v8975_v4 = vld [vmem:[%s12200_s3] sm:$0xff]  }
  0x24   : > { %818 = vperm.xlu1 %8970, %v788_v20   ;;  %813 = vperm.xlu0 %8969, %v787_v21  }
  0x25   : > { %8388 = vmatmul.mubr.msk.bf16.gmra.mrb[4].mxu0 %vm672_vm2, %v8974_v22 }
  0x26   : > { %8399 = vmatprep.mubr.msk.bf16.mxu0 %vm921_vm3, %v8975_v4 }
  0x28   : > { %828 = vperm.xlu1 %8970, %v790_v23   ;;  %823 = vperm.xlu0 %8969, %v789_v24  }
  0x2c   : > { %838 = vperm.xlu1 %8970, %v792_v25   ;;  %833 = vperm.xlu0 %8969, %v791_v26  }
  0x30   : > { %848 = vperm.xlu1 %8970, %v794_v27   ;;  %843 = vperm.xlu0 %8969, %v793_v28  }
  0x34   : > { %858 = vperm.xlu1 %8970, %v796_v29   ;;  %853 = vperm.xlu0 %8969, %v795_v30  }
  0x38   : > { %868 = vperm.xlu1 %8970, %v798_v31   ;;  %863 = vperm.xlu0 %8969, %v797_v32  }
  0x3c   : > { %878 = vperm.xlu1 %8970, %v800_v33   ;;  %873 = vperm.xlu0 %8969, %v799_v34  }
  0x40   : > { %1490 = vperm.xlu1 %8970, %v1228_v35   ;;  %1485 = vperm.xlu0 %8969, %v1227_v36  }
  0x44   : > { %1500 = vperm.xlu1 %8970, %v1230_v37   ;;  %1495 = vperm.xlu0 %8969, %v1229_v38  }
  0x48   : > { %1510 = vperm.xlu1 %8970, %v1232_v39   ;;  %1505 = vperm.xlu0 %8969, %v1231_v40  }
  0x4c   : > { %1520 = vperm.xlu1 %8970, %v1234_v41   ;;  %1515 = vperm.xlu0 %8969, %v1233_v42   ;;  %v8976_v41 = vld [vmem:[%s12200_s3 + $0x8] sm:$0xff]   ;;  %v8977_v42 = vld [vmem:[%s12200_s3 + $0x10] sm:$0xff]  }
  0x50   : > { %1530 = vperm.xlu1 %8970, %v1236_v43   ;;  %1525 = vperm.xlu0 %8969, %v1235_v44   ;;  %v8978_v43 = vld [vmem:[%s12200_s3 + $0x18] sm:$0xff]   ;;  %v8979_v44 = vld [vmem:[%s12200_s3 + $0x20] sm:$0xff]  }
  0x54   : > { %1540 = vperm.xlu1 %8970, %v1238_v45   ;;  %1535 = vperm.xlu0 %8969, %v1237_v46   ;;  %v8980_v45 = vld [vmem:[%s12200_s3 + $0x28] sm:$0xff]   ;;  %v8981_v46 = vld [vmem:[%s12200_s3 + $0x30] sm:$0xff]  }
  0x58   : > { %1550 = vperm.xlu1 %8970, %v1240_v47   ;;  %1545 = vperm.xlu0 %8969, %v1239_v48   ;;  %v8982_v47 = vld [vmem:[%s12200_s3 + $0x38] sm:$0xff]   ;;  %v8983_v48 = vld [vmem:[%s12202_s5] sm:$0xff]  }
  0x5c   : > { %1560 = vperm.xlu1 %8970, %v1242_v49   ;;  %1555 = vperm.xlu0 %8969, %v1241_v50  }
  0x60   : > { %1570 = vperm.xlu1 %8970, %v1244_v51   ;;  %1565 = vperm.xlu0 %8969, %v1243_v52  }
  0x64   : > { %1580 = vperm.xlu1 %8970, %v1246_v53   ;;  %1575 = vperm.xlu0 %8969, %v1245_v54  }
  0x68   : > { %1590 = vperm.xlu1 %8970, %v1248_v55   ;;  %1585 = vperm.xlu0 %8969, %v1247_v56  }
  0x6c   : > { %1600 = vperm.xlu1 %8970, %v1250_v57   ;;  %1595 = vperm.xlu0 %8969, %v1249_v58  }
  0x70   : > { %1610 = vperm.xlu1 %8970, %v1252_v59   ;;  %1605 = vperm.xlu0 %8969, %v1251_v60  }
  0x74   : > { %1620 = vperm.xlu1 %8970, %v1254_v61   ;;  %1615 = vperm.xlu0 %8969, %v1253_v62  }
  0x78   : > { %1630 = vperm.xlu1 %8970, %v1256_v63   ;;  %1625 = vperm.xlu0 %8969, %v1255_v0  }
  0x7c   : > { %1640 = vperm.xlu1 %8970, %v1258_v1   ;;  %1635 = vperm.xlu0 %8969, %v1257_v3  }
  0x8f   : > { %v615_v5 = vpop.permute.xlu0 %614  ;;  %v625_v6 = vpop.permute.xlu1 %624 }
  0x93   : > { %v620_v7 = vpop.permute.xlu0 %619  ;;  %v630_v8 = vpop.permute.xlu1 %629 }
  0x97   : > { %v635_v12 = vpop.permute.xlu0 %634  ;;  %v640_v16 = vpop.permute.xlu1 %639 }
  0x9b   : > { %v645_v24 = vpop.permute.xlu0 %644  ;;  %v650_v29 = vpop.permute.xlu1 %649 }
  0x9f   : > { %v804_v49 = vpop.permute.xlu0 %803  ;;  %v809_v50 = vpop.permute.xlu1 %808 }
  0xa3   : > { %v814_v51 = vpop.permute.xlu0 %813  ;;  %v819_v52 = vpop.permute.xlu1 %818 }
  0xa7   : > { %v824_v53 = vpop.permute.xlu0 %823  ;;  %v829_v54 = vpop.permute.xlu1 %828 }
  0xab   : > { %v834_v55 = vpop.permute.xlu0 %833  ;;  %v839_v59 = vpop.permute.xlu1 %838 }
  0xaf   : > { %v844_v4 = vpop.permute.xlu0 %843 }
  0xf0   : > { %v8385_v9 = vpop.f32.mrb[0].mxu0 }
  0xf1   : > { %v735_v10 = vadd.f32 %v8385_v9, %v625_v6  ;;  %v726_v11 = vpop.f32.mrb[1].mxu0 }
  0xf2   : > { %v8386_v13 = vpop.f32.mrb[2].mxu0  ;;  %v727_v14 = vadd.f32 %v726_v11, %v615_v5 }
  0xf3   : > { %v738_v15 = vadd.f32 %v8386_v13, %v630_v8  ;;  %v729_v17 = vpop.f32.mrb[3].mxu0  ;;  %v759_v18 = vmax.f32 %v735_v10, 0.0  ;;  %v849_v8 = vpop.permute.xlu1 %848 }
  0xf4   : > { %v730_v20 = vadd.f32 %v729_v17, %v620_v7  ;;  %v757_v21 = vmax.f32 %v727_v14, 0.0  ;;  %v854_v17 = vpop.permute.xlu0 %853 }
  0xf5   : > { %v760_v19 = vmax.f32 %v738_v15, 0.0 }
  0xf6   : > { %v758_v22 = vmax.f32 %v730_v20, 0.0 }
  0xf7   : > { %v782_v23 = vpack.c.bf16 %v760_v19, %v759_v18 }
  0xf8   : > { %v8389_v25 = vpop.f32.mrb[4].mxu0  ;;  %v781_v28 = vpack.c.bf16 %v758_v22, %v757_v21  ;;  %v859_v21 = vpop.permute.xlu1 %858 }
  0xf9   : > { %v751_v26 = vadd.f32 %v8389_v25, %v645_v24  ;;  %v742_v27 = vpop.f32.mrb[5].mxu0 }
  0xfa   : > { %v8390_v30 = vpop.f32.mrb[6].mxu0  ;;  %v743_v31 = vadd.f32 %v742_v27, %v635_v12  ;;  %8391 = vmatprep.subr.bf16.mxu0 %v781_v28 }
  0xfb   : > { %v754_v32 = vadd.f32 %v8390_v30, %v650_v29  ;;  %v745_v33 = vpop.f32.mrb[7].mxu0  ;;  %8392 = vmatpush3.bf16.msra.mxu0 %v781_v28  ;;  %v763_v34 = vmax.f32 %v751_v26, 0.0  ;;  %v864_v29 = vpop.permute.xlu0 %863 }
  0xfc   : > { %v746_v36 = vadd.f32 %v745_v33, %v640_v16  ;;  %8393 = vmatprep.subr.bf16.mxu0 %v782_v23  ;;  %v761_v37 = vmax.f32 %v743_v31, 0.0 }
  0xfd   : > { %v764_v35 = vmax.f32 %v754_v32, 0.0 }
  0xfe   : > { %v762_v38 = vmax.f32 %v746_v36, 0.0 }
  0xff   : > { %v784_v39 = vpack.c.bf16 %v764_v35, %v763_v34  ;;  %8394 = vmatpush3.bf16.msra.mxu0 %v782_v23  ;;  %v869_v34 = vpop.permute.xlu1 %868 }
 0x100   : > { %v783_v40 = vpack.c.bf16 %v762_v38, %v761_v37 }
 0x102   : > { %8395 = vmatprep.subr.bf16.mxu0 %v783_v40 }
 0x103   : > { %8396 = vmatpush3.bf16.msra.mxu0 %v783_v40 }
 0x104   : > { %8397 = vmatprep.subr.bf16.mxu0 %v784_v39 }
 0x107   : > { %8398 = vmatpush3.bf16.msra.mxu0 %v784_v39 }
 0x10a   : > { %8400 = vmatmul.mubr.msk.bf16.vlgmr.msra.gmra.mrb[8].mxu0 %vm921_vm3, %v8976_v41  ;;  %v874_v41 = vpop.permute.xlu0 %873 }
 0x10b   : > { %8403 = vmatprep.mubr.msk.bf16.mxu0 %vm921_vm3, %v8977_v42 }
 0x112   : > { %8404 = vmatmul.mubr.msk.bf16.gmra.mrb[12].mxu0 %vm921_vm3, %v8978_v43 }
 0x113   : > { %8407 = vmatprep.mubr.msk.bf16.mxu0 %vm921_vm3, %v8979_v44 }
 0x11a   : > { %8408 = vmatmul.mubr.msk.bf16.gmra.mrb[16].mxu0 %vm921_vm3, %v8980_v45 }
 0x11b   : > { %8411 = vmatprep.mubr.msk.bf16.mxu0 %vm921_vm3, %v8981_v46  ;;  %v879_v46 = vpop.permute.xlu1 %878 }
 0x122   : > { %8412 = vmatmul.mubr.msk.bf16.gmra.mrb[20].mxu0 %vm921_vm3, %v8982_v47 }
 0x123   : > { %8431 = vmatprep.mubr.bf16.mxu0 %v8983_v48 }
 0x1dd   : > { %v8401_v56 = vpop.f32.mrb[8].mxu0 }
 0x1de   : > { %v989_v57 = vadd.f32 %v8401_v56, %v814_v51  ;;  %v980_v58 = vpop.f32.mrb[9].mxu0 }
 0x1df   : > { %v981_v60 = vadd.f32 %v980_v58, %v804_v49  ;;  %v8402_v61 = vpop.f32.mrb[10].mxu0  ;;  %v8984_v58 = vld [vmem:[%s12202_s5 + $0x8] sm:$0xff]  }
 0x1e0   : > { %v992_v62 = vadd.f32 %v8402_v61, %v819_v52  ;;  %v983_v63 = vpop.f32.mrb[11].mxu0  ;;  %v1045_v1 = vmax.f32 %v989_v57, 0.0  ;;  %v8987_v61 = vld [vmem:[%s12202_s5 + $0x20] sm:$0xff]  }
 0x1e1   : > { %v984_v0 = vadd.f32 %v983_v63, %v809_v50  ;;  %v1043_v5 = vmax.f32 %v981_v60, 0.0  ;;  %v8986_v60 = vld [vmem:[%s12202_s5 + $0x18] sm:$0xff]   ;;  %v8989_v63 = vld [vmem:[%s12202_s5 + $0x30] sm:$0xff]  }
 0x1e2   : > { %v1046_v3 = vmax.f32 %v992_v62, 0.0  ;;  %v8988_v62 = vld [vmem:[%s12202_s5 + $0x28] sm:$0xff]  }
 0x1e3   : > { %v1044_v6 = vmax.f32 %v984_v0, 0.0  ;;  %v8990_v0 = vld [vmem:[%s12202_s5 + $0x38] sm:$0xff]  }
 0x1e4   : > { %v1188_v7 = vpack.c.bf16 %v1046_v3, %v1045_v1  ;;  %v8991_v1 = vld [vmem:[%s12202_s5 + $0x40] sm:$0xff]   ;;  %v8992_v3 = vld [vmem:[%s12202_s5 + $0x48] sm:$0xff]  }
 0x1e5   : > { %v8405_v9 = vpop.f32.mrb[12].mxu0  ;;  %v1187_v10 = vpack.c.bf16 %v1044_v6, %v1043_v5  ;;  %v8994_v5 = vld [vmem:[%s12202_s5 + $0x58] sm:$0xff]   ;;  %v8995_v6 = vld [vmem:[%s12202_s5 + $0x60] sm:$0xff]  }
 0x1e6   : > { %v1005_v11 = vadd.f32 %v8405_v9, %v834_v55  ;;  %v996_v12 = vpop.f32.mrb[13].mxu0  ;;  %v8998_v9 = vld [vmem:[%s12202_s5 + $0x78] sm:$0xff]  }
 0x1e7   : > { %v997_v13 = vadd.f32 %v996_v12, %v824_v53  ;;  %v8406_v14 = vpop.f32.mrb[14].mxu0  ;;  %8415 = vmatprep.subr.bf16.mxu0 %v1187_v10  ;;  %v9001_v12 = vld [vmem:[%s12202_s5 + $0x90] sm:$0xff]  }
 0x1e8   : > { %v1008_v15 = vadd.f32 %v8406_v14, %v839_v59  ;;  %v999_v16 = vpop.f32.mrb[15].mxu0  ;;  %8416 = vmatpush3.bf16.msra.mxu0 %v1187_v10  ;;  %v1049_v19 = vmax.f32 %v1005_v11, 0.0  ;;  %v8985_v59 = vld [vmem:[%s12202_s5 + $0x10] sm:$0xff]   ;;  %v8999_v10 = vld [vmem:[%s12202_s5 + $0x80] sm:$0xff]   ;;  %v9000_v11 = vld [vmem:[%s12202_s5 + $0x88] sm:$0xff]  }
 0x1e9   : > { %v1000_v18 = vadd.f32 %v999_v16, %v829_v54  ;;  %8417 = vmatprep.subr.bf16.mxu0 %v1188_v7  ;;  %v1047_v22 = vmax.f32 %v997_v13, 0.0  ;;  %v9002_v13 = vld [vmem:[%s12202_s5 + $0x98] sm:$0xff]   ;;  %v9003_v14 = vld [vmem:[%s12202_s5 + $0xa0] sm:$0xff]   ;;  %v9005_v16 = vld [vmem:[%s12202_s5 + $0xb0] sm:$0xff]  }
 0x1ea   : > { %v1050_v20 = vmax.f32 %v1008_v15, 0.0  ;;  %v9004_v15 = vld [vmem:[%s12202_s5 + $0xa8] sm:$0xff]  }
 0x1eb   : > { %v1048_v23 = vmax.f32 %v1000_v18, 0.0  ;;  %v9007_v18 = vld [vmem:[%s12202_s5 + $0xc0] sm:$0xff]  }
 0x1ec   : > { %8418 = vmatpush3.bf16.msra.mxu0 %v1188_v7  ;;  %v1190_v24 = vpack.c.bf16 %v1050_v20, %v1049_v19  ;;  %v8996_v7 = vld [vmem:[%s12202_s5 + $0x68] sm:$0xff]   ;;  %v9009_v20 = vld [vmem:[%s12202_s5 + $0xd0] sm:$0xff]  }
 0x1ed   : > { %v8409_v25 = vpop.f32.mrb[16].mxu0  ;;  %v1189_v26 = vpack.c.bf16 %v1048_v23, %v1047_v22  ;;  %v9008_v19 = vld [vmem:[%s12202_s5 + $0xc8] sm:$0xff]   ;;  %v9011_v22 = vld [vmem:[%s12202_s5 + $0xe0] sm:$0xff]  }
 0x1ee   : > { %v1021_v27 = vadd.f32 %v8409_v25, %v854_v17  ;;  %v1012_v28 = vpop.f32.mrb[17].mxu0  ;;  %v9006_v17 = vld [vmem:[%s12202_s5 + $0xb8] sm:$0xff]   ;;  %v9012_v23 = vld [vmem:[%s12202_s5 + $0xe8] sm:$0xff]  }
 0x1ef   : > { %v1013_v30 = vadd.f32 %v1012_v28, %v844_v4  ;;  %v8410_v31 = vpop.f32.mrb[18].mxu0  ;;  %8419 = vmatprep.subr.bf16.mxu0 %v1189_v26  ;;  %v8993_v4 = vld [vmem:[%s12202_s5 + $0x50] sm:$0xff]   ;;  %v9014_v25 = vld [vmem:[%s12202_s5 + $0xf8] sm:$0xff]  }
 0x1f0   : > { %v1024_v32 = vadd.f32 %v8410_v31, %v859_v21  ;;  %v1015_v33 = vpop.f32.mrb[19].mxu0  ;;  %8420 = vmatpush3.bf16.msra.mxu0 %v1189_v26  ;;  %v1053_v36 = vmax.f32 %v1021_v27, 0.0  ;;  %v9010_v21 = vld [vmem:[%s12202_s5 + $0xd8] sm:$0xff]   ;;  %v9015_v26 = vld [vmem:[%s12202_s5 + $0x100] sm:$0xff]   ;;  %v9016_v27 = vld [vmem:[%s12202_s5 + $0x108] sm:$0xff]  }
 0x1f1   : > { %v1016_v35 = vadd.f32 %v1015_v33, %v849_v8  ;;  %8421 = vmatprep.subr.bf16.mxu0 %v1190_v24  ;;  %v1051_v38 = vmax.f32 %v1013_v30, 0.0  ;;  %v8997_v8 = vld [vmem:[%s12202_s5 + $0x70] sm:$0xff]   ;;  %v9019_v30 = vld [vmem:[%s12202_s5 + $0x120] sm:$0xff]   ;;  %v9020_v31 = vld [vmem:[%s12202_s5 + $0x128] sm:$0xff]  }
 0x1f2   : > { %v1054_v37 = vmax.f32 %v1024_v32, 0.0  ;;  %v9017_v28 = vld [vmem:[%s12202_s5 + $0x110] sm:$0xff]   ;;  %v9022_v33 = vld [vmem:[%s12202_s5 + $0x138] sm:$0xff]  }
 0x1f3   : > { %v1052_v39 = vmax.f32 %v1016_v35, 0.0  ;;  %v9021_v32 = vld [vmem:[%s12202_s5 + $0x130] sm:$0xff]   ;;  %v9024_v35 = vld [vmem:[%s12202_s5 + $0x148] sm:$0xff]  }
 0x1f4   : > { %8422 = vmatpush3.bf16.msra.mxu0 %v1190_v24  ;;  %v1192_v40 = vpack.c.bf16 %v1054_v37, %v1053_v36  ;;  %v9013_v24 = vld [vmem:[%s12202_s5 + $0xf0] sm:$0xff]   ;;  %v9026_v37 = vld [vmem:[%s12202_s5 + $0x158] sm:$0xff]  }
 0x1f5   : > { %v8413_v42 = vpop.f32.mrb[20].mxu0  ;;  %v1191_v43 = vpack.c.bf16 %v1052_v39, %v1051_v38  ;;  %v9025_v36 = vld [vmem:[%s12202_s5 + $0x150] sm:$0xff]   ;;  %v9027_v38 = vld [vmem:[%s12202_s5 + $0x160] sm:$0xff]   ;;  %v9028_v39 = vld [vmem:[%s12202_s5 + $0x168] sm:$0xff]  }
 0x1f6   : > { %v1037_v44 = vadd.f32 %v8413_v42, %v874_v41  ;;  %v1028_v45 = vpop.f32.mrb[21].mxu0  ;;  %v9030_v41 = vld [vmem:[%s12202_s5 + $0x178] sm:$0xff]  }
 0x1f7   : > { %v1029_v47 = vadd.f32 %v1028_v45, %v864_v29  ;;  %v8414_v48 = vpop.f32.mrb[22].mxu0  ;;  %8423 = vmatprep.subr.bf16.mxu0 %v1191_v43  ;;  %v9018_v29 = vld [vmem:[%s12202_s5 + $0x118] sm:$0xff]  }
 0x1f8   : > { %v1040_v49 = vadd.f32 %v8414_v48, %v879_v46  ;;  %v1031_v50 = vpop.f32.mrb[23].mxu0  ;;  %8424 = vmatpush3.bf16.msra.mxu0 %v1191_v43  ;;  %v1057_v52 = vmax.f32 %v1037_v44, 0.0  ;;  %v9031_v46 = vld [vmem:[%s12202_s5 + $0x180] sm:$0xff]  }
 0x1f9   : > { %v1032_v51 = vadd.f32 %v1031_v50, %v869_v34  ;;  %8425 = vmatprep.subr.bf16.mxu0 %v1192_v40  ;;  %v1055_v54 = vmax.f32 %v1029_v47, 0.0  ;;  %v9023_v34 = vld [vmem:[%s12202_s5 + $0x140] sm:$0xff]   ;;  %v9032_v47 = vld [vmem:[%s12202_s5 + $0x188] sm:$0xff]  }
 0x1fa   : > { %v1058_v53 = vmax.f32 %v1040_v49, 0.0 }
 0x1fb   : > { %v1056_v55 = vmax.f32 %v1032_v51, 0.0 }
 0x1fc   : > { %8426 = vmatpush3.bf16.msra.mxu0 %v1192_v40  ;;  %v1194_v56 = vpack.c.bf16 %v1058_v53, %v1057_v52  ;;  %v9029_v40 = vld [vmem:[%s12202_s5 + $0x170] sm:$0xff]  }
 0x1fd   : > { %v1193_v57 = vpack.c.bf16 %v1056_v55, %v1055_v54 }
 0x1ff   : > { %8427 = vmatprep.subr.bf16.mxu0 %v1193_v57 }
 0x200   : > { %8428 = vmatpush3.bf16.msra.mxu0 %v1193_v57 }
 0x201   : > { %8429 = vmatprep.subr.bf16.mxu0 %v1194_v56 }
 0x204   : > { %8430 = vmatpush3.bf16.msra.mxu0 %v1194_v56 }
 0x205   : > { %5463 = vmatprep.subr.bf16.mxu0 %v12211_v2 }
 0x207   : > { %8432 = vmatmul.mubr.bf16.vlgmr.msra.gmra.mrb[24].mxu0 %v8984_v58  ;;  %v9033_v58 = vld [vmem:[%s12202_s5 + $0x190] sm:$0xff]  }
 0x208   : > { %8435 = vmatprep.mubr.bf16.mxu0 %v8985_v59 }
 0x20f   : > { %8436 = vmatmul.mubr.bf16.gmra.mrb[28].mxu0 %v8986_v60  ;;  %v9034_v60 = vld [vmem:[%s12202_s5 + $0x198] sm:$0xff]  }
 0x210   : > { %8439 = vmatprep.mubr.bf16.mxu0 %v8987_v61 }
 0x217   : > { %8440 = vmatmul.mubr.bf16.gmra.mrb[32].mxu0 %v8988_v62  ;;  %v1486_v62 = vpop.permute.xlu0 %1485 }
 0x218   : > { %8443 = vmatprep.mubr.bf16.mxu0 %v8989_v63 }
 0x21f   : > { %8444 = vmatmul.mubr.bf16.gmra.mrb[36].mxu0 %v8990_v0 }
 0x220   : > { %8447 = vmatprep.mubr.bf16.mxu0 %v8991_v1 }
 0x227   : > { %8448 = vmatmul.mubr.bf16.gmra.mrb[40].mxu0 %v8992_v3  ;;  %v1491_v3 = vpop.permute.xlu1 %1490 }
 0x228   : > { %8451 = vmatprep.mubr.bf16.mxu0 %v8993_v4 }
 0x22f   : > { %8452 = vmatmul.mubr.bf16.gmra.mrb[44].mxu0 %v8994_v5  ;;  %v1496_v5 = vpop.permute.xlu0 %1495 }
 0x230   : > { %8455 = vmatprep.mubr.bf16.mxu0 %v8995_v6 }
 0x237   : > { %8456 = vmatmul.mubr.bf16.gmra.mrb[48].mxu0 %v8996_v7  ;;  %v1501_v7 = vpop.permute.xlu1 %1500 }
 0x238   : > { %8459 = vmatprep.mubr.bf16.mxu0 %v8997_v8 }
 0x23f   : > { %8460 = vmatmul.mubr.bf16.gmra.mrb[52].mxu0 %v8998_v9  ;;  %v1506_v9 = vpop.permute.xlu0 %1505 }
 0x240   : > { %8463 = vmatprep.mubr.bf16.mxu0 %v8999_v10 }
 0x247   : > { %8464 = vmatmul.mubr.bf16.gmra.mrb[56].mxu0 %v9000_v11 }
 0x248   : > { %8467 = vmatprep.mubr.bf16.mxu0 %v9001_v12  ;;  %v1511_v12 = vpop.permute.xlu1 %1510 }
 0x24f   : > { %8468 = vmatmul.mubr.bf16.gmra.mrb[60].mxu0 %v9002_v13  ;;  %v1516_v13 = vpop.permute.xlu0 %1515 }
 0x250   : > { %8471 = vmatprep.mubr.bf16.mxu0 %v9003_v14 }
 0x257   : > { %8472 = vmatmul.mubr.bf16.gmra.mrb[64].mxu0 %v9004_v15 }
 0x258   : > { %8475 = vmatprep.mubr.bf16.mxu0 %v9005_v16 }
 0x25f   : > { %8476 = vmatmul.mubr.bf16.gmra.mrb[68].mxu0 %v9006_v17 }
 0x260   : > { %8479 = vmatprep.mubr.bf16.mxu0 %v9007_v18  ;;  %v1521_v18 = vpop.permute.xlu1 %1520 }
 0x267   : > { %8480 = vmatmul.mubr.bf16.gmra.mrb[72].mxu0 %v9008_v19  ;;  %v9698_v19 = vpop.permute.xlu0 %1525 }
 0x268   : > { %8483 = vmatprep.mubr.bf16.mxu0 %v9009_v20 }
 0x26f   : > { %8484 = vmatmul.mubr.bf16.gmra.mrb[76].mxu0 %v9010_v21 }
 0x270   : > { %8487 = vmatprep.mubr.bf16.mxu0 %v9011_v22 }
 0x277   : > { %8488 = vmatmul.mubr.bf16.gmra.mrb[80].mxu0 %v9012_v23  ;;  %v9706_v23 = vpop.permute.xlu1 %1530 }
 0x278   : > { %8491 = vmatprep.mubr.bf16.mxu0 %v9013_v24 }
 0x27f   : > { %8492 = vmatmul.mubr.bf16.gmra.mrb[84].mxu0 %v9014_v25  ;;  %v3020_v25 = vlaneseq }
 0x280   : > { %8495 = vmatprep.mubr.bf16.mxu0 %v9015_v26  ;;  %v1536_v26 = vpop.permute.xlu0 %1535 }
 0x287   : > { %8496 = vmatmul.mubr.bf16.gmra.mrb[88].mxu0 %v9016_v27  ;;  %v9710_v27 = vand.u32 127, %v3020_v25 }
 0x288   : > { %8499 = vmatprep.mubr.bf16.mxu0 %v9017_v28 }
 0x289   : > { %vm3025_vm4 = vcmp.lt.s32.totalorder %v9710_v27, 16 }
 0x28f   : > { %8500 = vmatmul.mubr.bf16.gmra.mrb[92].mxu0 %v9018_v29  ;;  %v1541_v29 = vpop.permute.xlu1 %1540 }
 0x290   : > { %8503 = vmatprep.mubr.bf16.mxu0 %v9019_v30 }
 0x297   : > { %8504 = vmatmul.mubr.bf16.gmra.mrb[96].mxu0 %v9020_v31 }
 0x298   : > { %8507 = vmatprep.mubr.bf16.mxu0 %v9021_v32  ;;  %v9712_v32 = vpop.permute.xlu0 %1545 }
 0x29f   : > { %8508 = vmatmul.mubr.bf16.gmra.mrb[100].mxu0 %v9022_v33 }
 0x2a0   : > { %8511 = vmatprep.mubr.bf16.mxu0 %v9023_v34 }
 0x2a7   : > { %8512 = vmatmul.mubr.bf16.gmra.mrb[104].mxu0 %v9024_v35 }
 0x2a8   : > { %8515 = vmatprep.mubr.bf16.mxu0 %v9025_v36 }
 0x2af   : > { %8516 = vmatmul.mubr.bf16.gmra.mrb[108].mxu0 %v9026_v37 }
 0x2b0   : > { %8519 = vmatprep.mubr.bf16.mxu0 %v9027_v38 }
 0x2b7   : > { %8520 = vmatmul.mubr.bf16.gmra.mrb[112].mxu0 %v9028_v39 }
 0x2b8   : > { %8523 = vmatprep.mubr.bf16.mxu0 %v9029_v40 }
 0x2bf   : > { %8524 = vmatmul.mubr.bf16.gmra.mrb[116].mxu0 %v9030_v41 }
 0x2c0   : > { %8527 = vmatprep.mubr.bf16.mxu0 %v9031_v46  ;;  %v9717_v46 = vpop.permute.xlu1 %1550 }
 0x2c4   : > { %v1561_v2 = vpop.permute.xlu1 %1560 }
 0x2c7   : > { %8528 = vmatmul.mubr.bf16.gmra.mrb[120].mxu0 %v9032_v47 }
 0x2c8   : > { %8531 = vmatprep.mubr.bf16.mxu0 %v9033_v58  ;;  %v1556_v58 = vpop.permute.xlu0 %1555 }
 0x2cf   : > { %8532 = vmatmul.mubr.bf16.gmra.mrb[124].mxu0 %v9034_v60 }
 0x2da   : > { %v9630_v42 = vpop.f32.mrb[24].mxu0 }
 0x2db   : > { %v9632_v43 = vpop.f32.mrb[25].mxu0 }
 0x2dc   : > { %v9634_v44 = vpop.f32.mrb[26].mxu0 }
 0x2dd   : > { %v9636_v45 = vpop.f32.mrb[27].mxu0 }
 0x2e2   : > { %v9644_v48 = vpop.f32.mrb[28].mxu0 }
 0x2e3   : > { %v9646_v49 = vpop.f32.mrb[29].mxu0 }
 0x2e4   : > { %v9648_v50 = vpop.f32.mrb[30].mxu0 }
 0x2e5   : > { %v9650_v51 = vpop.f32.mrb[31].mxu0 }
 0x2ea   : > { %v9652_v52 = vpop.f32.mrb[32].mxu0 }
 0x2eb   : > { %v9654_v53 = vpop.f32.mrb[33].mxu0 }
 0x2ec   : > { %v9656_v54 = vpop.f32.mrb[34].mxu0 }
 0x2ed   : > { %12213 = vst [vmem:[#allocation3_spill] sm:$0xff] %v9656_v54  ;;  %v9658_v55 = vpop.f32.mrb[35].mxu0 }
 0x2ee   : > { %12214 = vst [vmem:[#allocation4_spill] sm:$0xff] %v9658_v55 }
 0x2f2   : > { %v9660_v56 = vpop.f32.mrb[36].mxu0 }
 0x2f3   : > { %v9662_v57 = vpop.f32.mrb[37].mxu0 }
 0x2f4   : > { %v9667_v59 = vpop.f32.mrb[38].mxu0 }
 0x2f5   : > { %12215 = vst [vmem:[#allocation5_spill] sm:$0xff] %v9667_v59  ;;  %v9672_v61 = vpop.f32.mrb[39].mxu0 }
 0x2f6   : > { %12216 = vst [vmem:[#allocation6_spill] sm:$0xff] %v9672_v61 }
 0x2fa   : > { %v9674_v63 = vpop.f32.mrb[40].mxu0 }
 0x2fb   : > { %12217 = vst [vmem:[#allocation7_spill] sm:$0xff] %v9674_v63  ;;  %v9676_v0 = vpop.f32.mrb[41].mxu0  ;;  %v12233_v63 = vmov 0  }
 0x2fc   : > { %12218 = vst [vmem:[#allocation8_spill] sm:$0xff] %v9676_v0  ;;  %v9678_v1 = vpop.f32.mrb[42].mxu0 }
 0x2fd   : > { %12219 = vst [vmem:[#allocation9_spill] sm:$0xff] %v9678_v1  ;;  %v9680_v4 = vpop.f32.mrb[43].mxu0 }
 0x2fe   : > { %12220 = vst [vmem:[#allocation10_spill] sm:$0xff] %v9680_v4 }
 0x302   : > { %v9682_v6 = vpop.f32.mrb[44].mxu0 }
 0x303   : > { %12221 = vst [vmem:[#allocation11_spill] sm:$0xff] %v9682_v6  ;;  %v9684_v8 = vpop.f32.mrb[45].mxu0 }
 0x304   : > { %12222 = vst [vmem:[#allocation12_spill] sm:$0xff] %v9684_v8  ;;  %v9686_v10 = vpop.f32.mrb[46].mxu0 }
 0x305   : > { %12223 = vst [vmem:[#allocation13_spill] sm:$0xff] %v9686_v10  ;;  %v9688_v11 = vpop.f32.mrb[47].mxu0  ;;  %v1292_v10 = vld [vmem:[%s12203_s6 + $0x308] sm:$0xff] }
 0x306   : > { %12224 = vst [vmem:[#allocation14_spill] sm:$0xff] %v9688_v11  ;;  %v9039_v11 = vld [vmem:[%s12202_s5 + $0x1c0] sm:$0xff]  }
 0x30a   : > { %v9690_v14 = vpop.f32.mrb[48].mxu0 }
 0x30b   : > { %12225 = vst [vmem:[#allocation15_spill] sm:$0xff] %v9690_v14  ;;  %v9692_v15 = vpop.f32.mrb[49].mxu0 }
 0x30c   : > { %12226 = vst [vmem:[#allocation16_spill] sm:$0xff] %v9692_v15  ;;  %v9694_v16 = vpop.f32.mrb[50].mxu0 }
 0x30d   : > { %12227 = vst [vmem:[#allocation17_spill] sm:$0xff] %v9694_v16  ;;  %v9696_v17 = vpop.f32.mrb[51].mxu0 }
 0x30e   : > { %12228 = vst [vmem:[#allocation18_spill] sm:$0xff] %v9696_v17 }
 0x312   : > { %v9700_v20 = vpop.f32.mrb[52].mxu0 }
 0x313   : > { %12229 = vst [vmem:[#allocation19_spill] sm:$0xff] %v9700_v20  ;;  %v9702_v21 = vpop.f32.mrb[53].mxu0 }
 0x314   : > { %12230 = vst [vmem:[#allocation20_spill] sm:$0xff] %v9702_v21  ;;  %v9704_v22 = vpop.f32.mrb[54].mxu0 }
 0x315   : > { %12231 = vst [vmem:[#allocation21_spill] sm:$0xff] %v9704_v22  ;;  %v9708_v24 = vpop.f32.mrb[55].mxu0 }
 0x316   : > { %12232 = vst [vmem:[#allocation22_spill] sm:$0xff] %v9708_v24 }
 0x31a   : > { %v8465_v28 = vpop.f32.mrb[56].mxu0 }
 0x31b   : > { %v2518_v30 = vadd.f32 %v8465_v28, %v1496_v5  ;;  %v2509_v31 = vpop.f32.mrb[57].mxu0 }
 0x31c   : > { %v2510_v33 = vadd.f32 %v2509_v31, %v1486_v62  ;;  %v8466_v34 = vpop.f32.mrb[58].mxu0 }
 0x31d   : > { %v2512_v35 = vpop.f32.mrb[59].mxu0  ;;  %v2521_v36 = vadd.f32 %v8466_v34, %v1501_v7  ;;  %v2926_v39 = vmax.f32 %v2518_v30, 0.0 }
 0x31e   : > { %v2513_v37 = vadd.f32 %v2512_v35, %v1491_v3  ;;  %v2924_v38 = vmax.f32 %v2510_v33, 0.0 }
 0x31f   : > { %v3062_v5 = vsel %vm3025_vm4, %v2926_v39, 0.0  ;;  %v2927_v25 = vmax.f32 %v2521_v36, 0.0  ;;  %v9725_v36 = vpop.permute.xlu0 %1565 }
 0x320   : > { %v3060_v40 = vsel %vm3025_vm4, %v2924_v38, 0.0  ;;  %v2925_v41 = vmax.f32 %v2513_v37, 0.0  ;;  %v3318_v35 = vmax.f32 %v3062_v5, 0.0 }
 0x321   : > { %v3316_v47 = vmax.f32 %v3060_v40, 0.0  ;;  %v3063_v40 = vsel %vm3025_vm4, %v2927_v25, 0.0 }
 0x322   : > { %v8469_v60 = vpop.f32.mrb[60].mxu0  ;;  %v3061_v62 = vsel %vm3025_vm4, %v2925_v41, 0.0 }
 0x323   : > { %v2534_v7 = vadd.f32 %v8469_v60, %v1516_v13  ;;  %v2525_v3 = vpop.f32.mrb[61].mxu0  ;;  %3607 = vmax.xlane.f32.xlu0 %v3316_v47  ;;  %v3317_v28 = vmax.f32 %v3061_v62, 0.0  ;;  %v3319_v47 = vmax.f32 %v3063_v40, 0.0  ;;  %v1576_v40 = vpop.permute.xlu0 %1575 }
 0x324   : > { %v2526_v30 = vadd.f32 %v2525_v3, %v1506_v9  ;;  %v8470_v31 = vpop.f32.mrb[62].mxu0  ;;  %v9035_v9 = vld [vmem:[%s12202_s5 + $0x1a0] sm:$0xff]   ;;  %v9036_v3 = vld [vmem:[%s12202_s5 + $0x1a8] sm:$0xff]  }
 0x325   : > { %v2537_v33 = vadd.f32 %v8470_v31, %v1521_v18  ;;  %v2528_v34 = vpop.f32.mrb[63].mxu0  ;;  %3609 = vmax.xlane.f32.xlu1 %v3317_v28  ;;  %v2930_v41 = vmax.f32 %v2534_v7, 0.0  ;;  %8535 = vmatprep.mubr.bf16.mxu0 %v9035_v9  ;;  %v1571_v31 = vpop.permute.xlu1 %1570 }
 0x326   : > { %v2529_v37 = vadd.f32 %v2528_v34, %v1511_v12  ;;  %v2928_v38 = vmax.f32 %v2526_v30, 0.0  ;;  %8536 = vmatmul.mubr.bf16.gmra.mrb[128].mxu0 %v9036_v3 }
 0x327   : > { %3611 = vmax.xlane.f32.xlu0 %v3318_v35  ;;  %v2931_v39 = vmax.f32 %v2537_v33, 0.0  ;;  %v3066_v60 = vsel %vm3025_vm4, %v2930_v41, 0.0 }
 0x328   : > { %v3064_v13 = vsel %vm3025_vm4, %v2928_v38, 0.0  ;;  %v2929_v5 = vmax.f32 %v2529_v37, 0.0  ;;  %v3322_v35 = vmax.f32 %v3066_v60, 0.0 }
 0x329   : > { %v3320_v18 = vmax.f32 %v3064_v13, 0.0  ;;  %v3067_v62 = vsel %vm3025_vm4, %v2931_v39, 0.0  ;;  %v1581_v60 = vpop.permute.xlu1 %1580 }
 0x32a   : > { %v8473_v12 = vpop.f32.mrb[64].mxu0  ;;  %v3323_v38 = vmax.f32 %v3067_v62, 0.0  ;;  %v3065_v41 = vsel %vm3025_vm4, %v2929_v5, 0.0 }
 0x32b   : > { %v2550_v25 = vadd.f32 %v8473_v12, %v1536_v26  ;;  %v2541_v7 = vpop.f32.mrb[65].mxu0  ;;  %3615 = vmax.xlane.f32.xlu1 %v3320_v18  ;;  %3613 = vmax.xlane.f32.xlu0 %v3319_v47 }
 0x32c   : > { %v2542_v28 = vadd.f32 %v2541_v7, %v9698_v19  ;;  %v8474_v30 = vpop.f32.mrb[66].mxu0 }
 0x32d   : > { %v2553_v33 = vadd.f32 %v8474_v30, %v1541_v29  ;;  %v2544_v34 = vpop.f32.mrb[67].mxu0  ;;  %v2934_v39 = vmax.f32 %v2550_v25, 0.0  ;;  %v3321_v29 = vmax.f32 %v3065_v41, 0.0  ;;  %v1586_v25 = vpop.permute.xlu0 %1585 }
 0x32e   : > { %v2545_v37 = vadd.f32 %v2544_v34, %v9706_v23  ;;  %v2932_v26 = vmax.f32 %v2542_v28, 0.0 }
 0x32f   : > { %3619 = vmax.xlane.f32.xlu1 %v3322_v35  ;;  %3621 = vmax.xlane.f32.xlu0 %v3323_v38  ;;  %v2935_v13 = vmax.f32 %v2553_v33, 0.0  ;;  %v3070_v47 = vsel %vm3025_vm4, %v2934_v39, 0.0  ;;  %v1591_v39 = vpop.permute.xlu1 %1590 }
 0x330   : > { %v3068_v19 = vsel %vm3025_vm4, %v2932_v26, 0.0  ;;  %v2933_v12 = vmax.f32 %v2545_v37, 0.0  ;;  %v3326_v33 = vmax.f32 %v3070_v47, 0.0 }
 0x331   : > { %v3324_v9 = vmax.f32 %v3068_v19, 0.0  ;;  %v3071_v23 = vsel %vm3025_vm4, %v2935_v13, 0.0 }
 0x332   : > { %v8477_v18 = vpop.f32.mrb[68].mxu0  ;;  %v3327_v34 = vmax.f32 %v3071_v23, 0.0  ;;  %v3069_v26 = vsel %vm3025_vm4, %v2933_v12, 0.0 }
 0x333   : > { %v2566_v62 = vadd.f32 %v8477_v18, %v1556_v58  ;;  %v2557_v5 = vpop.f32.mrb[69].mxu0  ;;  %3623 = vmax.xlane.f32.xlu1 %v3324_v9  ;;  %3617 = vmax.xlane.f32.xlu0 %v3321_v29  ;;  %v3325_v13 = vmax.f32 %v3069_v26, 0.0 }
 0x334   : > { %v2558_v7 = vadd.f32 %v2557_v5, %v9712_v32  ;;  %v8478_v3 = vpop.f32.mrb[70].mxu0 }
 0x335   : > { %v2569_v28 = vadd.f32 %v8478_v3, %v1561_v2  ;;  %v2560_v30 = vpop.f32.mrb[71].mxu0  ;;  %v2938_v37 = vmax.f32 %v2566_v62, 0.0  ;;  %v1596_v2 = vpop.permute.xlu0 %1595 }
 0x336   : > { %v2561_v35 = vadd.f32 %v2560_v30, %v9717_v46  ;;  %v2936_v38 = vmax.f32 %v2558_v7, 0.0 }
 0x337   : > { %3627 = vmax.xlane.f32.xlu1 %v3326_v33  ;;  %3629 = vmax.xlane.f32.xlu0 %v3327_v34  ;;  %v2939_v58 = vmax.f32 %v2569_v28, 0.0  ;;  %v3074_v9 = vsel %vm3025_vm4, %v2938_v37, 0.0 }
 0x338   : > { %v3072_v41 = vsel %vm3025_vm4, %v2936_v38, 0.0  ;;  %v2937_v29 = vmax.f32 %v2561_v35, 0.0  ;;  %v3330_v7 = vmax.f32 %v3074_v9, 0.0  ;;  %v1601_v38 = vpop.permute.xlu1 %1600 }
 0x339   : > { %v3328_v32 = vmax.f32 %v3072_v41, 0.0  ;;  %v3075_v46 = vsel %vm3025_vm4, %v2939_v58, 0.0  ;;  %v1606_v35 = vpop.permute.xlu0 %1605 }
 0x33a   : > { %v8481_v19 = vpop.f32.mrb[72].mxu0  ;;  %v3331_v3 = vmax.f32 %v3075_v46, 0.0  ;;  %v3073_v33 = vsel %vm3025_vm4, %v2937_v29, 0.0 }
 0x33b   : > { %v2582_v18 = vadd.f32 %v8481_v19, %v1576_v40  ;;  %v2573_v47 = vpop.f32.mrb[73].mxu0  ;;  %3631 = vmax.xlane.f32.xlu1 %v3328_v32  ;;  %3625 = vmax.xlane.f32.xlu0 %v3325_v13  ;;  %v3329_v37 = vmax.f32 %v3073_v33, 0.0 }
 0x33c   : > { %v2574_v23 = vadd.f32 %v2573_v47, %v9725_v36  ;;  %v8482_v12 = vpop.f32.mrb[74].mxu0  ;;  %v1611_v46 = vpop.permute.xlu1 %1610 }
 0x33d   : > { %v2585_v62 = vadd.f32 %v8482_v12, %v1581_v60  ;;  %v2576_v5 = vpop.f32.mrb[75].mxu0  ;;  %v2942_v34 = vmax.f32 %v2582_v18, 0.0  ;;  %v1616_v12 = vpop.permute.xlu0 %1615 }
 0x33e   : > { %v2577_v28 = vadd.f32 %v2576_v5, %v1571_v31  ;;  %v2940_v30 = vmax.f32 %v2574_v23, 0.0 }
 0x33f   : > { %3635 = vmax.xlane.f32.xlu1 %v3330_v7  ;;  %3637 = vmax.xlane.f32.xlu0 %v3331_v3  ;;  %v2943_v40 = vmax.f32 %v2585_v62, 0.0  ;;  %v3078_v58 = vsel %vm3025_vm4, %v2942_v34, 0.0 }
 0x340   : > { %v3076_v26 = vsel %vm3025_vm4, %v2940_v30, 0.0  ;;  %v2941_v41 = vmax.f32 %v2577_v28, 0.0  ;;  %v3334_v47 = vmax.f32 %v3078_v58, 0.0 }
 0x341   : > { %v3332_v36 = vmax.f32 %v3076_v26, 0.0  ;;  %v3079_v31 = vsel %vm3025_vm4, %v2943_v40, 0.0  ;;  %v1621_v40 = vpop.permute.xlu1 %1620 }
 0x342   : > { %v8485_v60 = vpop.f32.mrb[76].mxu0  ;;  %v3335_v23 = vmax.f32 %v3079_v31, 0.0  ;;  %v3077_v7 = vsel %vm3025_vm4, %v2941_v41, 0.0 }
 0x343   : > { %v2598_v32 = vadd.f32 %v8485_v60, %v1596_v2  ;;  %v2589_v13 = vpop.f32.mrb[77].mxu0  ;;  %3639 = vmax.xlane.f32.xlu1 %v3332_v36  ;;  %3633 = vmax.xlane.f32.xlu0 %v3329_v37  ;;  %v3333_v30 = vmax.f32 %v3077_v7, 0.0  ;;  %v1626_v37 = vpop.permute.xlu0 %1625 }
 0x344   : > { %v2590_v19 = vadd.f32 %v2589_v13, %v1586_v25  ;;  %v8486_v9 = vpop.f32.mrb[78].mxu0 }
 0x345   : > { %v2601_v29 = vadd.f32 %v8486_v9, %v1601_v38  ;;  %v2592_v18 = vpop.f32.mrb[79].mxu0  ;;  %v2946_v3 = vmax.f32 %v2598_v32, 0.0 }
 0x346   : > { %v2593_v62 = vadd.f32 %v2592_v18, %v1591_v39  ;;  %v2944_v5 = vmax.f32 %v2590_v19, 0.0 }
 0x347   : > { %3643 = vmax.xlane.f32.xlu1 %v3334_v47  ;;  %3645 = vmax.xlane.f32.xlu0 %v3335_v23  ;;  %v2947_v2 = vmax.f32 %v2601_v29, 0.0  ;;  %v3082_v34 = vsel %vm3025_vm4, %v2946_v3, 0.0 }
 0x348   : > { %v3080_v28 = vsel %vm3025_vm4, %v2944_v5, 0.0  ;;  %v2945_v38 = vmax.f32 %v2593_v62, 0.0  ;;  %v3338_v32 = vmax.f32 %v3082_v34, 0.0 }
 0x349   : > { %v3336_v25 = vmax.f32 %v3080_v28, 0.0  ;;  %v3083_v39 = vsel %vm3025_vm4, %v2947_v2, 0.0 }
 0x34a   : > { %v8489_v33 = vpop.f32.mrb[80].mxu0  ;;  %v3339_v13 = vmax.f32 %v3083_v39, 0.0  ;;  %v3081_v29 = vsel %vm3025_vm4, %v2945_v38, 0.0 }
 0x34b   : > { %v2614_v26 = vadd.f32 %v8489_v33, %v1616_v12  ;;  %v2605_v36 = vpop.f32.mrb[81].mxu0  ;;  %3647 = vmax.xlane.f32.xlu1 %v3336_v25  ;;  %3641 = vmax.xlane.f32.xlu0 %v3333_v30  ;;  %v3337_v62 = vmax.f32 %v3081_v29, 0.0 }
 0x34c   : > { %v2606_v60 = vadd.f32 %v2605_v36, %v1606_v35  ;;  %v8490_v58 = vpop.f32.mrb[82].mxu0  ;;  %v1636_v35 = vpop.permute.xlu0 %1635 }
 0x34d   : > { %v2617_v31 = vadd.f32 %v8490_v58, %v1621_v40  ;;  %v2608_v41 = vpop.f32.mrb[83].mxu0  ;;  %v2950_v18 = vmax.f32 %v2614_v26, 0.0 }
 0x34e   : > { %v2609_v19 = vadd.f32 %v2608_v41, %v1611_v46  ;;  %v2948_v9 = vmax.f32 %v2606_v60, 0.0 }
 0x34f   : > { %3651 = vmax.xlane.f32.xlu1 %v3338_v32  ;;  %3653 = vmax.xlane.f32.xlu0 %v3339_v13  ;;  %v2951_v47 = vmax.f32 %v2617_v31, 0.0  ;;  %v3086_v7 = vsel %vm3025_vm4, %v2950_v18, 0.0  ;;  %v1259_v32 = vld [vmem:[%s12203_s6 + $0x200] sm:$0xff]  ;;  %v1261_v18 = vld [vmem:[%s12203_s6 + $0x210] sm:$0xff] }
 0x350   : > { %v3084_v23 = vsel %vm3025_vm4, %v2948_v9, 0.0  ;;  %v2949_v3 = vmax.f32 %v2609_v19, 0.0  ;;  %v3342_v34 = vmax.f32 %v3086_v7, 0.0  ;;  %v1260_v19 = vld [vmem:[%s12203_s6 + $0x208] sm:$0xff] }
 0x351   : > { %v3340_v12 = vmax.f32 %v3084_v23, 0.0  ;;  %v3087_v46 = vsel %vm3025_vm4, %v2951_v47, 0.0  ;;  %v1263_v47 = vld [vmem:[%s12203_s6 + $0x220] sm:$0xff] }
 0x352   : > { %v8493_v5 = vpop.f32.mrb[84].mxu0  ;;  %v3343_v39 = vmax.f32 %v3087_v46, 0.0  ;;  %v3085_v40 = vsel %vm3025_vm4, %v2949_v3, 0.0  ;;  %v1267_v46 = vld [vmem:[%s12203_s6 + $0x240] sm:$0xff] }
 0x353   : > { %v2630_v2 = vadd.f32 %v8493_v5, %v1636_v35  ;;  %v2621_v28 = vpop.f32.mrb[85].mxu0  ;;  %3655 = vmax.xlane.f32.xlu1 %v3340_v12  ;;  %3649 = vmax.xlane.f32.xlu0 %v3337_v62  ;;  %v3341_v58 = vmax.f32 %v3085_v40, 0.0  ;;  %v1262_v62 = vld [vmem:[%s12203_s6 + $0x218] sm:$0xff]  ;;  %v1265_v35 = vld [vmem:[%s12203_s6 + $0x230] sm:$0xff]  ;;  %v1264_v5 = vld [vmem:[%s12203_s6 + $0x228] sm:$0xff] }
 0x354   : > { %v2622_v25 = vadd.f32 %v2621_v28, %v1626_v37  ;;  %v9784_v30 = vpop.f32.mrb[86].mxu0  ;;  %v1271_v40 = vld [vmem:[%s12203_s6 + $0x260] sm:$0xff] }
 0x355   : > { %v9786_v33 = vpop.f32.mrb[87].mxu0  ;;  %v2954_v26 = vmax.f32 %v2630_v2, 0.0 }
 0x356   : > { %v2952_v38 = vmax.f32 %v2622_v25, 0.0  ;;  %v1266_v25 = vld [vmem:[%s12203_s6 + $0x238] sm:$0xff] }
 0x357   : > { %3659 = vmax.xlane.f32.xlu1 %v3342_v34  ;;  %3661 = vmax.xlane.f32.xlu0 %v3343_v39  ;;  %v3090_v37 = vsel %vm3025_vm4, %v2954_v26, 0.0  ;;  %v1269_v34 = vld [vmem:[%s12203_s6 + $0x250] sm:$0xff]  ;;  %v1268_v39 = vld [vmem:[%s12203_s6 + $0x248] sm:$0xff] }
 0x358   : > { %v3088_v36 = vsel %vm3025_vm4, %v2952_v38, 0.0  ;;  %v3346_v31 = vmax.f32 %v3090_v37, 0.0  ;;  %v1272_v37 = vld [vmem:[%s12203_s6 + $0x268] sm:$0xff] }
 0x359   : > { %v3344_v60 = vmax.f32 %v3088_v36, 0.0 }
 0x35a   : > { %v9794_v41 = vpop.f32.mrb[88].mxu0 }
 0x35b   : > { %3663 = vmax.xlane.f32.xlu1 %v3344_v60  ;;  %3657 = vmax.xlane.f32.xlu0 %v3341_v58  ;;  %v9799_v13 = vpop.f32.mrb[89].mxu0  ;;  %v1270_v58 = vld [vmem:[%s12203_s6 + $0x258] sm:$0xff] }
 0x35c   : > { %v9804_v9 = vpop.f32.mrb[90].mxu0 }
 0x35d   : > { %v9806_v29 = vpop.f32.mrb[91].mxu0 }
 0x35f   : > { %3667 = vmax.xlane.f32.xlu1 %v3346_v31 }
 0x362   : > { %v9814_v23 = vpop.f32.mrb[92].mxu0 }
 0x363   : > { %v9816_v12 = vpop.f32.mrb[93].mxu0 }
 0x364   : > { %v9827_v7 = vpop.f32.mrb[94].mxu0 }
 0x365   : > { %v9832_v3 = vpop.f32.mrb[95].mxu0 }
 0x36a   : > { %v9834_v2 = vpop.f32.mrb[96].mxu0 }
 0x36b   : > { %v9836_v28 = vpop.f32.mrb[97].mxu0 }
 0x36c   : > { %v9847_v38 = vpop.f32.mrb[98].mxu0 }
 0x36d   : > { %v9852_v26 = vpop.f32.mrb[99].mxu0 }
 0x370   : > { %1645 = vperm.xlu1 %8970, %v1259_v32  }
 0x371   : > { %1650 = vperm.xlu0 %8969, %v1260_v19   ;;  %v1274_v19 = vld [vmem:[%s12203_s6 + $0x278] sm:$0xff] }
 0x372   : > { %v9854_v36 = vpop.f32.mrb[100].mxu0 }
 0x373   : > { %v9856_v60 = vpop.f32.mrb[101].mxu0 }
 0x374   : > { %1655 = vperm.xlu1 %8970, %v1261_v18   ;;  %v9864_v31 = vpop.f32.mrb[102].mxu0  ;;  %v1631_v18 = vpop.permute.xlu1 %1630 }
 0x375   : > { %1665 = vperm.xlu0 %8969, %v1263_v47   ;;  %v9866_v32 = vpop.f32.mrb[103].mxu0  ;;  %v1276_v47 = vld [vmem:[%s12203_s6 + $0x288] sm:$0xff] }
 0x378   : > { %1660 = vperm.xlu1 %8970, %v1262_v62  }
 0x379   : > { %1675 = vperm.xlu0 %8969, %v1265_v35  }
 0x37a   : > { %v9874_v62 = vpop.f32.mrb[104].mxu0 }
 0x37b   : > { %v9876_v35 = vpop.f32.mrb[105].mxu0 }
 0x37c   : > { %1670 = vperm.xlu1 %8970, %v1264_v5   ;;  %v9878_v5 = vpop.f32.mrb[106].mxu0 }
 0x37d   : > { %1685 = vperm.xlu0 %8969, %v1267_v46   ;;  %v9880_v46 = vpop.f32.mrb[107].mxu0 }
 0x380   : > { %1680 = vperm.xlu1 %8970, %v1266_v25   ;;  %v1278_v25 = vld [vmem:[%s12203_s6 + $0x298] sm:$0xff] }
 0x381   : > { %1695 = vperm.xlu0 %8969, %v1269_v34   ;;  %v1641_v34 = vpop.permute.xlu1 %1640 }
 0x384   : > { %1690 = vperm.xlu1 %8970, %v1268_v39   ;;  %v2633_v39 = vadd.f32 %v9784_v30, %v1641_v34  ;;  %v1282_v30 = vld [vmem:[%s12203_s6 + $0x2b8] sm:$0xff] }
 0x385   : > { %1705 = vperm.xlu0 %8969, %v1271_v40   ;;  %v1280_v40 = vld [vmem:[%s12203_s6 + $0x2a8] sm:$0xff] }
 0x388   : > { %1700 = vperm.xlu1 %8970, %v1270_v58   ;;  %v9889_v58 = vpop.f32.mrb[108].mxu0 }
 0x38c   : > { %1710 = vperm.xlu1 %8970, %v1272_v37   ;;  %v9891_v37 = vpop.f32.mrb[109].mxu0 }
 0x38d   : > { %v9894_v20 = vpop.f32.mrb[110].mxu0 }
 0x38e   : > { %v9896_v22 = vpop.f32.mrb[111].mxu0 }
 0x38f   : > { %v9906_v21 = vpop.f32.mrb[112].mxu0 }
 0x390   : > { %1720 = vperm.xlu1 %8970, %v1274_v19   ;;  %v2955_v19 = vmax.f32 %v2633_v39, 0.0  ;;  %v1284_v39 = vld [vmem:[%s12203_s6 + $0x2c8] sm:$0xff] }
 0x392   : > { %v3091_v34 = vsel %vm3025_vm4, %v2955_v19, 0.0 }
 0x394   : > { %1730 = vperm.xlu1 %8970, %v1276_v47   ;;  %v2625_v47 = vadd.f32 %v9786_v33, %v1631_v18  ;;  %v3347_v33 = vmax.f32 %v3091_v34, 0.0  ;;  %v9908_v18 = vpop.f32.mrb[113].mxu0  ;;  %v1286_v34 = vld [vmem:[%s12203_s6 + $0x2d8] sm:$0xff] }
 0x395   : > { %v9912_v14 = vpop.f32.mrb[114].mxu0 }
 0x396   : > { %v9917_v19 = vpop.f32.mrb[115].mxu0 }
 0x398   : > { %1740 = vperm.xlu1 %8970, %v1278_v25   ;;  %v2953_v25 = vmax.f32 %v2625_v47, 0.0  ;;  %v9037_v47 = vld [vmem:[%s12202_s5 + $0x1b0] sm:$0xff]  }
 0x399   : > { %8539 = vmatprep.mubr.bf16.mxu0 %v9037_v47 }
 0x39c   : > { %1750 = vperm.xlu1 %8970, %v1280_v40   ;;  %v3089_v40 = vsel %vm3025_vm4, %v2953_v25, 0.0 }
 0x39d   : > { %v3345_v25 = vmax.f32 %v3089_v40, 0.0  ;;  %v1290_v40 = vld [vmem:[%s12203_s6 + $0x2f8] sm:$0xff] }
 0x3a0   : > { %1760 = vperm.xlu1 %8970, %v1282_v30   ;;  %v9038_v30 = vld [vmem:[%s12202_s5 + $0x1b8] sm:$0xff]  }
 0x3a1   : > { %8540 = vmatmul.mubr.bf16.gmra.mrb[132].mxu0 %v9038_v30  ;;  %v1195_v30 = vld [vmem:[%s12203_s6] sm:$0xff] }
 0x3a2   : > { %8543 = vmatprep.mubr.bf16.mxu0 %v9039_v11  ;;  %v1279_v11 = vld [vmem:[%s12203_s6 + $0x2a0] sm:$0xff] }
 0x3a4   : > { %1770 = vperm.xlu1 %8970, %v1284_v39   ;;  %3669 = vmax.xlane.f32.xlu0 %v3347_v33  ;;  %v1288_v39 = vld [vmem:[%s12203_s6 + $0x2e8] sm:$0xff]  ;;  %v9928_v33 = vpop.f32.mrb[116].mxu0 }
 0x3a5   : > { %v9930_v15 = vpop.f32.mrb[117].mxu0 }
 0x3a6   : > { %v9932_v6 = vpop.f32.mrb[118].mxu0 }
 0x3a7   : > { %v9934_v8 = vpop.f32.mrb[119].mxu0 }
 0x3a8   : > { %1780 = vperm.xlu1 %8970, %v1286_v34   ;;  %3665 = vmax.xlane.f32.xlu0 %v3345_v25  ;;  %v9946_v16 = vpop.f32.mrb[120].mxu0 }
 0x3a9   : > { %12234 = vst [vmem:[#allocation23_spill] sm:$0xff] %v9946_v16 }
 0x3ac   : > { %1790 = vperm.xlu1 %8970, %v1288_v39   ;;  %v1291_v39 = vld [vmem:[%s12203_s6 + $0x300] sm:$0xff] }
 0x3b0   : > { %1800 = vperm.xlu1 %8970, %v1290_v40   ;;  %v3608_v47 = vpop.xlane.xlu0 %3607 }
 0x3b2   : > { %v3610_v34 = vpop.xlane.xlu1 %3609 }
 0x3b3   : > { %v4071_v25 = vpack.c.bf16 %v3610_v34, %v3608_v47  ;;  %v9951_v47 = vpop.f32.mrb[121].mxu0 }
 0x3b4   : > { %1325 = vperm.xlu1 %8970, %v1195_v30   ;;  %v3612_v24 = vpop.xlane.xlu0 %3611  ;;  %12235 = vst [vmem:[#allocation24_spill] sm:$0xff] %v9951_v47  ;;  %v1273_v30 = vld [vmem:[%s12203_s6 + $0x270] sm:$0xff]  ;;  %v9956_v34 = vpop.f32.mrb[122].mxu0 }
 0x3b5   : > { %5753 = vmatpush1.bf16.msra.mxu1 %v4071_v25  ;;  %12236 = vst [vmem:[#allocation25_spill] sm:$0xff] %v9956_v34 }
 0x3b6   : > { %5754 = vmatprep.subr.bf16.mxu1 %v12233_v63 }
 0x3b8   : > { %1805 = vperm.xlu1 %8970, %v1291_v39   ;;  %v3616_v40 = vpop.xlane.xlu1 %3615  ;;  %v3614_v0 = vpop.xlane.xlu0 %3613 }
 0x3b9   : > { %v4072_v17 = vpack.c.bf16 %v3614_v0, %v3612_v24  ;;  %v1198_v0 = vld [vmem:[%s12203_s6 + $0x18] sm:$0xff]  ;;  %v9962_v24 = vpop.f32.mrb[123].mxu0 }
 0x3ba   : > { %12237 = vst [vmem:[#allocation26_spill] sm:$0xff] %v9962_v24 }
 0x3bb   : > { %5755 = vmatpush1.bf16.msra.mxu1 %v4072_v17  ;;  %v1275_v17 = vld [vmem:[%s12203_s6 + $0x280] sm:$0xff] }
 0x3bc   : > { %1810 = vperm.xlu1 %8970, %v1292_v10   ;;  %v3620_v25 = vpop.xlane.xlu1 %3619  ;;  %v3622_v16 = vpop.xlane.xlu0 %3621  ;;  %5756 = vmatprep.subr.bf16.mxu1 %v12233_v63  ;;  %v1294_v10 = vld [vmem:[%s12203_s6 + $0x318] sm:$0xff] }
 0x3bd   : > { %v4074_v59 = vpack.c.bf16 %v3622_v16, %v3620_v25  ;;  %v1296_v16 = vld [vmem:[%s12203_s6 + $0x328] sm:$0xff]  ;;  %v10004_v25 = vpop.f32.mrb[124].mxu0 }
 0x3be   : > { %1715 = vperm.xlu0 %8969, %v1273_v30   ;;  %v9040_v30 = vld [vmem:[%s12202_s5 + $0x1c8] sm:$0xff]   ;;  %12238 = vst [vmem:[#allocation27_spill] sm:$0xff] %v10004_v25 }
 0x3bf   : > { %8544 = vmatmul.mubr.bf16.gmra.mrb[136].mxu0 %v9040_v30  ;;  %v10006_v30 = vpop.f32.mrb[125].mxu0 }
 0x3c0   : > { %1340 = vperm.xlu1 %8970, %v1198_v0   ;;  %v3624_v39 = vpop.xlane.xlu1 %3623  ;;  %v3618_v47 = vpop.xlane.xlu0 %3617  ;;  %v9979_v0 = vld [vmem:[%s12204_s7 + $0x8] sm:$0xff]  ;;  %12239 = vst [vmem:[#allocation28_spill] sm:$0xff] %v10006_v30 }
 0x3c1   : > { %v4073_v34 = vpack.c.bf16 %v3618_v47, %v3616_v40  ;;  %v9984_v40 = vld [vmem:[%s12204_s7 + $0x28] sm:$0xff]  ;;  %v1277_v47 = vld [vmem:[%s12203_s6 + $0x290] sm:$0xff] }
 0x3c2   : > { %1725 = vperm.xlu0 %8969, %v1275_v17   ;;  %v7724_v17 = vcombine.high %v9979_v0, %v9984_v40 }
 0x3c3   : > { %5757 = vmatpush1.bf16.msra.mxu1 %v4073_v34  ;;  %v1200_v34 = vld [vmem:[%s12203_s6 + $0x28] sm:$0xff] }
 0x3c4   : > { %1820 = vperm.xlu1 %8970, %v1294_v10   ;;  %v3628_v24 = vpop.xlane.xlu1 %3627  ;;  %v3630_v1 = vpop.xlane.xlu0 %3629  ;;  %5758 = vmatprep.subr.bf16.mxu1 %v12233_v63 }
 0x3c5   : > { %5784 = vmatprep.mubr.bf16.mxu1 %v7724_v17 }
 0x3c6   : > { %1735 = vperm.xlu0 %8969, %v1277_v47   ;;  %v10011_v47 = vpop.f32.mrb[126].mxu0 }
 0x3c7   : > { %5759 = vmatpush1.bf16.msra.mxu1 %v4074_v59  ;;  %v1281_v59 = vld [vmem:[%s12203_s6 + $0x2b0] sm:$0xff]  ;;  %12240 = vst [vmem:[#allocation29_spill] sm:$0xff] %v10011_v47 }
 0x3c8   : > { %1350 = vperm.xlu1 %8970, %v1200_v34   ;;  %v3632_v10 = vpop.xlane.xlu1 %3631  ;;  %v3626_v61 = vpop.xlane.xlu0 %3625  ;;  %5760 = vmatprep.subr.bf16.mxu1 %v12233_v63 }
 0x3c9   : > { %v4075_v54 = vpack.c.bf16 %v3626_v61, %v3624_v39  ;;  %v4076_v61 = vpack.c.bf16 %v3630_v1, %v3628_v24  ;;  %v1202_v39 = vld [vmem:[%s12203_s6 + $0x38] sm:$0xff]  ;;  %v9041_v24 = vld [vmem:[%s12202_s5 + $0x1d0] sm:$0xff]  }
 0x3ca   : > { %1745 = vperm.xlu0 %8969, %v1279_v11   ;;  %v10017_v11 = vpop.f32.mrb[127].mxu0  ;;  %v1298_v1 = vld [vmem:[%s12203_s6 + $0x338] sm:$0xff]  ;;  %8547 = vmatprep.mubr.bf16.mxu0 %v9041_v24 }
 0x3cb   : > { %5761 = vmatpush1.bf16.msra.mxu1 %v4075_v54  ;;  %12241 = vst [vmem:[#allocation30_spill] sm:$0xff] %v10017_v11  ;;  %v1283_v54 = vld [vmem:[%s12203_s6 + $0x2c0] sm:$0xff] }
 0x3cc   : > { %1830 = vperm.xlu1 %8970, %v1296_v16   ;;  %v3636_v17 = vpop.xlane.xlu1 %3635  ;;  %v3638_v34 = vpop.xlane.xlu0 %3637  ;;  %5762 = vmatprep.subr.bf16.mxu1 %v12233_v63 }
 0x3ce   : > { %1755 = vperm.xlu0 %8969, %v1281_v59   ;;  %v9042_v59 = vld [vmem:[%s12202_s5 + $0x1d8] sm:$0xff]  }
 0x3cf   : > { %5763 = vmatpush1.bf16.msra.mxu1 %v4076_v61  ;;  %v1285_v61 = vld [vmem:[%s12203_s6 + $0x2d0] sm:$0xff]  ;;  %8548 = vmatmul.mubr.bf16.gmra.mrb[140].mxu0 %v9042_v59 }
 0x3d0   : > { %1360 = vperm.xlu1 %8970, %v1202_v39   ;;  %v3640_v4 = vpop.xlane.xlu1 %3639  ;;  %v3634_v16 = vpop.xlane.xlu0 %3633  ;;  %5764 = vmatprep.subr.bf16.mxu1 %v12233_v63 }
 0x3d1   : > { %v4077_v30 = vpack.c.bf16 %v3634_v16, %v3632_v10  ;;  %v4078_v16 = vpack.c.bf16 %v3638_v34, %v3636_v17  ;;  %v1289_v17 = vld [vmem:[%s12203_s6 + $0x2f0] sm:$0xff] }
 0x3d2   : > { %1765 = vperm.xlu0 %8969, %v1283_v54   ;;  %v1204_v54 = vld [vmem:[%s12203_s6 + $0x48] sm:$0xff] }
 0x3d3   : > { %5765 = vmatpush1.bf16.msra.mxu1 %v4077_v30  ;;  %v1287_v30 = vld [vmem:[%s12203_s6 + $0x2e0] sm:$0xff] }
 0x3d4   : > { %1840 = vperm.xlu1 %8970, %v1298_v1   ;;  %v3644_v10 = vpop.xlane.xlu1 %3643  ;;  %v3646_v39 = vpop.xlane.xlu0 %3645  ;;  %5766 = vmatprep.subr.bf16.mxu1 %v12233_v63 }
 0x3d6   : > { %1775 = vperm.xlu0 %8969, %v1285_v61   ;;  %v4080_v61 = vpack.c.bf16 %v3646_v39, %v3644_v10  ;;  %v9044_v10 = vld [vmem:[%s12202_s5 + $0x1e8] sm:$0xff]   ;;  %v1197_v39 = vld [vmem:[%s12203_s6 + $0x10] sm:$0xff] }
 0x3d7   : > { %5767 = vmatpush1.bf16.msra.mxu1 %v4078_v16  ;;  %v1196_v16 = vld [vmem:[%s12203_s6 + $0x8] sm:$0xff] }
 0x3d8   : > { %1370 = vperm.xlu1 %8970, %v1204_v54   ;;  %v3648_v25 = vpop.xlane.xlu1 %3647  ;;  %v3642_v24 = vpop.xlane.xlu0 %3641  ;;  %5768 = vmatprep.subr.bf16.mxu1 %v12233_v63 }
 0x3d9   : > { %v4079_v1 = vpack.c.bf16 %v3642_v24, %v3640_v4 }
 0x3da   : > { %1785 = vperm.xlu0 %8969, %v1287_v30   ;;  %v9043_v30 = vld [vmem:[%s12202_s5 + $0x1e0] sm:$0xff]  }
 0x3db   : > { %5769 = vmatpush1.bf16.msra.mxu1 %v4079_v1  ;;  %8551 = vmatprep.mubr.bf16.mxu0 %v9043_v30 }
 0x3dc   : > { %v3652_v34 = vpop.xlane.xlu1 %3651  ;;  %v3654_v59 = vpop.xlane.xlu0 %3653  ;;  %5770 = vmatprep.subr.bf16.mxu1 %v12233_v63  ;;  %8552 = vmatmul.mubr.bf16.gmra.mrb[144].mxu0 %v9044_v10 }
 0x3de   : > { %1795 = vperm.xlu0 %8969, %v1289_v17  }
 0x3df   : > { %5771 = vmatpush1.bf16.msra.mxu1 %v4080_v61 }
 0x3e0   : > { %v3656_v54 = vpop.xlane.xlu1 %3655  ;;  %v3650_v11 = vpop.xlane.xlu0 %3649  ;;  %5772 = vmatprep.subr.bf16.mxu1 %v12233_v63 }
 0x3e1   : > { %v4081_v4 = vpack.c.bf16 %v3650_v11, %v3648_v25  ;;  %v4082_v25 = vpack.c.bf16 %v3654_v59, %v3652_v34  ;;  %v1293_v11 = vld [vmem:[%s12203_s6 + $0x310] sm:$0xff]  ;;  %v1295_v59 = vld [vmem:[%s12203_s6 + $0x320] sm:$0xff] }
 0x3e2   : > { %1330 = vperm.xlu0 %8969, %v1196_v16  }
 0x3e3   : > { %5773 = vmatpush1.bf16.msra.mxu1 %v4081_v4  ;;  %v1199_v4 = vld [vmem:[%s12203_s6 + $0x20] sm:$0xff] }
 0x3e4   : > { %v3660_v24 = vpop.xlane.xlu1 %3659  ;;  %v3662_v1 = vpop.xlane.xlu0 %3661  ;;  %5774 = vmatprep.subr.bf16.mxu1 %v12233_v63 }
 0x3e5   : > { %v4084_v34 = vpack.c.bf16 %v3662_v1, %v3660_v24  ;;  %v9046_v24 = vld [vmem:[%s12202_s5 + $0x1f8] sm:$0xff]  }
 0x3e6   : > { %1335 = vperm.xlu0 %8969, %v1197_v39  }
 0x3e7   : > { %5775 = vmatpush1.bf16.msra.mxu1 %v4082_v25  ;;  %v9045_v25 = vld [vmem:[%s12202_s5 + $0x1f0] sm:$0xff]  }
 0x3e8   : > { %v10064_v17 = vpop.xlane.xlu1 %3663  ;;  %v3658_v61 = vpop.xlane.xlu0 %3657  ;;  %5776 = vmatprep.subr.bf16.mxu1 %v12233_v63  ;;  %8555 = vmatprep.mubr.bf16.mxu0 %v9045_v25 }
 0x3e9   : > { %v4083_v16 = vpack.c.bf16 %v3658_v61, %v3656_v54  ;;  %8556 = vmatmul.mubr.bf16.gmra.mrb[148].mxu0 %v9046_v24  ;;  %v1203_v24 = vld [vmem:[%s12203_s6 + $0x40] sm:$0xff] }
 0x3ea   : > { %1815 = vperm.xlu0 %8969, %v1293_v11   ;;  %v1201_v11 = vld [vmem:[%s12203_s6 + $0x30] sm:$0xff] }
 0x3eb   : > { %5777 = vmatpush1.bf16.msra.mxu1 %v4083_v16 }
 0x3ec   : > { %v10070_v30 = vpop.xlane.xlu1 %3667  ;;  %5778 = vmatprep.subr.bf16.mxu1 %v12233_v63 }
 0x3ee   : > { %1345 = vperm.xlu0 %8969, %v1199_v4   ;;  %v1297_v4 = vld [vmem:[%s12203_s6 + $0x330] sm:$0xff] }
 0x3ef   : > { %5779 = vmatpush1.bf16.msra.mxu1 %v4084_v34 }
 0x3f0   : > { %v1651_v10 = vpop.permute.xlu0 %1650  ;;  %5780 = vmatprep.subr.bf16.mxu1 %v12233_v63  ;;  %v1646_v54 = vpop.permute.xlu1 %1645 }
 0x3f1   : > { %v2641_v39 = vadd.f32 %v9806_v29, %v1651_v10 }
 0x3f2   : > { %1825 = vperm.xlu0 %8969, %v1295_v59  }
 0x3f3   : > { %v2957_v1 = vmax.f32 %v2641_v39, 0.0 }
 0x3f4   : > { %v1666_v61 = vpop.permute.xlu0 %1665  ;;  %v1656_v16 = vpop.permute.xlu1 %1655 }
 0x3f5   : > { %v2654_v29 = vadd.f32 %v9816_v12, %v1666_v61  ;;  %v3093_v34 = vsel %vm3025_vm4, %v2957_v1, 0.0 }
 0x3f6   : > { %1355 = vperm.xlu0 %8969, %v1201_v11   ;;  %v3349_v39 = vmax.f32 %v3093_v34, 0.0 }
 0x3f7   : > { %v2960_v47 = vmax.f32 %v2654_v29, 0.0 }
 0x3f8   : > { %v1676_v59 = vpop.permute.xlu0 %1675  ;;  %v1661_v11 = vpop.permute.xlu1 %1660 }
 0x3f9   : > { %v2662_v10 = vadd.f32 %v9814_v23, %v1676_v59  ;;  %v1299_v23 = vld [vmem:[%s12203_s6 + $0x340] sm:$0xff]  ;;  %v3096_v29 = vsel %vm3025_vm4, %v2960_v47, 0.0  ;;  %v10106_v59 = vpop.f32.mrb[128].mxu0 }
 0x3fa   : > { %1835 = vperm.xlu0 %8969, %v1297_v4   ;;  %12242 = vst [vmem:[#allocation31_spill] sm:$0xff] %v10106_v59  ;;  %v2649_v59 = vadd.f32 %v9804_v9, %v1661_v11 }
 0x3fb   : > { %v2962_v25 = vmax.f32 %v2662_v10, 0.0  ;;  %v3352_v10 = vmax.f32 %v3096_v29, 0.0 }
 0x3fc   : > { %3673 = vmax.xlane.f32.xlu1 %v3349_v39  ;;  %v1686_v12 = vpop.permute.xlu0 %1685  ;;  %v10108_v39 = vpop.f32.mrb[129].mxu0 }
 0x3fd   : > { %v3098_v61 = vsel %vm3025_vm4, %v2962_v25, 0.0  ;;  %v2670_v1 = vadd.f32 %v9836_v28, %v1686_v12  ;;  %12243 = vst [vmem:[#allocation32_spill] sm:$0xff] %v10108_v39  ;;  %v1671_v25 = vpop.permute.xlu1 %1670  ;;  %v2638_v39 = vadd.f32 %v9799_v13, %v1646_v54 }
 0x3fe   : > { %1365 = vperm.xlu0 %8969, %v1203_v24   ;;  %v3354_v55 = vmax.f32 %v3098_v61, 0.0  ;;  %v2657_v13 = vadd.f32 %v9832_v3, %v1671_v25 }
 0x3ff   : > { %v2964_v24 = vmax.f32 %v2670_v1, 0.0 }
 0x400   : > { %3683 = vmax.xlane.f32.xlu1 %v3354_v55  ;;  %v1696_v4 = vpop.permute.xlu0 %1695 }
 0x401   : > { %v2678_v34 = vadd.f32 %v9834_v2, %v1696_v4  ;;  %v3100_v55 = vsel %vm3025_vm4, %v2964_v24, 0.0  ;;  %v1681_v47 = vpop.permute.xlu1 %1680  ;;  %v2959_v24 = vmax.f32 %v2649_v59, 0.0 }
 0x402   : > { %1845 = vperm.xlu0 %8969, %v1299_v23   ;;  %v3356_v2 = vmax.f32 %v3100_v55, 0.0  ;;  %v2646_v23 = vadd.f32 %v9794_v41, %v1656_v16 }
 0x403   : > { %v2966_v28 = vmax.f32 %v2678_v34, 0.0  ;;  %v3095_v16 = vsel %vm3025_vm4, %v2959_v24, 0.0 }
 0x404   : > { %3679 = vmax.xlane.f32.xlu1 %v3352_v10  ;;  %v2958_v1 = vmax.f32 %v2646_v23, 0.0  ;;  %v2956_v10 = vmax.f32 %v2638_v39, 0.0  ;;  %v3351_v11 = vmax.f32 %v3095_v16, 0.0  ;;  %v2961_v39 = vmax.f32 %v2657_v13, 0.0  ;;  %v1706_v25 = vpop.permute.xlu0 %1705 }
 0x405   : > { %v3102_v12 = vsel %vm3025_vm4, %v2966_v28, 0.0  ;;  %v1691_v4 = vpop.permute.xlu1 %1690 }
 0x406   : > { %v3358_v61 = vmax.f32 %v3102_v12, 0.0  ;;  %v3094_v28 = vsel %vm3025_vm4, %v2958_v1, 0.0  ;;  %v3092_v55 = vsel %vm3025_vm4, %v2956_v10, 0.0  ;;  %v2673_v23 = vadd.f32 %v9852_v26, %v1691_v4 }
 0x407   : > { %v3350_v12 = vmax.f32 %v3094_v28, 0.0  ;;  %v3348_v41 = vmax.f32 %v3092_v55, 0.0  ;;  %v3097_v3 = vsel %vm3025_vm4, %v2961_v39, 0.0 }
 0x408   : > { %3691 = vmax.xlane.f32.xlu1 %v3358_v61  ;;  %v2665_v61 = vadd.f32 %v9827_v7, %v1681_v47  ;;  %v3353_v28 = vmax.f32 %v3097_v3, 0.0 }
 0x409   : > { %v1701_v29 = vpop.permute.xlu1 %1700 }
 0x40a   : > { %v2963_v54 = vmax.f32 %v2665_v61, 0.0  ;;  %v2681_v59 = vadd.f32 %v9847_v38, %v1701_v29 }
 0x40c   : > { %3687 = vmax.xlane.f32.xlu1 %v3356_v2  ;;  %v3099_v7 = vsel %vm3025_vm4, %v2963_v54, 0.0  ;;  %v2967_v1 = vmax.f32 %v2681_v59, 0.0 }
 0x40d   : > { %v1711_v34 = vpop.permute.xlu1 %1710  ;;  %v3355_v47 = vmax.f32 %v3099_v7, 0.0 }
 0x40e   : > { %v3103_v38 = vsel %vm3025_vm4, %v2967_v1, 0.0  ;;  %v2689_v26 = vadd.f32 %v9866_v32, %v1711_v34  ;;  %v3808_v32 = vld [vmem:[%s12204_s7 + $0x48] sm:$0xff] }
 0x40f   : > { %v3359_v55 = vmax.f32 %v3103_v38, 0.0  ;;  %v3816_v38 = vld [vmem:[%s12204_s7 + $0x88] sm:$0xff] }
 0x411   : > { %v1721_v2 = vpop.permute.xlu1 %1720 }
 0x412   : > { %v2697_v24 = vadd.f32 %v9864_v31, %v1721_v2 }
 0x414   : > { %v2971_v4 = vmax.f32 %v2697_v24, 0.0 }
 0x415   : > { %v1731_v9 = vpop.permute.xlu1 %1730 }
 0x416   : > { %v3107_v2 = vsel %vm3025_vm4, %v2971_v4, 0.0  ;;  %v2705_v7 = vadd.f32 %v9880_v46, %v1731_v9 }
 0x417   : > { %v3363_v59 = vmax.f32 %v3107_v2, 0.0 }
 0x418   : > { %v2973_v46 = vmax.f32 %v2705_v7, 0.0 }
 0x419   : > { %v1741_v10 = vpop.permute.xlu1 %1740 }
 0x41a   : > { %v2713_v31 = vadd.f32 %v9878_v5, %v1741_v10  ;;  %v2686_v5 = vadd.f32 %v9856_v60, %v1706_v25  ;;  %v12244_v60 = vcombine.low %v9979_v0, %v9984_v40 }
 0x41d   : > { %v1751_v61 = vpop.permute.xlu1 %1750 }
 0x421   : > { %3675 = vmax.xlane.f32.xlu0 %v3350_v12  ;;  %v2965_v12 = vmax.f32 %v2673_v23, 0.0  ;;  %v1761_v39 = vpop.permute.xlu1 %1760 }
 0x422   : > { %v2729_v9 = vadd.f32 %v9894_v20, %v1761_v39  ;;  %v2721_v20 = vadd.f32 %v9896_v22, %v1751_v61 }
 0x424   : > { %v2977_v39 = vmax.f32 %v2721_v20, 0.0 }
 0x425   : > { %3671 = vmax.xlane.f32.xlu0 %v3348_v41  ;;  %v3101_v41 = vsel %vm3025_vm4, %v2965_v12, 0.0  ;;  %v1771_v12 = vpop.permute.xlu1 %1770 }
 0x426   : > { %v3357_v16 = vmax.f32 %v3101_v41, 0.0  ;;  %v2979_v41 = vmax.f32 %v2729_v9, 0.0 }
 0x429   : > { %3677 = vmax.xlane.f32.xlu0 %v3351_v11  ;;  %v2969_v11 = vmax.f32 %v2689_v26, 0.0 }
 0x42b   : > { %v3105_v23 = vsel %vm3025_vm4, %v2969_v11, 0.0  ;;  %v1781_v11 = vpop.permute.xlu1 %1780 }
 0x42d   : > { %3685 = vmax.xlane.f32.xlu0 %v3355_v47  ;;  %v2975_v47 = vmax.f32 %v2713_v31, 0.0 }
 0x42f   : > { %v3111_v24 = vsel %vm3025_vm4, %v2975_v47, 0.0 }
 0x431   : > { %3681 = vmax.xlane.f32.xlu0 %v3353_v28  ;;  %v3670_v29 = vpop.xlane.xlu0 %3669  ;;  %v2968_v28 = vmax.f32 %v2686_v5, 0.0  ;;  %v3824_v5 = vld [vmem:[%s12204_s7 + $0xc8] sm:$0xff] }
 0x432   : > { %v4086_v34 = vpack.c.bf16 %v3670_v29, %v10070_v30  ;;  %v3361_v30 = vmax.f32 %v3105_v23, 0.0 }
 0x435   : > { %3693 = vmax.xlane.f32.xlu0 %v3359_v55  ;;  %v3666_v13 = vpop.xlane.xlu0 %3665  ;;  %v3367_v55 = vmax.f32 %v3111_v24, 0.0 }
 0x436   : > { %v4085_v54 = vpack.c.bf16 %v3666_v13, %v10064_v17  ;;  %v3812_v17 = vld [vmem:[%s12204_s7 + $0x68] sm:$0xff] }
 0x437   : > { %v7732_v1 = vcombine.high %v3808_v32, %v3812_v17  ;;  %v7731_v40 = vcombine.low %v3808_v32, %v3812_v17  ;;  %v2745_v32 = vadd.f32 %v9912_v14, %v1781_v11 }
 0x438   : > { %5781 = vmatpush1.bf16.msra.mxu1 %v4085_v54  ;;  %v3109_v54 = vsel %vm3025_vm4, %v2973_v46, 0.0 }
 0x439   : > { %3689 = vmax.xlane.f32.xlu0 %v3357_v16  ;;  %5782 = vmatprep.subr.bf16.mxu1 %v12233_v63  ;;  %v3104_v16 = vsel %vm3025_vm4, %v2968_v28, 0.0  ;;  %v3365_v22 = vmax.f32 %v3109_v54, 0.0  ;;  %v2983_v28 = vmax.f32 %v2745_v32, 0.0 }
 0x43a   : > { %v3360_v61 = vmax.f32 %v3104_v16, 0.0 }
 0x43c   : > { %5783 = vmatpush1.bf16.msra.mxu1 %v4086_v34  ;;  %v3115_v34 = vsel %vm3025_vm4, %v2979_v41, 0.0 }
 0x43d   : > { %3701 = vmax.xlane.f32.xlu0 %v3363_v59  ;;  %v1716_v3 = vpop.permute.xlu0 %1715  ;;  %6041 = vmatprep.subr.bf16.mxu1 %v12233_v63  ;;  %v3371_v47 = vmax.f32 %v3115_v34, 0.0 }
 0x43e   : > { %v2694_v10 = vadd.f32 %v9854_v36, %v1716_v3  ;;  %v3820_v36 = vld [vmem:[%s12204_s7 + $0xa8] sm:$0xff] }
 0x43f   : > { %5785 = vmatmul.mubr.bf16.vlgmr.msra.gmra.mrb[0].mxu1 %v12244_v60  ;;  %v7740_v4 = vcombine.high %v3816_v38, %v3820_v36  ;;  %v7739_v7 = vcombine.low %v3816_v38, %v3820_v36 }
 0x440   : > { %v2970_v25 = vmax.f32 %v2694_v10, 0.0  ;;  %5792 = vmatprep.mubr.bf16.mxu1 %v7732_v1  ;;  %v3113_v1 = vsel %vm3025_vm4, %v2977_v39, 0.0  ;;  %v2737_v10 = vadd.f32 %v9917_v19, %v1771_v12  ;;  %v3119_v19 = vsel %vm3025_vm4, %v2983_v28, 0.0  ;;  %v3832_v12 = vld [vmem:[%s12204_s7 + $0x108] sm:$0xff] }
 0x441   : > { %3697 = vmax.xlane.f32.xlu0 %v3361_v30  ;;  %v1726_v29 = vpop.permute.xlu0 %1725 }
 0x442   : > { %v3106_v0 = vsel %vm3025_vm4, %v2970_v25, 0.0  ;;  %v2702_v13 = vadd.f32 %v9876_v35, %v1726_v29  ;;  %v3369_v25 = vmax.f32 %v3113_v1, 0.0  ;;  %v2981_v38 = vmax.f32 %v2737_v10, 0.0 }
 0x443   : > { %v3362_v26 = vmax.f32 %v3106_v0, 0.0 }
 0x444   : > { %v2972_v17 = vmax.f32 %v2702_v13, 0.0 }
 0x445   : > { %3709 = vmax.xlane.f32.xlu0 %v3367_v55  ;;  %3699 = vmax.xlane.f32.xlu1 %v3362_v26  ;;  %v1736_v31 = vpop.permute.xlu0 %1735 }
 0x446   : > { %v2710_v2 = vadd.f32 %v9874_v62, %v1736_v31  ;;  %v3828_v62 = vld [vmem:[%s12204_s7 + $0xe8] sm:$0xff]  ;;  %v3108_v60 = vsel %vm3025_vm4, %v2972_v17, 0.0 }
 0x447   : > { %5793 = vmatmul.mubr.bf16.gmra.mrb[4].mxu1 %v7731_v40  ;;  %v7748_v3 = vcombine.high %v3824_v5, %v3828_v62  ;;  %v3364_v24 = vmax.f32 %v3108_v60, 0.0  ;;  %v3375_v40 = vmax.f32 %v3119_v19, 0.0  ;;  %v7747_v55 = vcombine.low %v3824_v5, %v3828_v62  ;;  %v3864_v19 = vld [vmem:[%s12204_s7 + $0x208] sm:$0xff] }
 0x448   : > { %v2974_v35 = vmax.f32 %v2710_v2, 0.0  ;;  %5800 = vmatprep.mubr.bf16.mxu1 %v7740_v4  ;;  %v3117_v4 = vsel %vm3025_vm4, %v2981_v38, 0.0 }
 0x449   : > { %3705 = vmax.xlane.f32.xlu0 %v3365_v22  ;;  %3695 = vmax.xlane.f32.xlu1 %v3360_v61  ;;  %v1746_v59 = vpop.permute.xlu0 %1745  ;;  %v3373_v11 = vmax.f32 %v3117_v4, 0.0  ;;  %v3840_v22 = vld [vmem:[%s12204_s7 + $0x148] sm:$0xff] }
 0x44a   : > { %v3110_v14 = vsel %vm3025_vm4, %v2974_v35, 0.0  ;;  %v2718_v30 = vadd.f32 %v9891_v37, %v1746_v59  ;;  %v3844_v61 = vld [vmem:[%s12204_s7 + $0x168] sm:$0xff] }
 0x44b   : > { %v3366_v23 = vmax.f32 %v3110_v14, 0.0  ;;  %v7764_v5 = vcombine.high %v3840_v22, %v3844_v61  ;;  %v7763_v10 = vcombine.low %v3840_v22, %v3844_v61 }
 0x44c   : > { %v2976_v36 = vmax.f32 %v2718_v30, 0.0  ;;  %v10232_v30 = vpop.permute.xlu1 %1790 }
 0x44d   : > { %3717 = vmax.xlane.f32.xlu0 %v3371_v47  ;;  %3707 = vmax.xlane.f32.xlu1 %v3366_v23  ;;  %v1756_v46 = vpop.permute.xlu0 %1755  ;;  %v3848_v23 = vld [vmem:[%s12204_s7 + $0x188] sm:$0xff] }
 0x44e   : > { %v2726_v9 = vadd.f32 %v9889_v58, %v1756_v46  ;;  %v3836_v58 = vld [vmem:[%s12204_s7 + $0x128] sm:$0xff]  ;;  %v3112_v41 = vsel %vm3025_vm4, %v2976_v36, 0.0 }
 0x44f   : > { %5801 = vmatmul.mubr.bf16.gmra.mrb[8].mxu1 %v7739_v7  ;;  %v7756_v13 = vcombine.high %v3832_v12, %v3836_v58  ;;  %v3368_v31 = vmax.f32 %v3112_v41, 0.0  ;;  %v7755_v17 = vcombine.low %v3832_v12, %v3836_v58  ;;  %v3856_v46 = vld [vmem:[%s12204_s7 + $0x1c8] sm:$0xff] }
 0x450   : > { %v2978_v29 = vmax.f32 %v2726_v9, 0.0  ;;  %5808 = vmatprep.mubr.bf16.mxu1 %v7748_v3  ;;  %v3860_v9 = vld [vmem:[%s12204_s7 + $0x1e8] sm:$0xff]  ;;  %v10243_v36 = vpop.permute.xlu1 %1800 }
 0x451   : > { %3713 = vmax.xlane.f32.xlu0 %v3369_v25  ;;  %3703 = vmax.xlane.f32.xlu1 %v3364_v24  ;;  %v1766_v37 = vpop.permute.xlu0 %1765  ;;  %v1205_v24 = vld [vmem:[%s12203_s6 + $0x50] sm:$0xff]  ;;  %v7780_v38 = vcombine.high %v3856_v46, %v3860_v9  ;;  %v7779_v58 = vcombine.low %v3856_v46, %v3860_v9  ;;  %v1306_v9 = vld [vmem:[%s12203_s6 + $0x378] sm:$0xff] }
 0x452   : > { %v3114_v0 = vsel %vm3025_vm4, %v2978_v29, 0.0  ;;  %v2734_v26 = vadd.f32 %v9908_v18, %v1766_v37  ;;  %v1301_v29 = vld [vmem:[%s12203_s6 + $0x350] sm:$0xff]  ;;  %v3868_v37 = vld [vmem:[%s12204_s7 + $0x228] sm:$0xff] }
 0x453   : > { %v3370_v20 = vmax.f32 %v3114_v0, 0.0  ;;  %v1207_v0 = vld [vmem:[%s12203_s6 + $0x60] sm:$0xff] }
 0x454   : > { %v2980_v2 = vmax.f32 %v2734_v26, 0.0  ;;  %v10254_v12 = vpop.permute.xlu1 %1325  ;;  %v1303_v26 = vld [vmem:[%s12203_s6 + $0x360] sm:$0xff] }
 0x455   : > { %3725 = vmax.xlane.f32.xlu0 %v3375_v40  ;;  %3715 = vmax.xlane.f32.xlu1 %v3370_v20  ;;  %v1776_v54 = vpop.permute.xlu0 %1775  ;;  %v7788_v40 = vcombine.high %v3864_v19, %v3868_v37  ;;  %v1300_v20 = vld [vmem:[%s12203_s6 + $0x348] sm:$0xff] }
 0x456   : > { %v2742_v16 = vadd.f32 %v9906_v21, %v1776_v54  ;;  %v3116_v34 = vsel %vm3025_vm4, %v2980_v2, 0.0  ;;  %v3876_v54 = vld [vmem:[%s12204_s7 + $0x268] sm:$0xff]  ;;  %v1206_v2 = vld [vmem:[%s12203_s6 + $0x58] sm:$0xff] }
 0x457   : > { %5809 = vmatmul.mubr.bf16.gmra.mrb[12].mxu1 %v7747_v55  ;;  %v3372_v14 = vmax.f32 %v3116_v34, 0.0  ;;  %v10262_v55 = vpop.f32.mrb[130].mxu0  ;;  %v3884_v34 = vld [vmem:[%s12204_s7 + $0x2a8] sm:$0xff] }
 0x458   : > { %v2982_v39 = vmax.f32 %v2742_v16, 0.0  ;;  %5816 = vmatprep.mubr.bf16.mxu1 %v7756_v13  ;;  %v10267_v4 = vpop.f32.mrb[131].mxu0  ;;  %v10269_v41 = vpop.permute.xlu1 %1805  ;;  %v3872_v13 = vld [vmem:[%s12204_s7 + $0x248] sm:$0xff] }
 0x459   : > { %3721 = vmax.xlane.f32.xlu0 %v3373_v11  ;;  %3711 = vmax.xlane.f32.xlu1 %v3368_v31  ;;  %v1786_v18 = vpop.permute.xlu0 %1785  ;;  %v7796_v22 = vcombine.high %v3872_v13, %v3876_v54 }
 0x45a   : > { %v3118_v21 = vsel %vm3025_vm4, %v2982_v39, 0.0  ;;  %v2750_v35 = vadd.f32 %v9930_v15, %v1786_v18  ;;  %v3852_v15 = vld [vmem:[%s12204_s7 + $0x1a8] sm:$0xff]  ;;  %v7787_v39 = vcombine.low %v3864_v19, %v3868_v37  ;;  %v1209_v18 = vld [vmem:[%s12203_s6 + $0x70] sm:$0xff] }
 0x45b   : > { %v3374_v32 = vmax.f32 %v3118_v21, 0.0  ;;  %v7772_v28 = vcombine.high %v3848_v23, %v3852_v15  ;;  %v7771_v25 = vcombine.low %v3848_v23, %v3852_v15  ;;  %v1302_v21 = vld [vmem:[%s12203_s6 + $0x358] sm:$0xff]  ;;  %v3888_v23 = vld [vmem:[%s12204_s7 + $0x2c8] sm:$0xff] }
 0x45c   : > { %v2984_v7 = vmax.f32 %v2750_v35, 0.0  ;;  %v10289_v61 = vpop.permute.xlu1 %1810  ;;  %v3880_v35 = vld [vmem:[%s12204_s7 + $0x288] sm:$0xff] }
 0x45d   : > { %3723 = vmax.xlane.f32.xlu1 %v3374_v32  ;;  %v1796_v62 = vpop.permute.xlu0 %1795  ;;  %v3892_v15 = vld [vmem:[%s12204_s7 + $0x2e8] sm:$0xff] }
 0x45e   : > { %v2758_v59 = vadd.f32 %v9928_v33, %v1796_v62  ;;  %v3120_v33 = vsel %vm3025_vm4, %v2984_v7, 0.0  ;;  %v7795_v62 = vcombine.low %v3872_v13, %v3876_v54  ;;  %v7812_v46 = vcombine.high %v3888_v23, %v3892_v15  ;;  %v1212_v19 = vld [vmem:[%s12203_s6 + $0x88] sm:$0xff] }
 0x45f   : > { %5817 = vmatmul.mubr.bf16.gmra.mrb[16].mxu1 %v7755_v17  ;;  %v3376_v60 = vmax.f32 %v3120_v33, 0.0  ;;  %v1305_v17 = vld [vmem:[%s12203_s6 + $0x370] sm:$0xff]  ;;  %v1210_v33 = vld [vmem:[%s12203_s6 + $0x78] sm:$0xff]  ;;  %v7811_v37 = vcombine.low %v3888_v23, %v3892_v15  ;;  %v2753_v54 = vadd.f32 %v9934_v8, %v10232_v30  ;;  %v3912_v23 = vld [vmem:[%s12204_s7 + $0x388] sm:$0xff] }
 0x460   : > { %v2986_v47 = vmax.f32 %v2758_v59, 0.0  ;;  %5824 = vmatprep.mubr.bf16.mxu1 %v7764_v5  ;;  %v1208_v5 = vld [vmem:[%s12203_s6 + $0x68] sm:$0xff]  ;;  %v7804_v59 = vcombine.high %v3880_v35, %v3884_v34 }
 0x461   : > { %3719 = vmax.xlane.f32.xlu1 %v3372_v14  ;;  %v10279_v11 = vpop.permute.xlu0 %1330  ;;  %v10308_v14 = vpop.permute.xlu1 %1340  ;;  %v3916_v15 = vld [vmem:[%s12204_s7 + $0x3a8] sm:$0xff] }
 0x462   : > { %v3122_v1 = vsel %vm3025_vm4, %v2986_v47, 0.0  ;;  %v1304_v47 = vld [vmem:[%s12203_s6 + $0x368] sm:$0xff] }
 0x463   : > { %v3378_v3 = vmax.f32 %v3122_v1, 0.0 }
 0x465   : > { %3731 = vmax.xlane.f32.xlu1 %v3378_v3  ;;  %v10294_v32 = vpop.permute.xlu0 %1335 }
 0x467   : > { %5825 = vmatmul.mubr.bf16.gmra.mrb[20].mxu1 %v7763_v10  ;;  %v10325_v10 = vpop.permute.xlu1 %1820 }
 0x468   : > { %5832 = vmatprep.mubr.bf16.mxu1 %v7772_v28  ;;  %v7803_v28 = vcombine.low %v3880_v35, %v3884_v34 }
 0x469   : > { %3727 = vmax.xlane.f32.xlu1 %v3376_v60  ;;  %v10310_v7 = vpop.permute.xlu0 %1815 }
 0x46d   : > { %v10330_v60 = vpop.permute.xlu0 %1345 }
 0x46f   : > { %1375 = vperm.xlu0 %8969, %v1205_v24   ;;  %5833 = vmatmul.mubr.bf16.gmra.mrb[24].mxu1 %v7771_v25  ;;  %v10335_v25 = vpop.permute.xlu1 %1350  ;;  %v3896_v24 = vld [vmem:[%s12204_s7 + $0x308] sm:$0xff] }
 0x470   : > { %5840 = vmatprep.mubr.bf16.mxu1 %v7780_v38  ;;  %v3900_v38 = vld [vmem:[%s12204_s7 + $0x328] sm:$0xff] }
 0x473   : > { %1855 = vperm.xlu0 %8969, %v1301_v29   ;;  %v10343_v29 = vpop.permute.xlu0 %1825 }
 0x474   : > { %v10277_v16 = vpop.f32.mrb[132].mxu0 }
 0x475   : > { %12245 = vst [vmem:[#allocation33_spill] sm:$0xff] %v10277_v16  ;;  %v10281_v31 = vpop.f32.mrb[133].mxu0 }
 0x476   : > { %12246 = vst [vmem:[#allocation34_spill] sm:$0xff] %v10281_v31  ;;  %v10321_v1 = vpop.f32.mrb[134].mxu0 }
 0x477   : > { %1385 = vperm.xlu0 %8969, %v1207_v0   ;;  %5841 = vmatmul.mubr.bf16.gmra.mrb[28].mxu1 %v7779_v58  ;;  %v10323_v3 = vpop.f32.mrb[135].mxu0  ;;  %v7820_v58 = vcombine.high %v3896_v24, %v3900_v38  ;;  %v2761_v0 = vadd.f32 %v9932_v6, %v10243_v36  ;;  %v3904_v6 = vld [vmem:[%s12204_s7 + $0x348] sm:$0xff] }
 0x478   : > { %5848 = vmatprep.mubr.bf16.mxu1 %v7788_v40  ;;  %v10350_v40 = vpop.permute.xlu1 %1830  ;;  %v3908_v36 = vld [vmem:[%s12204_s7 + $0x368] sm:$0xff] }
 0x479   : > { %v7828_v30 = vcombine.high %v3904_v6, %v3908_v36 }
 0x47a   : > { %1850 = vperm.xlu1 %8970, %v1300_v20   ;;  %v1308_v20 = vld [vmem:[%s12203_s6 + $0x388] sm:$0xff] }
 0x47b   : > { %1865 = vperm.xlu0 %8969, %v1303_v26   ;;  %v10355_v26 = vpop.permute.xlu0 %1355 }
 0x47c   : > { %v10376_v35 = vpop.permute.xlu1 %1360 }
 0x47e   : > { %1380 = vperm.xlu1 %8970, %v1206_v2   ;;  %v2987_v2 = vmax.f32 %v2761_v0, 0.0  ;;  %v3920_v0 = vld [vmem:[%s12204_s7 + $0x3c8] sm:$0xff] }
 0x47f   : > { %1395 = vperm.xlu0 %8969, %v1209_v18   ;;  %5849 = vmatmul.mubr.bf16.gmra.mrb[32].mxu1 %v7787_v39 }
 0x480   : > { %5856 = vmatprep.mubr.bf16.mxu1 %v7796_v22  ;;  %v1214_v22 = vld [vmem:[%s12203_s6 + $0x98] sm:$0xff]  ;;  %v3123_v34 = vsel %vm3025_vm4, %v2987_v2, 0.0 }
 0x482   : > { %1860 = vperm.xlu1 %8970, %v1302_v21   ;;  %v7819_v21 = vcombine.low %v3896_v24, %v3900_v38  ;;  %v7836_v38 = vcombine.high %v3912_v23, %v3916_v15 }
 0x483   : > { %1875 = vperm.xlu0 %8969, %v1305_v17   ;;  %v2985_v17 = vmax.f32 %v2753_v54, 0.0 }
 0x486   : > { %1390 = vperm.xlu1 %8970, %v1208_v5   ;;  %v10380_v5 = vpop.permute.xlu0 %1835 }
 0x487   : > { %5857 = vmatmul.mubr.bf16.gmra.mrb[36].mxu1 %v7795_v62  ;;  %v1310_v62 = vld [vmem:[%s12203_s6 + $0x398] sm:$0xff] }
 0x488   : > { %5864 = vmatprep.mubr.bf16.mxu1 %v7804_v59  ;;  %v3379_v59 = vmax.f32 %v3123_v34, 0.0 }
 0x48a   : > { %1870 = vperm.xlu1 %8970, %v1304_v47   ;;  %v3121_v47 = vsel %vm3025_vm4, %v2985_v17, 0.0 }
 0x48b   : > { %v3377_v24 = vmax.f32 %v3121_v47, 0.0  ;;  %v3932_v47 = vld [vmem:[%s12204_s7 + $0x428] sm:$0xff] }
 0x48e   : > { %1400 = vperm.xlu1 %8970, %v1210_v33   ;;  %v10393_v33 = vpop.permute.xlu1 %1840 }
 0x48f   : > { %5865 = vmatmul.mubr.bf16.gmra.mrb[40].mxu1 %v7803_v28  ;;  %v1216_v28 = vld [vmem:[%s12203_s6 + $0xa8] sm:$0xff] }
 0x490   : > { %5872 = vmatprep.mubr.bf16.mxu1 %v7812_v46  ;;  %v7827_v46 = vcombine.low %v3904_v6, %v3908_v36  ;;  %v1218_v36 = vld [vmem:[%s12203_s6 + $0xb8] sm:$0xff] }
 0x492   : > { %1880 = vperm.xlu1 %8970, %v1306_v9   ;;  %v10357_v13 = vpop.f32.mrb[136].mxu0  ;;  %v10398_v9 = vpop.permute.xlu0 %1365 }
 0x493   : > { %v10367_v39 = vpop.f32.mrb[137].mxu0 }
 0x494   : > { %v10369_v18 = vpop.f32.mrb[138].mxu0 }
 0x495   : > { %v10374_v8 = vpop.f32.mrb[139].mxu0 }
 0x496   : > { %1410 = vperm.xlu1 %8970, %v1212_v19   ;;  %v1312_v19 = vld [vmem:[%s12203_s6 + $0x3a8] sm:$0xff]  ;;  %v10415_v2 = vpop.permute.xlu0 %1845 }
 0x497   : > { %5873 = vmatmul.mubr.bf16.gmra.mrb[44].mxu1 %v7811_v37 }
 0x498   : > { %5880 = vmatprep.mubr.bf16.mxu1 %v7820_v58  ;;  %v10405_v58 = vpop.permute.xlu1 %1370 }
 0x49a   : > { %1890 = vperm.xlu1 %8970, %v1308_v20   ;;  %v3924_v20 = vld [vmem:[%s12204_s7 + $0x3e8] sm:$0xff] }
 0x49c   : > { %v3674_v17 = vpop.xlane.xlu1 %3673 }
 0x49e   : > { %1420 = vperm.xlu1 %8970, %v1214_v22   ;;  %v7835_v22 = vcombine.low %v3912_v23, %v3916_v15 }
 0x49f   : > { %5881 = vmatmul.mubr.bf16.gmra.mrb[48].mxu1 %v7819_v21 }
 0x4a0   : > { %5888 = vmatprep.mubr.bf16.mxu1 %v7828_v30  ;;  %v7844_v30 = vcombine.high %v3920_v0, %v3924_v20  ;;  %v3684_v15 = vpop.xlane.xlu1 %3683 }
 0x4a2   : > { %3733 = vmax.xlane.f32.xlu0 %v3379_v59  ;;  %1900 = vperm.xlu1 %8970, %v1310_v62   ;;  %v10403_v37 = vpop.f32.mrb[140].mxu0  ;;  %v1314_v62 = vld [vmem:[%s12203_s6 + $0x3b8] sm:$0xff]  ;;  %v3928_v59 = vld [vmem:[%s12204_s7 + $0x408] sm:$0xff] }
 0x4a3   : > { %12247 = vst [vmem:[#allocation35_spill] sm:$0xff] %v10403_v37  ;;  %v10413_v54 = vpop.f32.mrb[141].mxu0 }
 0x4a4   : > { %v10417_v6 = vpop.f32.mrb[142].mxu0 }
 0x4a5   : > { %v10422_v21 = vpop.f32.mrb[143].mxu0 }
 0x4a6   : > { %3729 = vmax.xlane.f32.xlu0 %v3377_v24  ;;  %1430 = vperm.xlu1 %8970, %v1216_v28   ;;  %v7843_v24 = vcombine.low %v3920_v0, %v3924_v20  ;;  %v1211_v0 = vld [vmem:[%s12203_s6 + $0x80] sm:$0xff]  ;;  %v3936_v20 = vld [vmem:[%s12204_s7 + $0x448] sm:$0xff] }
 0x4a7   : > { %5889 = vmatmul.mubr.bf16.gmra.mrb[52].mxu1 %v7827_v46  ;;  %v1220_v46 = vld [vmem:[%s12203_s6 + $0xc8] sm:$0xff] }
 0x4a8   : > { %5896 = vmatprep.mubr.bf16.mxu1 %v7836_v38  ;;  %v7852_v38 = vcombine.high %v3928_v59, %v3932_v47 }
 0x4aa   : > { %1910 = vperm.xlu1 %8970, %v1312_v19  }
 0x4ae   : > { %1440 = vperm.xlu1 %8970, %v1218_v36   ;;  %v3676_v34 = vpop.xlane.xlu0 %3675 }
 0x4af   : > { %5897 = vmatmul.mubr.bf16.gmra.mrb[56].mxu1 %v7835_v22  ;;  %v1316_v22 = vld [vmem:[%s12203_s6 + $0x3c8] sm:$0xff] }
 0x4b0   : > { %5904 = vmatprep.mubr.bf16.mxu1 %v7844_v30  ;;  %v10440_v30 = vpop.f32.mrb[144].mxu0 }
 0x4b1   : > { %12248 = vst [vmem:[#allocation36_spill] sm:$0xff] %v10440_v30 }
 0x4b2   : > { %1920 = vperm.xlu1 %8970, %v1314_v62   ;;  %v3672_v23 = vpop.xlane.xlu0 %3671  ;;  %v3680_v62 = vpop.xlane.xlu1 %3679 }
 0x4b3   : > { %v4087_v28 = vpack.c.bf16 %v3674_v17, %v3672_v23  ;;  %v10442_v17 = vpop.f32.mrb[145].mxu0 }
 0x4b4   : > { %v10453_v23 = vpop.f32.mrb[146].mxu0 }
 0x4b5   : > { %6042 = vmatpush1.bf16.msra.mxu1 %v4087_v28  ;;  %12249 = vst [vmem:[#allocation37_spill] sm:$0xff] %v10453_v23 }
 0x4b6   : > { %1450 = vperm.xlu1 %8970, %v1220_v46   ;;  %v3678_v19 = vpop.xlane.xlu0 %3677  ;;  %6043 = vmatprep.subr.bf16.mxu1 %v12233_v63  ;;  %v10456_v46 = vpop.f32.mrb[147].mxu0 }
 0x4b7   : > { %v4088_v36 = vpack.c.bf16 %v3678_v19, %v3676_v34  ;;  %5905 = vmatmul.mubr.bf16.gmra.mrb[60].mxu1 %v7843_v24  ;;  %v3940_v34 = vld [vmem:[%s12204_s7 + $0x468] sm:$0xff]  ;;  %v1222_v24 = vld [vmem:[%s12203_s6 + $0xd8] sm:$0xff]  ;;  %v3692_v31 = vpop.xlane.xlu1 %3691 }
 0x4b8   : > { %5912 = vmatprep.mubr.bf16.mxu1 %v7852_v38  ;;  %v7851_v38 = vcombine.low %v3928_v59, %v3932_v47  ;;  %v7860_v19 = vcombine.high %v3936_v20, %v3940_v34  ;;  %v1213_v59 = vld [vmem:[%s12203_s6 + $0x90] sm:$0xff]  ;;  %v3944_v47 = vld [vmem:[%s12204_s7 + $0x488] sm:$0xff] }
 0x4b9   : > { %6044 = vmatpush1.bf16.msra.mxu1 %v4088_v36  ;;  %v1307_v36 = vld [vmem:[%s12203_s6 + $0x380] sm:$0xff] }
 0x4ba   : > { %1930 = vperm.xlu1 %8970, %v1316_v22   ;;  %v3686_v28 = vpop.xlane.xlu0 %3685  ;;  %6045 = vmatprep.subr.bf16.mxu1 %v12233_v63  ;;  %v1318_v22 = vld [vmem:[%s12203_s6 + $0x3d8] sm:$0xff] }
 0x4bc   : > { %1405 = vperm.xlu0 %8969, %v1211_v0   ;;  %v4090_v0 = vpack.c.bf16 %v3686_v28, %v3684_v15  ;;  %v1320_v15 = vld [vmem:[%s12203_s6 + $0x3e8] sm:$0xff]  ;;  %v10487_v28 = vpop.f32.mrb[148].mxu0 }
 0x4bd   : > { %12250 = vst [vmem:[#allocation38_spill] sm:$0xff] %v10487_v28  ;;  %v1311_v28 = vld [vmem:[%s12203_s6 + $0x3a0] sm:$0xff] }
 0x4be   : > { %1460 = vperm.xlu1 %8970, %v1222_v24   ;;  %v3682_v30 = vpop.xlane.xlu0 %3681  ;;  %v7859_v24 = vcombine.low %v3936_v20, %v3940_v34  ;;  %v10489_v20 = vpop.f32.mrb[149].mxu0  ;;  %v1215_v34 = vld [vmem:[%s12203_s6 + $0xa0] sm:$0xff] }
 0x4bf   : > { %v4089_v37 = vpack.c.bf16 %v3682_v30, %v3680_v62  ;;  %5913 = vmatmul.mubr.bf16.gmra.mrb[64].mxu1 %v7851_v38  ;;  %v3948_v30 = vld [vmem:[%s12204_s7 + $0x4a8] sm:$0xff]  ;;  %12251 = vst [vmem:[#allocation39_spill] sm:$0xff] %v10489_v20 }
 0x4c0   : > { %1885 = vperm.xlu0 %8969, %v1307_v36   ;;  %5920 = vmatprep.mubr.bf16.mxu1 %v7860_v19  ;;  %v7868_v38 = vcombine.high %v3944_v47, %v3948_v30  ;;  %v1309_v19 = vld [vmem:[%s12203_s6 + $0x390] sm:$0xff]  ;;  %v3688_v36 = vpop.xlane.xlu1 %3687 }
 0x4c1   : > { %6046 = vmatpush1.bf16.msra.mxu1 %v4089_v37  ;;  %v1224_v37 = vld [vmem:[%s12203_s6 + $0xe8] sm:$0xff] }
 0x4c2   : > { %1940 = vperm.xlu1 %8970, %v1318_v22   ;;  %v3694_v62 = vpop.xlane.xlu0 %3693  ;;  %6047 = vmatprep.subr.bf16.mxu1 %v12233_v63 }
 0x4c4   : > { %1415 = vperm.xlu0 %8969, %v1213_v59   ;;  %v3956_v59 = vld [vmem:[%s12204_s7 + $0x4e8] sm:$0xff] }
 0x4c5   : > { %6048 = vmatpush1.bf16.msra.mxu1 %v4090_v0  ;;  %v10500_v0 = vpop.f32.mrb[150].mxu0 }
 0x4c6   : > { %1470 = vperm.xlu1 %8970, %v1224_v37   ;;  %v3690_v16 = vpop.xlane.xlu0 %3689  ;;  %6049 = vmatprep.subr.bf16.mxu1 %v12233_v63  ;;  %12252 = vst [vmem:[#allocation40_spill] sm:$0xff] %v10500_v0 }
 0x4c7   : > { %v4091_v22 = vpack.c.bf16 %v3690_v16, %v3688_v36  ;;  %5921 = vmatmul.mubr.bf16.gmra.mrb[68].mxu1 %v7859_v24  ;;  %v3952_v16 = vld [vmem:[%s12204_s7 + $0x4c8] sm:$0xff]  ;;  %v10503_v24 = vpop.f32.mrb[151].mxu0  ;;  %v7867_v36 = vcombine.low %v3944_v47, %v3948_v30  ;;  %v1217_v47 = vld [vmem:[%s12203_s6 + $0xb0] sm:$0xff] }
 0x4c8   : > { %1895 = vperm.xlu0 %8969, %v1309_v19   ;;  %5928 = vmatprep.mubr.bf16.mxu1 %v7868_v38  ;;  %12253 = vst [vmem:[#allocation41_spill] sm:$0xff] %v10503_v24  ;;  %v4092_v38 = vpack.c.bf16 %v3694_v62, %v3692_v31  ;;  %v1226_v19 = vld [vmem:[%s12203_s6 + $0xf8] sm:$0xff]  ;;  %v3960_v30 = vld [vmem:[%s12204_s7 + $0x508] sm:$0xff]  ;;  %v1219_v24 = vld [vmem:[%s12203_s6 + $0xc0] sm:$0xff] }
 0x4c9   : > { %6050 = vmatpush1.bf16.msra.mxu1 %v4091_v22  ;;  %v7876_v22 = vcombine.high %v3952_v16, %v3956_v59  ;;  %v1322_v31 = vld [vmem:[%s12203_s6 + $0x3f8] sm:$0xff]  ;;  %v3964_v62 = vld [vmem:[%s12204_s7 + $0x528] sm:$0xff] }
 0x4ca   : > { %1950 = vperm.xlu1 %8970, %v1320_v15   ;;  %v3702_v37 = vpop.xlane.xlu0 %3701  ;;  %6051 = vmatprep.subr.bf16.mxu1 %v12233_v63 }
 0x4cc   : > { %1425 = vperm.xlu0 %8969, %v1215_v34  }
 0x4cd   : > { %6052 = vmatpush1.bf16.msra.mxu1 %v4092_v38 }
 0x4ce   : > { %1480 = vperm.xlu1 %8970, %v1226_v19   ;;  %v3698_v15 = vpop.xlane.xlu0 %3697  ;;  %6053 = vmatprep.subr.bf16.mxu1 %v12233_v63  ;;  %v7875_v19 = vcombine.low %v3952_v16, %v3956_v59  ;;  %v3968_v16 = vld [vmem:[%s12204_s7 + $0x548] sm:$0xff] }
 0x4cf   : > { %5929 = vmatmul.mubr.bf16.gmra.mrb[72].mxu1 %v7867_v36  ;;  %v7884_v36 = vcombine.high %v3960_v30, %v3964_v62  ;;  %v3972_v59 = vld [vmem:[%s12204_s7 + $0x568] sm:$0xff] }
 0x4d0   : > { %1905 = vperm.xlu0 %8969, %v1311_v28   ;;  %5936 = vmatprep.mubr.bf16.mxu1 %v7876_v22  ;;  %v1313_v28 = vld [vmem:[%s12203_s6 + $0x3b0] sm:$0xff] }
 0x4d2   : > { %v3700_v34 = vpop.xlane.xlu1 %3699  ;;  %1960 = vperm.xlu1 %8970, %v1322_v31   ;;  %v3710_v38 = vpop.xlane.xlu0 %3709 }
 0x4d4   : > { %1435 = vperm.xlu0 %8969, %v1217_v47  }
 0x4d6   : > { %v3696_v22 = vpop.xlane.xlu1 %3695  ;;  %v3706_v20 = vpop.xlane.xlu0 %3705 }
 0x4d7   : > { %v4093_v0 = vpack.c.bf16 %v3698_v15, %v3696_v22  ;;  %5937 = vmatmul.mubr.bf16.gmra.mrb[76].mxu1 %v7875_v19  ;;  %v4094_v15 = vpack.c.bf16 %v3702_v37, %v3700_v34  ;;  %v7883_v19 = vcombine.low %v3960_v30, %v3964_v62  ;;  %v1221_v37 = vld [vmem:[%s12203_s6 + $0xd0] sm:$0xff]  ;;  %v3980_v30 = vld [vmem:[%s12204_s7 + $0x5a8] sm:$0xff]  ;;  %v7891_v34 = vcombine.low %v3968_v16, %v3972_v59 }
 0x4d8   : > { %1915 = vperm.xlu0 %8969, %v1313_v28   ;;  %5944 = vmatprep.mubr.bf16.mxu1 %v7884_v36  ;;  %v1315_v36 = vld [vmem:[%s12203_s6 + $0x3c0] sm:$0xff] }
 0x4d9   : > { %6054 = vmatpush1.bf16.msra.mxu1 %v4093_v0  ;;  %v7892_v0 = vcombine.high %v3968_v16, %v3972_v59  ;;  %v3984_v16 = vld [vmem:[%s12204_s7 + $0x5c8] sm:$0xff] }
 0x4da   : > { %v3708_v31 = vpop.xlane.xlu1 %3707  ;;  %v3718_v47 = vpop.xlane.xlu0 %3717  ;;  %6055 = vmatprep.subr.bf16.mxu1 %v12233_v63  ;;  %v3988_v59 = vld [vmem:[%s12204_s7 + $0x5e8] sm:$0xff] }
 0x4dc   : > { %1445 = vperm.xlu0 %8969, %v1219_v24   ;;  %v3976_v24 = vld [vmem:[%s12204_s7 + $0x588] sm:$0xff] }
 0x4dd   : > { %6056 = vmatpush1.bf16.msra.mxu1 %v4094_v15 }
 0x4de   : > { %v3704_v28 = vpop.xlane.xlu1 %3703  ;;  %v3714_v22 = vpop.xlane.xlu0 %3713  ;;  %6057 = vmatprep.subr.bf16.mxu1 %v12233_v63 }
 0x4df   : > { %v4095_v23 = vpack.c.bf16 %v3706_v20, %v3704_v28  ;;  %5945 = vmatmul.mubr.bf16.gmra.mrb[80].mxu1 %v7883_v19  ;;  %v4096_v20 = vpack.c.bf16 %v3710_v38, %v3708_v31  ;;  %v1317_v19 = vld [vmem:[%s12203_s6 + $0x3d0] sm:$0xff]  ;;  %v2385_v28 = vadd.f32 %v9636_v45, %v10279_v11  ;;  %v1223_v38 = vld [vmem:[%s12203_s6 + $0xe0] sm:$0xff]  ;;  %v7908_v45 = vcombine.high %v3984_v16, %v3988_v59 }
 0x4e0   : > { %1925 = vperm.xlu0 %8969, %v1315_v36   ;;  %5952 = vmatprep.mubr.bf16.mxu1 %v7892_v0 }
 0x4e1   : > { %6058 = vmatpush1.bf16.msra.mxu1 %v4095_v23  ;;  %v7900_v23 = vcombine.high %v3976_v24, %v3980_v30  ;;  %v2893_v11 = vmax.f32 %v2385_v28, 0.0 }
 0x4e2   : > { %v3716_v62 = vpop.xlane.xlu1 %3715  ;;  %6059 = vmatprep.subr.bf16.mxu1 %v12233_v63  ;;  %v3726_v15 = vpop.xlane.xlu0 %3725 }
 0x4e4   : > { %1455 = vperm.xlu0 %8969, %v1221_v37   ;;  %v4098_v37 = vpack.c.bf16 %v3718_v47, %v3716_v62  ;;  %v3996_v62 = vld [vmem:[%s12204_s7 + $0x628] sm:$0xff] }
 0x4e5   : > { %6060 = vmatpush1.bf16.msra.mxu1 %v4096_v20  ;;  %v7899_v20 = vcombine.low %v3976_v24, %v3980_v30  ;;  %v2398_v24 = vadd.f32 %v9646_v49, %v10330_v60  ;;  %v3992_v30 = vld [vmem:[%s12204_s7 + $0x608] sm:$0xff]  ;;  %v7907_v60 = vcombine.low %v3984_v16, %v3988_v59 }
 0x4e6   : > { %v3712_v0 = vpop.xlane.xlu1 %3711  ;;  %6061 = vmatprep.subr.bf16.mxu1 %v12233_v63  ;;  %v3722_v31 = vpop.xlane.xlu0 %3721 }
 0x4e7   : > { %v4097_v36 = vpack.c.bf16 %v3714_v22, %v3712_v0  ;;  %5953 = vmatmul.mubr.bf16.gmra.mrb[84].mxu1 %v7891_v34  ;;  %v2390_v34 = vadd.f32 %v9630_v42, %v10294_v32  ;;  %v1225_v42 = vld [vmem:[%s12203_s6 + $0xf0] sm:$0xff]  ;;  %v3029_v32 = vsel %vm3025_vm4, %v2893_v11, 0.0 }
 0x4e8   : > { %1935 = vperm.xlu0 %8969, %v1317_v19   ;;  %5960 = vmatprep.mubr.bf16.mxu1 %v7900_v23  ;;  %v1319_v23 = vld [vmem:[%s12203_s6 + $0x3e0] sm:$0xff]  ;;  %v1321_v11 = vld [vmem:[%s12203_s6 + $0x3f0] sm:$0xff] }
 0x4e9   : > { %6062 = vmatpush1.bf16.msra.mxu1 %v4097_v36  ;;  %v2894_v47 = vmax.f32 %v2390_v34, 0.0 }
 0x4ea   : > { %v3724_v22 = vpop.xlane.xlu1 %3723  ;;  %6063 = vmatprep.subr.bf16.mxu1 %v12233_v63 }
 0x4eb   : > { %v4100_v49 = vpack.c.bf16 %v3726_v15, %v3724_v22  ;;  %v3030_v34 = vsel %vm3025_vm4, %v2894_v47, 0.0  ;;  %v4000_v22 = vld [vmem:[%s12204_s7 + $0x648] sm:$0xff]  ;;  %v7915_v47 = vcombine.low %v3992_v30, %v3996_v62 }
 0x4ec   : > { %1465 = vperm.xlu0 %8969, %v1223_v38   ;;  %v3286_v16 = vmax.f32 %v3030_v34, 0.0 }
 0x4ed   : > { %6064 = vmatpush1.bf16.msra.mxu1 %v4098_v37  ;;  %v7916_v37 = vcombine.high %v3992_v30, %v3996_v62  ;;  %v4008_v62 = vld [vmem:[%s12204_s7 + $0x688] sm:$0xff] }
 0x4ee   : > { %v3720_v19 = vpop.xlane.xlu1 %3719  ;;  %v1376_v0 = vpop.permute.xlu0 %1375  ;;  %6065 = vmatprep.subr.bf16.mxu1 %v12233_v63 }
 0x4ef   : > { %v4099_v36 = vpack.c.bf16 %v3722_v31, %v3720_v19  ;;  %5961 = vmatmul.mubr.bf16.gmra.mrb[88].mxu1 %v7899_v20  ;;  %v3285_v31 = vmax.f32 %v3029_v32, 0.0  ;;  %v2896_v20 = vmax.f32 %v2398_v24, 0.0  ;;  %v4004_v19 = vld [vmem:[%s12204_s7 + $0x668] sm:$0xff] }
 0x4f0   : > { %1945 = vperm.xlu0 %8969, %v1319_v23   ;;  %5968 = vmatprep.mubr.bf16.mxu1 %v7908_v45  ;;  %v2406_v45 = vadd.f32 %v9644_v48, %v10355_v26  ;;  %v2414_v48 = vadd.f32 %v9654_v53, %v10398_v9  ;;  %v7924_v32 = vcombine.high %v4000_v22, %v4004_v19 }
 0x4f1   : > { %6066 = vmatpush1.bf16.msra.mxu1 %v4099_v36  ;;  %v3032_v26 = vsel %vm3025_vm4, %v2896_v20, 0.0  ;;  %v2422_v9 = vadd.f32 %v9652_v52, %v1376_v0  ;;  %v4012_v52 = vld [vmem:[%s12204_s7 + $0x6a8] sm:$0xff] }
 0x4f2   : > { %v10586_v28 = vpop.xlane.xlu1 %3731  ;;  %v10588_v38 = vpop.permute.xlu0 %1855  ;;  %6067 = vmatprep.subr.bf16.mxu1 %v12233_v63  ;;  %v2898_v59 = vmax.f32 %v2406_v45, 0.0  ;;  %v2900_v53 = vmax.f32 %v2414_v48, 0.0 }
 0x4f4   : > { %1475 = vperm.xlu0 %8969, %v1225_v42   ;;  %v3288_v42 = vmax.f32 %v3032_v26, 0.0  ;;  %v3036_v30 = vsel %vm3025_vm4, %v2900_v53, 0.0  ;;  %v7931_v53 = vcombine.low %v4008_v62, %v4012_v52 }
 0x4f5   : > { %6068 = vmatpush1.bf16.msra.mxu1 %v4100_v49  ;;  %v3034_v49 = vsel %vm3025_vm4, %v2898_v59, 0.0  ;;  %v3292_v34 = vmax.f32 %v3036_v30, 0.0 }
 0x4f6   : > { %v10598_v23 = vpop.xlane.xlu1 %3727  ;;  %3545 = vmax.xlane.f32.xlu1 %v3285_v31  ;;  %v1386_v15 = vpop.permute.xlu0 %1385  ;;  %6069 = vmatprep.subr.bf16.mxu1 %v12233_v63  ;;  %v3290_v31 = vmax.f32 %v3034_v49, 0.0 }
 0x4f7   : > { %5969 = vmatmul.mubr.bf16.gmra.mrb[92].mxu1 %v7907_v60  ;;  %v2430_v20 = vadd.f32 %v9662_v57, %v1386_v15 }
 0x4f8   : > { %1955 = vperm.xlu0 %8969, %v1321_v11   ;;  %5976 = vmatprep.mubr.bf16.mxu1 %v7916_v37  ;;  %v2902_v37 = vmax.f32 %v2422_v9, 0.0  ;;  %v7923_v11 = vcombine.low %v4000_v22, %v4004_v19  ;;  %v4016_v22 = vld [vmem:[%s12204_s7 + $0x6c8] sm:$0xff]  ;;  %v2382_v19 = vadd.f32 %v9632_v43, %v10254_v12 }
 0x4f9   : > { %v2904_v59 = vmax.f32 %v2430_v20, 0.0  ;;  %v2393_v20 = vadd.f32 %v9634_v44, %v10308_v14  ;;  %v4024_v43 = vld [vmem:[%s12204_s7 + $0x708] sm:$0xff] }
 0x4fa   : > { %v10611_v36 = vpop.permute.xlu1 %1850  ;;  %3547 = vmax.xlane.f32.xlu1 %v3286_v16  ;;  %v10613_v24 = vpop.permute.xlu0 %1865  ;;  %v7932_v16 = vcombine.high %v4008_v62, %v4012_v52  ;;  %v3038_v15 = vsel %vm3025_vm4, %v2902_v37, 0.0  ;;  %v2892_v37 = vmax.f32 %v2382_v19, 0.0  ;;  %v4028_v12 = vld [vmem:[%s12204_s7 + $0x728] sm:$0xff]  ;;  %v2401_v52 = vadd.f32 %v9650_v51, %v10335_v25 }
 0x4fb   : > { %v3294_v26 = vmax.f32 %v3038_v15, 0.0  ;;  %v2895_v62 = vmax.f32 %v2393_v20, 0.0  ;;  %v2409_v15 = vadd.f32 %v9648_v50, %v10376_v35  ;;  %v4036_v25 = vld [vmem:[%s12204_s7 + $0x768] sm:$0xff] }
 0x4fc   : > { %v3028_v44 = vsel %vm3025_vm4, %v2892_v37, 0.0  ;;  %v12255_v37 = vld [vmem:[#allocation3_spill] sm:$0xff] }
 0x4fe   : > { %v10618_v60 = vpop.permute.xlu1 %1380  ;;  %3551 = vmax.xlane.f32.xlu1 %v3288_v42  ;;  %v1396_v0 = vpop.permute.xlu0 %1395  ;;  %v3040_v42 = vsel %vm3025_vm4, %v2904_v59, 0.0  ;;  %v3284_v59 = vmax.f32 %v3028_v44, 0.0 }
 0x4ff   : > { %5977 = vmatmul.mubr.bf16.gmra.mrb[96].mxu1 %v7915_v47  ;;  %v2438_v57 = vadd.f32 %v9660_v56, %v1396_v0  ;;  %v4020_v56 = vld [vmem:[%s12204_s7 + $0x6e8] sm:$0xff]  ;;  %v3296_v9 = vmax.f32 %v3040_v42, 0.0  ;;  %v2899_v42 = vmax.f32 %v2409_v15, 0.0  ;;  %v2425_v20 = vadd.f32 %v12255_v37, %v10618_v60 }
 0x500   : > { %5984 = vmatprep.mubr.bf16.mxu1 %v7924_v32  ;;  %v7940_v49 = vcombine.high %v4016_v22, %v4020_v56 }
 0x501   : > { %v2906_v47 = vmax.f32 %v2438_v57, 0.0  ;;  %v2897_v57 = vmax.f32 %v2401_v52, 0.0  ;;  %v12256_v52 = vld [vmem:[#allocation6_spill] sm:$0xff] }
 0x502   : > { %v10629_v45 = vpop.permute.xlu1 %1860  ;;  %3555 = vmax.xlane.f32.xlu1 %v3290_v31 }
 0x503   : > { %v3042_v31 = vsel %vm3025_vm4, %v2906_v47, 0.0  ;;  %v3031_v47 = vsel %vm3025_vm4, %v2895_v62, 0.0  ;;  %v3035_v62 = vsel %vm3025_vm4, %v2899_v42, 0.0 }
 0x504   : > { %v3298_v0 = vmax.f32 %v3042_v31, 0.0  ;;  %v3287_v51 = vmax.f32 %v3031_v47, 0.0  ;;  %v12257_v47 = vld [vmem:[#allocation5_spill] sm:$0xff] }
 0x506   : > { %v10634_v48 = vpop.permute.xlu1 %1390  ;;  %3559 = vmax.xlane.f32.xlu1 %v3292_v34  ;;  %v7939_v34 = vcombine.low %v4016_v22, %v4020_v56  ;;  %v12254_v22 = vld [vmem:[#allocation4_spill] sm:$0xff]  ;;  %v3033_v56 = vsel %vm3025_vm4, %v2897_v57, 0.0 }
 0x507   : > { %5985 = vmatmul.mubr.bf16.gmra.mrb[100].mxu1 %v7923_v11  ;;  %v2417_v50 = vadd.f32 %v12254_v22, %v10405_v58  ;;  %v3291_v58 = vmax.f32 %v3035_v62, 0.0  ;;  %v2433_v60 = vadd.f32 %v12256_v52, %v10634_v48 }
 0x508   : > { %5992 = vmatprep.mubr.bf16.mxu1 %v7932_v16  ;;  %v7948_v16 = vcombine.high %v4024_v43, %v4028_v12 }
 0x509   : > { %v2901_v31 = vmax.f32 %v2417_v50, 0.0  ;;  %v2905_v15 = vmax.f32 %v2433_v60, 0.0  ;;  %v12258_v50 = vld [vmem:[#allocation10_spill] sm:$0xff] }
 0x50a   : > { %v10646_v32 = vpop.permute.xlu1 %1870  ;;  %3563 = vmax.xlane.f32.xlu1 %v3294_v26 }
 0x50b   : > { %v3037_v44 = vsel %vm3025_vm4, %v2901_v31, 0.0 }
 0x50c   : > { %v3293_v57 = vmax.f32 %v3037_v44, 0.0  ;;  %v12260_v44 = vld [vmem:[#allocation14_spill] sm:$0xff] }
 0x50e   : > { %v1401_v30 = vpop.permute.xlu1 %1400  ;;  %3567 = vmax.xlane.f32.xlu1 %v3296_v9 }
 0x50f   : > { %5993 = vmatmul.mubr.bf16.gmra.mrb[104].mxu1 %v7931_v53  ;;  %v7947_v53 = vcombine.low %v4024_v43, %v4028_v12  ;;  %v4044_v43 = vld [vmem:[%s12204_s7 + $0x7a8] sm:$0xff]  ;;  %v2903_v12 = vmax.f32 %v2425_v20, 0.0 }
 0x510   : > { %6000 = vmatprep.mubr.bf16.mxu1 %v7940_v49  ;;  %v3289_v49 = vmax.f32 %v3033_v56, 0.0  ;;  %v3041_v56 = vsel %vm3025_vm4, %v2905_v15, 0.0 }
 0x511   : > { %v3039_v22 = vsel %vm3025_vm4, %v2903_v12, 0.0  ;;  %v3297_v37 = vmax.f32 %v3041_v56, 0.0 }
 0x512   : > { %v1881_v11 = vpop.permute.xlu1 %1880  ;;  %3571 = vmax.xlane.f32.xlu1 %v3298_v0  ;;  %v3295_v48 = vmax.f32 %v3039_v22, 0.0 }
 0x513   : > { %v10663_v14 = vadd.f32 %v10321_v1, %v1881_v11  ;;  %v4032_v1 = vld [vmem:[%s12204_s7 + $0x748] sm:$0xff] }
 0x514   : > { %v7956_v9 = vcombine.high %v4032_v1, %v4036_v25 }
 0x516   : > { %v1411_v26 = vpop.permute.xlu1 %1410 }
 0x517   : > { %3543 = vmax.xlane.f32.xlu0 %v3284_v59  ;;  %6001 = vmatmul.mubr.bf16.gmra.mrb[108].mxu1 %v7939_v34 }
 0x518   : > { %6008 = vmatprep.mubr.bf16.mxu1 %v7948_v16  ;;  %v7955_v16 = vcombine.low %v4032_v1, %v4036_v25  ;;  %v4052_v1 = vld [vmem:[%s12204_s7 + $0x7e8] sm:$0xff] }
 0x51a   : > { %v1891_v35 = vpop.permute.xlu1 %1890 }
 0x51b   : > { %v10680_v19 = vadd.f32 %v10374_v8, %v1891_v35  ;;  %3549 = vmax.xlane.f32.xlu0 %v3287_v51  ;;  %v4040_v8 = vld [vmem:[%s12204_s7 + $0x788] sm:$0xff]  ;;  %v2441_v51 = vadd.f32 %v12257_v47, %v1401_v30  ;;  %v2449_v35 = vadd.f32 %v12258_v50, %v1411_v26 }
 0x51c   : > { %v7964_v59 = vcombine.high %v4040_v8, %v4044_v43 }
 0x51d   : > { %v2907_v25 = vmax.f32 %v2441_v51, 0.0  ;;  %v2909_v62 = vmax.f32 %v2449_v35, 0.0 }
 0x51e   : > { %v1421_v0 = vpop.permute.xlu1 %1420 }
 0x51f   : > { %3553 = vmax.xlane.f32.xlu0 %v3289_v49  ;;  %6009 = vmatmul.mubr.bf16.gmra.mrb[112].mxu1 %v7947_v53  ;;  %v10711_v53 = vpop.permute.xlu0 %1875  ;;  %v7963_v49 = vcombine.low %v4040_v8, %v4044_v43  ;;  %v3043_v20 = vsel %vm3025_vm4, %v2907_v25, 0.0  ;;  %v12261_v25 = vld [vmem:[#allocation13_spill] sm:$0xff] }
 0x520   : > { %6016 = vmatprep.mubr.bf16.mxu1 %v7956_v9  ;;  %v3299_v60 = vmax.f32 %v3043_v20, 0.0 }
 0x522   : > { %v1901_v11 = vpop.permute.xlu1 %1900 }
 0x523   : > { %v10697_v34 = vadd.f32 %v10369_v18, %v1901_v11  ;;  %3557 = vmax.xlane.f32.xlu0 %v3291_v58  ;;  %v4048_v18 = vld [vmem:[%s12204_s7 + $0x7c8] sm:$0xff]  ;;  %v12259_v58 = vld [vmem:[#allocation9_spill] sm:$0xff] }
 0x524   : > { %v7972_v31 = vcombine.high %v4048_v18, %v4052_v1  ;;  %v2457_v12 = vadd.f32 %v12259_v58, %v1421_v0  ;;  %v3805_v0 = vld [vmem:[%s12204_s7 + $0x30] sm:$0xff]  ;;  %v7971_v47 = vcombine.low %v4048_v18, %v4052_v1  ;;  %v12262_v1 = vld [vmem:[#allocation18_spill] sm:$0xff] }
 0x526   : > { %v1431_v42 = vpop.permute.xlu1 %1430  ;;  %v2911_v11 = vmax.f32 %v2457_v12, 0.0 }
 0x527   : > { %3561 = vmax.xlane.f32.xlu0 %v3293_v57  ;;  %6017 = vmatmul.mubr.bf16.gmra.mrb[116].mxu1 %v7955_v16  ;;  %v2465_v8 = vadd.f32 %v12260_v44, %v1431_v42  ;;  %v3801_v16 = vld [vmem:[%s12204_s7 + $0x10] sm:$0xff] }
 0x528   : > { %6024 = vmatprep.mubr.bf16.mxu1 %v7964_v59  ;;  %v7726_v22 = vcombine.high %v3801_v16, %v3805_v0  ;;  %v3047_v42 = vsel %vm3025_vm4, %v2911_v11, 0.0  ;;  %v7725_v12 = vcombine.low %v3801_v16, %v3805_v0 }
 0x52a   : > { %v1911_v30 = vpop.permute.xlu1 %1910 }
 0x52b   : > { %v10714_v9 = vadd.f32 %v10422_v21, %v1911_v30  ;;  %3565 = vmax.xlane.f32.xlu0 %v3295_v48  ;;  %v3045_v21 = vsel %vm3025_vm4, %v2909_v62, 0.0  ;;  %v2913_v48 = vmax.f32 %v2465_v8, 0.0  ;;  %v3303_v30 = vmax.f32 %v3047_v42, 0.0  ;;  %v12263_v62 = vld [vmem:[#allocation8_spill] sm:$0xff]  ;;  %v12264_v8 = vld [vmem:[#allocation17_spill] sm:$0xff] }
 0x52c   : > { %v3301_v51 = vmax.f32 %v3045_v21, 0.0  ;;  %v3817_v42 = vld [vmem:[%s12204_s7 + $0x90] sm:$0xff] }
 0x52e   : > { %v1441_v26 = vpop.permute.xlu1 %1440 }
 0x52f   : > { %3569 = vmax.xlane.f32.xlu0 %v3297_v37  ;;  %v3734_v52 = vpop.xlane.xlu0 %3733  ;;  %6025 = vmatmul.mubr.bf16.gmra.mrb[120].mxu1 %v7963_v49  ;;  %v2473_v50 = vadd.f32 %v12261_v25, %v1441_v26  ;;  %v3813_v37 = vld [vmem:[%s12204_s7 + $0x70] sm:$0xff]  ;;  %v12265_v25 = vld [vmem:[#allocation7_spill] sm:$0xff] }
 0x530   : > { %6032 = vmatprep.mubr.bf16.mxu1 %v7972_v31  ;;  %v3809_v31 = vld [vmem:[%s12204_s7 + $0x50] sm:$0xff] }
 0x531   : > { %v2915_v18 = vmax.f32 %v2473_v50, 0.0 }
 0x532   : > { %v1921_v43 = vpop.permute.xlu1 %1920 }
 0x533   : > { %v10729_v59 = vadd.f32 %v10417_v6, %v1921_v43  ;;  %3573 = vmax.xlane.f32.xlu0 %v3299_v60  ;;  %v3730_v57 = vpop.xlane.xlu0 %3729  ;;  %v4102_v6 = vpack.c.bf16 %v3734_v52, %v10586_v28  ;;  %v7734_v52 = vcombine.high %v3809_v31, %v3813_v37  ;;  %v3051_v60 = vsel %vm3025_vm4, %v2915_v18, 0.0 }
 0x534   : > { %v4101_v15 = vpack.c.bf16 %v3730_v57, %v10598_v23  ;;  %v3049_v23 = vsel %vm3025_vm4, %v2913_v48, 0.0  ;;  %v3307_v16 = vmax.f32 %v3051_v60, 0.0  ;;  %v3821_v48 = vld [vmem:[%s12204_s7 + $0xb0] sm:$0xff] }
 0x535   : > { %v3305_v26 = vmax.f32 %v3049_v23, 0.0  ;;  %v12266_v23 = vld [vmem:[#allocation24_spill] sm:$0xff]  ;;  %v12268_v60 = vld [vmem:[#allocation25_spill] sm:$0xff] }
 0x536   : > { %v1451_v35 = vpop.permute.xlu1 %1450  ;;  %6070 = vmatpush1.bf16.msra.mxu1 %v4101_v15  ;;  %v2766_v18 = vadd.f32 %v12266_v23, %v10269_v41 }
 0x537   : > { %3577 = vmax.xlane.f32.xlu0 %v3301_v51  ;;  %6071 = vmatprep.subr.bf16.mxu1 %v12233_v63  ;;  %v2481_v56 = vadd.f32 %v12262_v1, %v1451_v35  ;;  %v7733_v35 = vcombine.low %v3809_v31, %v3813_v37 }
 0x538   : > { %6033 = vmatmul.mubr.bf16.gmra.mrb[124].mxu1 %v7971_v47  ;;  %v2988_v41 = vmax.f32 %v2766_v18, 0.0 }
 0x539   : > { %6073 = vmatprep.mubr.bf16.mxu1 %v7726_v22  ;;  %v2917_v21 = vmax.f32 %v2481_v56, 0.0 }
 0x53a   : > { %v1931_v49 = vpop.permute.xlu1 %1930  ;;  %6072 = vmatpush1.bf16.msra.mxu1 %v4102_v6 }
 0x53b   : > { %v10747_v28 = vadd.f32 %v10456_v46, %v1931_v49  ;;  %3581 = vmax.xlane.f32.xlu0 %v3303_v30  ;;  %v1406_v20 = vpop.permute.xlu0 %1405  ;;  %6330 = vmatprep.subr.bf16.mxu1 %v12233_v63  ;;  %v3053_v47 = vsel %vm3025_vm4, %v2917_v21, 0.0  ;;  %v7742_v30 = vcombine.high %v3817_v42, %v3821_v48  ;;  %v2777_v21 = vadd.f32 %v12268_v60, %v10325_v10  ;;  %v12270_v10 = vld [vmem:[#allocation26_spill] sm:$0xff] }
 0x53c   : > { %v2446_v58 = vadd.f32 %v12263_v62, %v1406_v20  ;;  %v3309_v6 = vmax.f32 %v3053_v47, 0.0  ;;  %v12267_v20 = vld [vmem:[#allocation22_spill] sm:$0xff]  ;;  %v2769_v47 = vadd.f32 %v12270_v10, %v10289_v61  ;;  %v12271_v61 = vld [vmem:[#allocation29_spill] sm:$0xff] }
 0x53d   : > { %v2793_v23 = vadd.f32 %v12271_v61, %v10393_v33  ;;  %v12273_v33 = vld [vmem:[#allocation30_spill] sm:$0xff] }
 0x53e   : > { %v2908_v11 = vmax.f32 %v2446_v58, 0.0  ;;  %v1461_v44 = vpop.permute.xlu1 %1460 }
 0x53f   : > { %v2489_v43 = vadd.f32 %v12264_v8, %v1461_v44  ;;  %3585 = vmax.xlane.f32.xlu0 %v3305_v26  ;;  %v1886_v46 = vpop.permute.xlu0 %1885  ;;  %v3829_v44 = vld [vmem:[%s12204_s7 + $0xf0] sm:$0xff] }
 0x540   : > { %v3044_v57 = vsel %vm3025_vm4, %v2908_v11, 0.0  ;;  %v10757_v15 = vadd.f32 %v10367_v39, %v1886_v46  ;;  %6074 = vmatmul.mubr.bf16.vlgmr.msra.gmra.mrb[0].mxu1 %v7725_v12  ;;  %v3825_v11 = vld [vmem:[%s12204_s7 + $0xd0] sm:$0xff]  ;;  %v12269_v46 = vld [vmem:[#allocation12_spill] sm:$0xff] }
 0x541   : > { %v3300_v0 = vmax.f32 %v3044_v57, 0.0  ;;  %6081 = vmatprep.mubr.bf16.mxu1 %v7734_v52  ;;  %v2919_v51 = vmax.f32 %v2489_v43, 0.0 }
 0x542   : > { %v10761_v22 = vpop.permute.xlu1 %1940 }
 0x543   : > { %3589 = vmax.xlane.f32.xlu0 %v3307_v16  ;;  %3575 = vmax.xlane.f32.xlu1 %v3300_v0  ;;  %v1416_v39 = vpop.permute.xlu0 %1415  ;;  %v3055_v1 = vsel %vm3025_vm4, %v2919_v51, 0.0  ;;  %v7741_v16 = vcombine.low %v3817_v42, %v3821_v48  ;;  %v7750_v0 = vcombine.high %v3825_v11, %v3829_v44  ;;  %v2991_v51 = vmax.f32 %v2777_v21, 0.0 }
 0x544   : > { %v2454_v50 = vadd.f32 %v12265_v25, %v1416_v39  ;;  %v3311_v31 = vmax.f32 %v3055_v1, 0.0  ;;  %v3124_v25 = vsel %vm3025_vm4, %v2988_v41, 0.0  ;;  %v2989_v48 = vmax.f32 %v2769_v47, 0.0  ;;  %v3833_v1 = vld [vmem:[%s12204_s7 + $0x110] sm:$0xff] }
 0x545   : > { %v3380_v42 = vmax.f32 %v3124_v25, 0.0  ;;  %v3127_v18 = vsel %vm3025_vm4, %v2991_v51, 0.0 }
 0x546   : > { %v2910_v56 = vmax.f32 %v2454_v50, 0.0  ;;  %v1471_v49 = vpop.permute.xlu1 %1470  ;;  %v3125_v41 = vsel %vm3025_vm4, %v2989_v48, 0.0 }
 0x547   : > { %v2497_v62 = vadd.f32 %v12267_v20, %v1471_v49  ;;  %3593 = vmax.xlane.f32.xlu0 %v3309_v6  ;;  %v1896_v58 = vpop.permute.xlu0 %1895  ;;  %v12272_v49 = vld [vmem:[#allocation11_spill] sm:$0xff] }
 0x548   : > { %v3046_v12 = vsel %vm3025_vm4, %v2910_v56, 0.0  ;;  %v10778_v26 = vadd.f32 %v10357_v13, %v1896_v58  ;;  %6082 = vmatmul.mubr.bf16.gmra.mrb[4].mxu1 %v7733_v35  ;;  %v3383_v58 = vmax.f32 %v3127_v18, 0.0  ;;  %v12275_v18 = vld [vmem:[#allocation15_spill] sm:$0xff] }
 0x549   : > { %v3302_v37 = vmax.f32 %v3046_v12, 0.0  ;;  %v2921_v52 = vmax.f32 %v2497_v62, 0.0  ;;  %6089 = vmatprep.mubr.bf16.mxu1 %v7742_v30  ;;  %v7749_v62 = vcombine.low %v3825_v11, %v3829_v44  ;;  %v2809_v44 = vadd.f32 %v10262_v55, %v10629_v45 }
 0x54a   : > { %v2801_v55 = vadd.f32 %v10267_v4, %v10611_v36  ;;  %v3849_v36 = vld [vmem:[%s12204_s7 + $0x190] sm:$0xff] }
 0x54b   : > { %v3057_v13 = vsel %vm3025_vm4, %v2921_v52, 0.0  ;;  %3597 = vmax.xlane.f32.xlu0 %v3311_v31  ;;  %3579 = vmax.xlane.f32.xlu1 %v3302_v37  ;;  %v1426_v8 = vpop.permute.xlu0 %1425  ;;  %v2785_v31 = vadd.f32 %v12273_v33, %v10350_v40  ;;  %v2995_v37 = vmax.f32 %v2793_v23, 0.0  ;;  %v2999_v45 = vmax.f32 %v2809_v44, 0.0  ;;  %v3853_v23 = vld [vmem:[%s12204_s7 + $0x1b0] sm:$0xff] }
 0x54c   : > { %v3313_v43 = vmax.f32 %v3057_v13, 0.0  ;;  %v2462_v57 = vadd.f32 %v12269_v46, %v1426_v8  ;;  %v3381_v8 = vmax.f32 %v3125_v41, 0.0  ;;  %v3845_v46 = vld [vmem:[%s12204_s7 + $0x170] sm:$0xff]  ;;  %v2997_v61 = vmax.f32 %v2801_v55, 0.0  ;;  %v12279_v55 = vld [vmem:[#allocation28_spill] sm:$0xff] }
 0x54d   : > { %v2993_v11 = vmax.f32 %v2785_v31, 0.0  ;;  %v3131_v40 = vsel %vm3025_vm4, %v2995_v37, 0.0  ;;  %v3135_v4 = vsel %vm3025_vm4, %v2999_v45, 0.0  ;;  %v12276_v37 = vld [vmem:[#allocation23_spill] sm:$0xff]  ;;  %v7773_v44 = vcombine.low %v3849_v36, %v3853_v23 }
 0x54e   : > { %v2912_v39 = vmax.f32 %v2462_v57, 0.0  ;;  %v3387_v47 = vmax.f32 %v3131_v40, 0.0  ;;  %v2782_v45 = vadd.f32 %v12279_v55, %v10343_v29  ;;  %v3869_v29 = vld [vmem:[%s12204_s7 + $0x230] sm:$0xff] }
 0x54f   : > { %3601 = vmax.xlane.f32.xlu0 %v3313_v43  ;;  %v1906_v50 = vpop.permute.xlu0 %1905  ;;  %v3841_v43 = vld [vmem:[%s12204_s7 + $0x150] sm:$0xff]  ;;  %v3129_v25 = vsel %vm3025_vm4, %v2993_v11, 0.0  ;;  %v12277_v11 = vld [vmem:[#allocation20_spill] sm:$0xff] }
 0x550   : > { %v3048_v35 = vsel %vm3025_vm4, %v2912_v39, 0.0  ;;  %v10798_v6 = vadd.f32 %v10413_v54, %v1906_v50  ;;  %6090 = vmatmul.mubr.bf16.gmra.mrb[8].mxu1 %v7741_v16  ;;  %v3837_v54 = vld [vmem:[%s12204_s7 + $0x130] sm:$0xff]  ;;  %v12274_v16 = vld [vmem:[#allocation16_spill] sm:$0xff]  ;;  %v7766_v51 = vcombine.high %v3841_v43, %v3845_v46  ;;  %v3385_v48 = vmax.f32 %v3129_v25, 0.0 }
 0x551   : > { %v3304_v30 = vmax.f32 %v3048_v35, 0.0  ;;  %6097 = vmatprep.mubr.bf16.mxu1 %v7750_v0  ;;  %v7758_v12 = vcombine.high %v3833_v1, %v3837_v54  ;;  %v7757_v10 = vcombine.low %v3833_v1, %v3837_v54  ;;  %v7765_v54 = vcombine.low %v3841_v43, %v3845_v46  ;;  %v3881_v55 = vld [vmem:[%s12204_s7 + $0x290] sm:$0xff] }
 0x553   : > { %3735 = vmax.xlane.f32.xlu0 %v3380_v42  ;;  %3583 = vmax.xlane.f32.xlu1 %v3304_v30  ;;  %v1436_v56 = vpop.permute.xlu0 %1435 }
 0x554   : > { %v2470_v20 = vadd.f32 %v12272_v49, %v1436_v56  ;;  %v3391_v56 = vmax.f32 %v3135_v4, 0.0  ;;  %v7774_v49 = vcombine.high %v3849_v36, %v3853_v23  ;;  %v12280_v23 = vld [vmem:[#allocation31_spill] sm:$0xff] }
 0x556   : > { %v2914_v52 = vmax.f32 %v2470_v20, 0.0  ;;  %v2817_v20 = vadd.f32 %v10323_v3, %v10646_v32 }
 0x557   : > { %3741 = vmax.xlane.f32.xlu0 %v3383_v58  ;;  %v10815_v60 = vpop.permute.xlu0 %1915 }
 0x558   : > { %v3050_v21 = vsel %vm3025_vm4, %v2914_v52, 0.0  ;;  %6098 = vmatmul.mubr.bf16.gmra.mrb[12].mxu1 %v7749_v62  ;;  %v3003_v62 = vmax.f32 %v10663_v14, 0.0  ;;  %v2774_v52 = vadd.f32 %v12276_v37, %v10310_v7  ;;  %v3001_v3 = vmax.f32 %v2817_v20, 0.0  ;;  %v3857_v14 = vld [vmem:[%s12204_s7 + $0x1d0] sm:$0xff] }
 0x559   : > { %v3306_v13 = vmax.f32 %v3050_v21, 0.0  ;;  %6105 = vmatprep.mubr.bf16.mxu1 %v7758_v12  ;;  %v3133_v12 = vsel %vm3025_vm4, %v2997_v61, 0.0  ;;  %v2992_v61 = vmax.f32 %v2782_v45, 0.0  ;;  %v12282_v37 = vld [vmem:[#allocation37_spill] sm:$0xff] }
 0x55a   : > { %v3389_v21 = vmax.f32 %v3133_v12, 0.0  ;;  %v3139_v32 = vsel %vm3025_vm4, %v3003_v62, 0.0  ;;  %v2990_v40 = vmax.f32 %v2774_v52, 0.0  ;;  %v1951_v62 = vpop.permute.xlu1 %1950  ;;  %v2873_v52 = vadd.f32 %v12282_v37, %v10761_v22 }
 0x55b   : > { %3737 = vmax.xlane.f32.xlu0 %v3381_v8  ;;  %3587 = vmax.xlane.f32.xlu1 %v3306_v13  ;;  %v1446_v57 = vpop.permute.xlu0 %1445  ;;  %v3861_v13 = vld [vmem:[%s12204_s7 + $0x1f0] sm:$0xff]  ;;  %v3395_v43 = vmax.f32 %v3139_v32, 0.0 }
 0x55c   : > { %v2478_v0 = vadd.f32 %v12274_v16, %v1446_v57  ;;  %v7782_v46 = vcombine.high %v3857_v14, %v3861_v13  ;;  %v12278_v57 = vld [vmem:[#allocation27_spill] sm:$0xff] }
 0x55d   : > { %v2790_v16 = vadd.f32 %v12278_v57, %v10380_v5  ;;  %v3005_v5 = vmax.f32 %v10680_v19, 0.0 }
 0x55e   : > { %v2916_v39 = vmax.f32 %v2478_v0, 0.0  ;;  %v3007_v0 = vmax.f32 %v10697_v34, 0.0 }
 0x55f   : > { %3749 = vmax.xlane.f32.xlu0 %v3387_v47  ;;  %v1926_v50 = vpop.permute.xlu0 %1925  ;;  %v3137_v47 = vsel %vm3025_vm4, %v3001_v3, 0.0 }
 0x560   : > { %v3052_v35 = vsel %vm3025_vm4, %v2916_v39, 0.0  ;;  %v10837_v30 = vadd.f32 %v10442_v17, %v1926_v50  ;;  %6106 = vmatmul.mubr.bf16.gmra.mrb[16].mxu1 %v7757_v10  ;;  %v3393_v25 = vmax.f32 %v3137_v47, 0.0  ;;  %v2994_v50 = vmax.f32 %v2790_v16, 0.0  ;;  %v12285_v47 = vld [vmem:[#allocation21_spill] sm:$0xff] }
 0x561   : > { %v3308_v42 = vmax.f32 %v3052_v35, 0.0  ;;  %6113 = vmatprep.mubr.bf16.mxu1 %v7766_v51  ;;  %v3143_v34 = vsel %vm3025_vm4, %v3007_v0, 0.0  ;;  %v3126_v35 = vsel %vm3025_vm4, %v2990_v40, 0.0  ;;  %v12284_v40 = vld [vmem:[#allocation34_spill] sm:$0xff]  ;;  %v3013_v0 = vmax.f32 %v10747_v28, 0.0 }
 0x562   : > { %v3399_v4 = vmax.f32 %v3143_v34, 0.0  ;;  %v3382_v19 = vmax.f32 %v3126_v35, 0.0  ;;  %v12286_v34 = vld [vmem:[#allocation41_spill] sm:$0xff] }
 0x563   : > { %3745 = vmax.xlane.f32.xlu0 %v3385_v48  ;;  %3591 = vmax.xlane.f32.xlu1 %v3308_v42  ;;  %v1456_v17 = vpop.permute.xlu0 %1455  ;;  %v3865_v42 = vld [vmem:[%s12204_s7 + $0x210] sm:$0xff]  ;;  %v7781_v48 = vcombine.low %v3857_v14, %v3861_v13  ;;  %v2881_v35 = vadd.f32 %v12286_v34, %v1951_v62 }
 0x564   : > { %v2486_v1 = vadd.f32 %v12275_v18, %v1456_v17  ;;  %v7790_v36 = vcombine.high %v3865_v42, %v3869_v29  ;;  %v2806_v17 = vadd.f32 %v12280_v23, %v10588_v38  ;;  %v3141_v18 = vsel %vm3025_vm4, %v3005_v5, 0.0  ;;  %v12283_v13 = vld [vmem:[#allocation33_spill] sm:$0xff] }
 0x565   : > { %v3397_v20 = vmax.f32 %v3141_v18, 0.0  ;;  %v3128_v38 = vsel %vm3025_vm4, %v2992_v61, 0.0  ;;  %v3149_v5 = vsel %vm3025_vm4, %v3013_v0, 0.0  ;;  %v3017_v23 = vmax.f32 %v2881_v35, 0.0  ;;  %v12287_v18 = vld [vmem:[#allocation40_spill] sm:$0xff] }
 0x566   : > { %v2918_v58 = vmax.f32 %v2486_v1, 0.0  ;;  %v3011_v1 = vmax.f32 %v10729_v59, 0.0  ;;  %v2998_v12 = vmax.f32 %v2806_v17, 0.0  ;;  %v3405_v61 = vmax.f32 %v3149_v5, 0.0 }
 0x567   : > { %3757 = vmax.xlane.f32.xlu0 %v3391_v56  ;;  %v10853_v33 = vpop.permute.xlu0 %1935  ;;  %v12281_v56 = vld [vmem:[#allocation32_spill] sm:$0xff] }
 0x568   : > { %v3054_v31 = vsel %vm3025_vm4, %v2918_v58, 0.0  ;;  %6114 = vmatmul.mubr.bf16.gmra.mrb[20].mxu1 %v7765_v54  ;;  %v3130_v54 = vsel %vm3025_vm4, %v2994_v50, 0.0  ;;  %v3147_v59 = vsel %vm3025_vm4, %v3011_v1, 0.0 }
 0x569   : > { %v3310_v41 = vmax.f32 %v3054_v31, 0.0  ;;  %6121 = vmatprep.mubr.bf16.mxu1 %v7774_v49  ;;  %v2798_v49 = vadd.f32 %v12281_v56, %v10415_v2  ;;  %v3386_v58 = vmax.f32 %v3130_v54, 0.0  ;;  %v3009_v31 = vmax.f32 %v10714_v9, 0.0  ;;  %v3873_v2 = vld [vmem:[%s12204_s7 + $0x250] sm:$0xff] }
 0x56a   : > { %v3403_v32 = vmax.f32 %v3147_v59, 0.0  ;;  %v3384_v9 = vmax.f32 %v3128_v38, 0.0  ;;  %v3889_v54 = vld [vmem:[%s12204_s7 + $0x2d0] sm:$0xff]  ;;  %v12288_v59 = vld [vmem:[#allocation35_spill] sm:$0xff] }
 0x56b   : > { %3753 = vmax.xlane.f32.xlu0 %v3389_v21  ;;  %3595 = vmax.xlane.f32.xlu1 %v3310_v41  ;;  %v1466_v8 = vpop.permute.xlu0 %1465  ;;  %v3877_v41 = vld [vmem:[%s12204_s7 + $0x270] sm:$0xff]  ;;  %v7789_v21 = vcombine.low %v3865_v42, %v3869_v29  ;;  %v2996_v3 = vmax.f32 %v2798_v49, 0.0  ;;  %v3145_v22 = vsel %vm3025_vm4, %v3009_v31, 0.0  ;;  %v2854_v37 = vadd.f32 %v12288_v59, %v10815_v60 }
 0x56c   : > { %v2494_v7 = vadd.f32 %v12277_v11, %v1466_v8  ;;  %v7798_v14 = vcombine.high %v3873_v2, %v3877_v41  ;;  %v2822_v8 = vadd.f32 %v12283_v13, %v10711_v53  ;;  %v3015_v11 = vmax.f32 %v2873_v52, 0.0  ;;  %v3893_v56 = vld [vmem:[%s12204_s7 + $0x2f0] sm:$0xff] }
 0x56d   : > { %v3132_v16 = vsel %vm3025_vm4, %v2996_v3, 0.0  ;;  %v7797_v45 = vcombine.low %v3873_v2, %v3877_v41  ;;  %v3897_v3 = vld [vmem:[%s12204_s7 + $0x310] sm:$0xff] }
 0x56e   : > { %v2920_v10 = vmax.f32 %v2494_v7, 0.0  ;;  %v3134_v7 = vsel %vm3025_vm4, %v2998_v12, 0.0  ;;  %v3002_v53 = vmax.f32 %v2822_v8, 0.0  ;;  %v3388_v50 = vmax.f32 %v3132_v16, 0.0  ;;  %v3901_v60 = vld [vmem:[%s12204_s7 + $0x330] sm:$0xff] }
 0x56f   : > { %3765 = vmax.xlane.f32.xlu0 %v3395_v43  ;;  %v2814_v43 = vadd.f32 %v12284_v40, %v10613_v24  ;;  %v3390_v57 = vmax.f32 %v3134_v7, 0.0  ;;  %v3885_v24 = vld [vmem:[%s12204_s7 + $0x2b0] sm:$0xff]  ;;  %v3153_v12 = vsel %vm3025_vm4, %v3017_v23, 0.0  ;;  %v7822_v8 = vcombine.high %v3897_v3, %v3901_v60  ;;  %v12289_v7 = vld [vmem:[#allocation36_spill] sm:$0xff] }
 0x570   : > { %v3056_v51 = vsel %vm3025_vm4, %v2920_v10, 0.0  ;;  %6122 = vmatmul.mubr.bf16.gmra.mrb[24].mxu1 %v7773_v44  ;;  %v1481_v44 = vpop.permute.xlu1 %1480  ;;  %v3151_v10 = vsel %vm3025_vm4, %v3015_v11, 0.0  ;;  %v7806_v28 = vcombine.high %v3881_v55, %v3885_v24  ;;  %v3138_v29 = vsel %vm3025_vm4, %v3002_v53, 0.0  ;;  %v3909_v53 = vld [vmem:[%s12204_s7 + $0x370] sm:$0xff] }
 0x571   : > { %v3312_v39 = vmax.f32 %v3056_v51, 0.0  ;;  %6129 = vmatprep.mubr.bf16.mxu1 %v7782_v46  ;;  %v3401_v46 = vmax.f32 %v3145_v22, 0.0  ;;  %v2505_v51 = vadd.f32 %v12285_v47, %v1481_v44  ;;  %v7805_v49 = vcombine.low %v3881_v55, %v3885_v24  ;;  %v12290_v24 = vld [vmem:[#allocation19_spill] sm:$0xff] }
 0x572   : > { %v3409_v2 = vmax.f32 %v3153_v12, 0.0  ;;  %v3008_v22 = vmax.f32 %v10798_v6, 0.0  ;;  %v2870_v44 = vadd.f32 %v12289_v7, %v10853_v33  ;;  %v3905_v6 = vld [vmem:[%s12204_s7 + $0x350] sm:$0xff]  ;;  %v7821_v0 = vcombine.low %v3897_v3, %v3901_v60 }
 0x573   : > { %3761 = vmax.xlane.f32.xlu0 %v3393_v25  ;;  %3599 = vmax.xlane.f32.xlu1 %v3312_v39  ;;  %v3000_v39 = vmax.f32 %v2814_v43, 0.0  ;;  %v3407_v25 = vmax.f32 %v3151_v10, 0.0  ;;  %v2923_v42 = vmax.f32 %v2505_v51, 0.0  ;;  %v7830_v47 = vcombine.high %v3905_v6, %v3909_v53  ;;  %v3929_v3 = vld [vmem:[%s12204_s7 + $0x410] sm:$0xff] }
 0x574   : > { %v3012_v51 = vmax.f32 %v10837_v30, 0.0  ;;  %v3913_v30 = vld [vmem:[%s12204_s7 + $0x390] sm:$0xff] }
 0x575   : > { %v3059_v17 = vsel %vm3025_vm4, %v2923_v42, 0.0  ;;  %v3917_v42 = vld [vmem:[%s12204_s7 + $0x3b0] sm:$0xff] }
 0x576   : > { %v7837_v12 = vcombine.low %v3913_v30, %v3917_v42  ;;  %v3933_v60 = vld [vmem:[%s12204_s7 + $0x430] sm:$0xff] }
 0x577   : > { %3773 = vmax.xlane.f32.xlu0 %v3399_v4  ;;  %3739 = vmax.xlane.f32.xlu1 %v3382_v19  ;;  %v3394_v4 = vmax.f32 %v3138_v29, 0.0  ;;  %v3136_v19 = vsel %vm3025_vm4, %v3000_v39, 0.0  ;;  %v3937_v7 = vld [vmem:[%s12204_s7 + $0x450] sm:$0xff] }
 0x578   : > { %6130 = vmatmul.mubr.bf16.gmra.mrb[28].mxu1 %v7781_v48  ;;  %v1961_v48 = vpop.permute.xlu1 %1960  ;;  %v3392_v62 = vmax.f32 %v3136_v19, 0.0  ;;  %v7838_v19 = vcombine.high %v3913_v30, %v3917_v42 }
 0x579   : > { %6137 = vmatprep.mubr.bf16.mxu1 %v7790_v36  ;;  %v3006_v36 = vmax.f32 %v10778_v26, 0.0  ;;  %v2889_v1 = vadd.f32 %v12287_v18, %v1961_v48  ;;  %v3315_v26 = vmax.f32 %v3059_v17, 0.0  ;;  %v7829_v48 = vcombine.low %v3905_v6, %v3909_v53  ;;  %v12292_v17 = vld [vmem:[#allocation38_spill] sm:$0xff]  ;;  %v11029_v6 = vld [vmem:[%s12204_s7 + $0x20] sm:$0xff] }
 0x57b   : > { %3769 = vmax.xlane.f32.xlu0 %v3397_v20  ;;  %3747 = vmax.xlane.f32.xlu1 %v3386_v58  ;;  %v3004_v20 = vmax.f32 %v10757_v15, 0.0  ;;  %v7814_v58 = vcombine.high %v3889_v54, %v3893_v56  ;;  %v3142_v38 = vsel %vm3025_vm4, %v3006_v36, 0.0  ;;  %v3019_v31 = vmax.f32 %v2889_v1, 0.0 }
 0x57c   : > { %v3398_v52 = vmax.f32 %v3142_v38, 0.0 }
 0x57d   : > { %v3140_v15 = vsel %vm3025_vm4, %v3004_v20, 0.0  ;;  %v3155_v41 = vsel %vm3025_vm4, %v3019_v31, 0.0 }
 0x57e   : > { %v3411_v13 = vmax.f32 %v3155_v41, 0.0 }
 0x57f   : > { %3781 = vmax.xlane.f32.xlu0 %v3403_v32  ;;  %3743 = vmax.xlane.f32.xlu1 %v3384_v9  ;;  %v1946_v32 = vpop.permute.xlu0 %1945  ;;  %v7813_v9 = vcombine.low %v3889_v54, %v3893_v56 }
 0x580   : > { %6138 = vmatmul.mubr.bf16.gmra.mrb[32].mxu1 %v7789_v21  ;;  %v3010_v21 = vmax.f32 %v2854_v37, 0.0 }
 0x581   : > { %6145 = vmatprep.mubr.bf16.mxu1 %v7798_v14  ;;  %v3396_v14 = vmax.f32 %v3140_v15, 0.0 }
 0x582   : > { %v3146_v11 = vsel %vm3025_vm4, %v3010_v21, 0.0 }
 0x583   : > { %3777 = vmax.xlane.f32.xlu0 %v3401_v46  ;;  %3755 = vmax.xlane.f32.xlu1 %v3390_v57  ;;  %v3546_v40 = vpop.xlane.xlu1 %3545  ;;  %v3402_v43 = vmax.f32 %v3146_v11, 0.0  ;;  %v3144_v46 = vsel %vm3025_vm4, %v3008_v22, 0.0  ;;  %v3014_v57 = vmax.f32 %v2870_v44, 0.0  ;;  %v1476_v16 = vpop.permute.xlu0 %1475  ;;  %v3941_v44 = vld [vmem:[%s12204_s7 + $0x470] sm:$0xff] }
 0x584   : > { %v3400_v10 = vmax.f32 %v3144_v46, 0.0 }
 0x585   : > { %v3150_v55 = vsel %vm3025_vm4, %v3014_v57, 0.0  ;;  %v7862_v57 = vcombine.high %v3937_v7, %v3941_v44 }
 0x587   : > { %3789 = vmax.xlane.f32.xlu0 %v3407_v25  ;;  %3751 = vmax.xlane.f32.xlu1 %v3388_v50  ;;  %v3548_v33 = vpop.xlane.xlu1 %3547  ;;  %v1956_v39 = vpop.permute.xlu0 %1955  ;;  %v3406_v25 = vmax.f32 %v3150_v55, 0.0  ;;  %v3148_v50 = vsel %vm3025_vm4, %v3012_v51, 0.0  ;;  %v3945_v51 = vld [vmem:[%s12204_s7 + $0x490] sm:$0xff] }
 0x588   : > { %6146 = vmatmul.mubr.bf16.gmra.mrb[36].mxu1 %v7797_v45  ;;  %v2502_v45 = vadd.f32 %v12290_v24, %v1476_v16  ;;  %v2886_v18 = vadd.f32 %v12292_v17, %v1956_v39  ;;  %v11024_v16 = vld [vmem:[%s12204_s7] sm:$0xff]  ;;  %v3949_v55 = vld [vmem:[%s12204_s7 + $0x4b0] sm:$0xff] }
 0x589   : > { %6153 = vmatprep.mubr.bf16.mxu1 %v7806_v28  ;;  %v12291_v28 = vld [vmem:[#allocation39_spill] sm:$0xff]  ;;  %v7722_v53 = vcombine.high %v11024_v16, %v11029_v6  ;;  %v7870_v39 = vcombine.high %v3945_v51, %v3949_v55 }
 0x58a   : > { %v2878_v5 = vadd.f32 %v12291_v28, %v1946_v32  ;;  %v2922_v34 = vmax.f32 %v2502_v45, 0.0  ;;  %v7861_v45 = vcombine.low %v3937_v7, %v3941_v44  ;;  %v3957_v28 = vld [vmem:[%s12204_s7 + $0x4f0] sm:$0xff] }
 0x58b   : > { %3785 = vmax.xlane.f32.xlu0 %v3405_v61  ;;  %3763 = vmax.xlane.f32.xlu1 %v3394_v4  ;;  %v3552_v35 = vpop.xlane.xlu1 %3551  ;;  %v3404_v61 = vmax.f32 %v3148_v50, 0.0  ;;  %v3953_v50 = vld [vmem:[%s12204_s7 + $0x4d0] sm:$0xff] }
 0x58c   : > { %v3016_v36 = vmax.f32 %v2878_v5, 0.0  ;;  %v3058_v23 = vsel %vm3025_vm4, %v2922_v34, 0.0  ;;  %5495 = vmatprep.mubr.bf16.mxu0 %v7722_v53  ;;  %v7869_v34 = vcombine.low %v3945_v51, %v3949_v55  ;;  %v4009_v55 = vld [vmem:[%s12204_s7 + $0x690] sm:$0xff] }
 0x58d   : > { %v3314_v56 = vmax.f32 %v3058_v23, 0.0 }
 0x58e   : > { %v3152_v20 = vsel %vm3025_vm4, %v3016_v36, 0.0 }
 0x58f   : > { %3605 = vmax.xlane.f32.xlu0 %v3315_v26  ;;  %3759 = vmax.xlane.f32.xlu1 %v3392_v62  ;;  %v3556_v1 = vpop.xlane.xlu1 %3555  ;;  %v3018_v26 = vmax.f32 %v2886_v18, 0.0  ;;  %v3921_v62 = vld [vmem:[%s12204_s7 + $0x3d0] sm:$0xff]  ;;  %v3408_v31 = vmax.f32 %v3152_v20, 0.0 }
 0x590   : > { %6154 = vmatmul.mubr.bf16.gmra.mrb[40].mxu1 %v7805_v49 }
 0x591   : > { %6161 = vmatprep.mubr.bf16.mxu1 %v7814_v58  ;;  %v3925_v58 = vld [vmem:[%s12204_s7 + $0x3f0] sm:$0xff] }
 0x592   : > { %v7846_v37 = vcombine.high %v3921_v62, %v3925_v58 }
 0x593   : > { %3793 = vmax.xlane.f32.xlu0 %v3409_v2  ;;  %3771 = vmax.xlane.f32.xlu1 %v3398_v52  ;;  %v3154_v52 = vsel %vm3025_vm4, %v3018_v26, 0.0  ;;  %v3560_v2 = vpop.xlane.xlu1 %3559 }
 0x594   : > { %v3410_v41 = vmax.f32 %v3154_v52, 0.0 }
 0x597   : > { %3797 = vmax.xlane.f32.xlu0 %v3411_v13  ;;  %3767 = vmax.xlane.f32.xlu1 %v3396_v14  ;;  %v3564_v27 = vpop.xlane.xlu1 %3563  ;;  %v7854_v13 = vcombine.high %v3929_v3, %v3933_v60 }
 0x598   : > { %6162 = vmatmul.mubr.bf16.gmra.mrb[44].mxu1 %v7813_v9  ;;  %v7845_v9 = vcombine.low %v3921_v62, %v3925_v58 }
 0x599   : > { %6169 = vmatprep.mubr.bf16.mxu1 %v7822_v8 }
 0x59b   : > { %3779 = vmax.xlane.f32.xlu1 %v3402_v43  ;;  %v3568_v11 = vpop.xlane.xlu1 %3567  ;;  %v7853_v43 = vcombine.low %v3929_v3, %v3933_v60  ;;  %v3989_v3 = vld [vmem:[%s12204_s7 + $0x5f0] sm:$0xff] }
 0x59f   : > { %3775 = vmax.xlane.f32.xlu1 %v3400_v10 }
 0x5a0   : > { %6170 = vmatmul.mubr.bf16.gmra.mrb[48].mxu1 %v7821_v0  ;;  %v3572_v0 = vpop.xlane.xlu1 %3571 }
 0x5a1   : > { %6177 = vmatprep.mubr.bf16.mxu1 %v7830_v47 }
 0x5a3   : > { %3787 = vmax.xlane.f32.xlu1 %v3406_v25 }
 0x5a4   : > { %v3544_v29 = vpop.xlane.xlu0 %3543 }
 0x5a5   : > { %v4055_v4 = vpack.c.bf16 %v3546_v40, %v3544_v29 }
 0x5a7   : > { %3783 = vmax.xlane.f32.xlu1 %v3404_v61  ;;  %5464 = vmatpush1.bf16.msra.mxu0 %v4055_v4  ;;  %v3965_v61 = vld [vmem:[%s12204_s7 + $0x530] sm:$0xff] }
 0x5a8   : > { %v3550_v54 = vpop.xlane.xlu0 %3549  ;;  %5465 = vmatprep.subr.bf16.mxu0 %v12233_v63  ;;  %6178 = vmatmul.mubr.bf16.gmra.mrb[52].mxu1 %v7829_v48  ;;  %v3961_v48 = vld [vmem:[%s12204_s7 + $0x510] sm:$0xff] }
 0x5a9   : > { %v4056_v49 = vpack.c.bf16 %v3550_v54, %v3548_v33  ;;  %6185 = vmatprep.mubr.bf16.mxu1 %v7838_v19  ;;  %v7721_v33 = vcombine.low %v11024_v16, %v11029_v6  ;;  %v7877_v19 = vcombine.low %v3953_v50, %v3957_v28  ;;  %v7886_v36 = vcombine.high %v3961_v48, %v3965_v61  ;;  %v3973_v54 = vld [vmem:[%s12204_s7 + $0x570] sm:$0xff]  ;;  %v3819_v16 = vld [vmem:[%s12204_s7 + $0xa0] sm:$0xff] }
 0x5ab   : > { %3603 = vmax.xlane.f32.xlu1 %v3314_v56  ;;  %5466 = vmatpush1.bf16.msra.mxu0 %v4056_v49  ;;  %v7885_v49 = vcombine.low %v3961_v48, %v3965_v61 }
 0x5ac   : > { %v3554_v38 = vpop.xlane.xlu0 %3553  ;;  %5467 = vmatprep.subr.bf16.mxu0 %v12233_v63 }
 0x5ad   : > { %v4057_v59 = vpack.c.bf16 %v3554_v38, %v3552_v35  ;;  %v7878_v35 = vcombine.high %v3953_v50, %v3957_v28  ;;  %v3977_v38 = vld [vmem:[%s12204_s7 + $0x590] sm:$0xff] }
 0x5af   : > { %3791 = vmax.xlane.f32.xlu1 %v3408_v31  ;;  %5468 = vmatpush1.bf16.msra.mxu0 %v4057_v59 }
 0x5b0   : > { %v3558_v15 = vpop.xlane.xlu0 %3557  ;;  %5469 = vmatprep.subr.bf16.mxu0 %v12233_v63  ;;  %6186 = vmatmul.mubr.bf16.gmra.mrb[56].mxu1 %v7837_v12  ;;  %v3981_v12 = vld [vmem:[%s12204_s7 + $0x5b0] sm:$0xff] }
 0x5b1   : > { %v4058_v21 = vpack.c.bf16 %v3558_v15, %v3556_v1  ;;  %6193 = vmatprep.mubr.bf16.mxu1 %v7846_v37  ;;  %v3969_v1 = vld [vmem:[%s12204_s7 + $0x550] sm:$0xff]  ;;  %v7902_v37 = vcombine.high %v3977_v38, %v3981_v12 }
 0x5b2   : > { %v7894_v20 = vcombine.high %v3969_v1, %v3973_v54  ;;  %v7893_v59 = vcombine.low %v3969_v1, %v3973_v54 }
 0x5b3   : > { %3795 = vmax.xlane.f32.xlu1 %v3410_v41  ;;  %5470 = vmatpush1.bf16.msra.mxu0 %v4058_v21  ;;  %v3985_v21 = vld [vmem:[%s12204_s7 + $0x5d0] sm:$0xff] }
 0x5b4   : > { %v3562_v32 = vpop.xlane.xlu0 %3561  ;;  %5471 = vmatprep.subr.bf16.mxu0 %v12233_v63 }
 0x5b5   : > { %v4059_v14 = vpack.c.bf16 %v3562_v32, %v3560_v2  ;;  %v7910_v32 = vcombine.high %v3985_v21, %v3989_v3 }
 0x5b7   : > { %5472 = vmatpush1.bf16.msra.mxu0 %v4059_v14 }
 0x5b8   : > { %v3566_v8 = vpop.xlane.xlu0 %3565  ;;  %5473 = vmatprep.subr.bf16.mxu0 %v12233_v63  ;;  %6194 = vmatmul.mubr.bf16.gmra.mrb[60].mxu1 %v7845_v9 }
 0x5b9   : > { %v4060_v22 = vpack.c.bf16 %v3566_v8, %v3564_v27  ;;  %6201 = vmatprep.mubr.bf16.mxu1 %v7854_v13  ;;  %v7901_v27 = vcombine.low %v3977_v38, %v3981_v12  ;;  %v3993_v8 = vld [vmem:[%s12204_s7 + $0x610] sm:$0xff] }
 0x5bb   : > { %5474 = vmatpush1.bf16.msra.mxu0 %v4060_v22  ;;  %v3997_v22 = vld [vmem:[%s12204_s7 + $0x630] sm:$0xff] }
 0x5bc   : > { %v3570_v40 = vpop.xlane.xlu0 %3569  ;;  %5475 = vmatprep.subr.bf16.mxu0 %v12233_v63  ;;  %v7918_v7 = vcombine.high %v3993_v8, %v3997_v22  ;;  %v7917_v53 = vcombine.low %v3993_v8, %v3997_v22  ;;  %v4049_v8 = vld [vmem:[%s12204_s7 + $0x7d0] sm:$0xff] }
 0x5bd   : > { %v4061_v46 = vpack.c.bf16 %v3570_v40, %v3568_v11  ;;  %v7909_v11 = vcombine.low %v3985_v21, %v3989_v3  ;;  %v4045_v21 = vld [vmem:[%s12204_s7 + $0x7b0] sm:$0xff] }
 0x5be   : > { %v4053_v22 = vld [vmem:[%s12204_s7 + $0x7f0] sm:$0xff] }
 0x5bf   : > { %5476 = vmatpush1.bf16.msra.mxu0 %v4061_v46  ;;  %v4001_v46 = vld [vmem:[%s12204_s7 + $0x650] sm:$0xff] }
 0x5c0   : > { %v3574_v10 = vpop.xlane.xlu0 %3573  ;;  %5477 = vmatprep.subr.bf16.mxu0 %v12233_v63  ;;  %6202 = vmatmul.mubr.bf16.gmra.mrb[64].mxu1 %v7853_v43 }
 0x5c1   : > { %v4062_v47 = vpack.c.bf16 %v3574_v10, %v3572_v0  ;;  %6209 = vmatprep.mubr.bf16.mxu1 %v7862_v57  ;;  %v4005_v57 = vld [vmem:[%s12204_s7 + $0x670] sm:$0xff] }
 0x5c2   : > { %v7926_v0 = vcombine.high %v4001_v46, %v4005_v57 }
 0x5c3   : > { %5478 = vmatpush1.bf16.msra.mxu0 %v4062_v47 }
 0x5c4   : > { %v3578_v24 = vpop.xlane.xlu0 %3577  ;;  %5479 = vmatprep.subr.bf16.mxu0 %v12233_v63 }
 0x5c8   : > { %v3582_v25 = vpop.xlane.xlu0 %3581  ;;  %6210 = vmatmul.mubr.bf16.gmra.mrb[68].mxu1 %v7861_v45 }
 0x5c9   : > { %6217 = vmatprep.mubr.bf16.mxu1 %v7870_v39 }
 0x5cc   : > { %v3586_v5 = vpop.xlane.xlu0 %3585 }
 0x5d0   : > { %v3576_v30 = vpop.xlane.xlu1 %3575  ;;  %v3590_v42 = vpop.xlane.xlu0 %3589  ;;  %6218 = vmatmul.mubr.bf16.gmra.mrb[72].mxu1 %v7869_v34 }
 0x5d1   : > { %v4063_v29 = vpack.c.bf16 %v3578_v24, %v3576_v30  ;;  %6225 = vmatprep.mubr.bf16.mxu1 %v7878_v35  ;;  %v4013_v24 = vld [vmem:[%s12204_s7 + $0x6b0] sm:$0xff] }
 0x5d2   : > { %v7934_v28 = vcombine.high %v4009_v55, %v4013_v24  ;;  %v4017_v35 = vld [vmem:[%s12204_s7 + $0x6d0] sm:$0xff] }
 0x5d3   : > { %5480 = vmatpush1.bf16.msra.mxu0 %v4063_v29  ;;  %v4021_v30 = vld [vmem:[%s12204_s7 + $0x6f0] sm:$0xff]  ;;  %v7933_v29 = vcombine.low %v4009_v55, %v4013_v24 }
 0x5d4   : > { %v3594_v4 = vpop.xlane.xlu0 %3593  ;;  %5481 = vmatprep.subr.bf16.mxu0 %v12233_v63  ;;  %v7942_v61 = vcombine.high %v4017_v35, %v4021_v30  ;;  %v7941_v1 = vcombine.low %v4017_v35, %v4021_v30 }
 0x5d8   : > { %v3580_v23 = vpop.xlane.xlu1 %3579  ;;  %v3598_v17 = vpop.xlane.xlu0 %3597  ;;  %6226 = vmatmul.mubr.bf16.gmra.mrb[76].mxu1 %v7877_v19 }
 0x5d9   : > { %v4064_v18 = vpack.c.bf16 %v3582_v25, %v3580_v23  ;;  %6233 = vmatprep.mubr.bf16.mxu1 %v7886_v36  ;;  %v7925_v25 = vcombine.low %v4001_v46, %v4005_v57  ;;  %v4025_v23 = vld [vmem:[%s12204_s7 + $0x710] sm:$0xff] }
 0x5db   : > { %5482 = vmatpush1.bf16.msra.mxu0 %v4064_v18 }
 0x5dc   : > { %v3602_v56 = vpop.xlane.xlu0 %3601  ;;  %5483 = vmatprep.subr.bf16.mxu0 %v12233_v63 }
 0x5e0   : > { %v3584_v26 = vpop.xlane.xlu1 %3583  ;;  %v3736_v62 = vpop.xlane.xlu0 %3735  ;;  %6234 = vmatmul.mubr.bf16.gmra.mrb[80].mxu1 %v7885_v49 }
 0x5e1   : > { %v4065_v58 = vpack.c.bf16 %v3586_v5, %v3584_v26  ;;  %6241 = vmatprep.mubr.bf16.mxu1 %v7894_v20 }
 0x5e3   : > { %5484 = vmatpush1.bf16.msra.mxu0 %v4065_v58  ;;  %v4037_v58 = vld [vmem:[%s12204_s7 + $0x770] sm:$0xff] }
 0x5e4   : > { %v3742_v31 = vpop.xlane.xlu0 %3741  ;;  %5485 = vmatprep.subr.bf16.mxu0 %v12233_v63 }
 0x5e8   : > { %v3588_v52 = vpop.xlane.xlu1 %3587  ;;  %v3738_v2 = vpop.xlane.xlu0 %3737  ;;  %6242 = vmatmul.mubr.bf16.gmra.mrb[84].mxu1 %v7893_v59 }
 0x5e9   : > { %v4066_v15 = vpack.c.bf16 %v3590_v42, %v3588_v52  ;;  %v4103_v41 = vpack.c.bf16 %v3738_v2, %v3736_v62  ;;  %6249 = vmatprep.mubr.bf16.mxu1 %v7902_v37  ;;  %v4033_v62 = vld [vmem:[%s12204_s7 + $0x750] sm:$0xff] }
 0x5ea   : > { %v7958_v37 = vcombine.high %v4033_v62, %v4037_v58 }
 0x5eb   : > { %5486 = vmatpush1.bf16.msra.mxu0 %v4066_v15  ;;  %6331 = vmatpush1.bf16.msra.mxu1 %v4103_v41  ;;  %v4041_v41 = vld [vmem:[%s12204_s7 + $0x790] sm:$0xff] }
 0x5ec   : > { %v3750_v60 = vpop.xlane.xlu0 %3749  ;;  %5487 = vmatprep.subr.bf16.mxu0 %v12233_v63  ;;  %6332 = vmatprep.subr.bf16.mxu1 %v12233_v63 }
 0x5f0   : > { %v3592_v9 = vpop.xlane.xlu1 %3591  ;;  %6250 = vmatmul.mubr.bf16.gmra.mrb[88].mxu1 %v7901_v27  ;;  %v3746_v13 = vpop.xlane.xlu0 %3745 }
 0x5f1   : > { %v4067_v14 = vpack.c.bf16 %v3594_v4, %v3592_v9  ;;  %6257 = vmatprep.mubr.bf16.mxu1 %v7910_v32  ;;  %v7966_v32 = vcombine.high %v4041_v41, %v4045_v21 }
 0x5f3   : > { %5488 = vmatpush1.bf16.msra.mxu0 %v4067_v14 }
 0x5f4   : > { %5489 = vmatprep.subr.bf16.mxu0 %v12233_v63  ;;  %v3758_v44 = vpop.xlane.xlu0 %3757 }
 0x5f8   : > { %v3596_v40 = vpop.xlane.xlu1 %3595  ;;  %6258 = vmatmul.mubr.bf16.gmra.mrb[92].mxu1 %v7909_v11  ;;  %v3754_v10 = vpop.xlane.xlu0 %3753 }
 0x5f9   : > { %v4068_v43 = vpack.c.bf16 %v3598_v17, %v3596_v40  ;;  %6265 = vmatprep.mubr.bf16.mxu1 %v7918_v7  ;;  %v4029_v17 = vld [vmem:[%s12204_s7 + $0x730] sm:$0xff]  ;;  %v7965_v7 = vcombine.low %v4041_v41, %v4045_v21  ;;  %v7974_v40 = vcombine.high %v4049_v8, %v4053_v22  ;;  %v3843_v41 = vld [vmem:[%s12204_s7 + $0x160] sm:$0xff] }
 0x5fb   : > { %5490 = vmatpush1.bf16.msra.mxu0 %v4068_v43 }
 0x5fc   : > { %5491 = vmatprep.subr.bf16.mxu0 %v12233_v63  ;;  %v3766_v45 = vpop.xlane.xlu0 %3765 }
 0x600   : > { %v3600_v47 = vpop.xlane.xlu1 %3599  ;;  %6266 = vmatmul.mubr.bf16.gmra.mrb[96].mxu1 %v7917_v53  ;;  %v3762_v34 = vpop.xlane.xlu0 %3761  ;;  %v3802_v53 = vld [vmem:[%s12204_s7 + $0x18] sm:$0xff] }
 0x601   : > { %v4069_v51 = vpack.c.bf16 %v3602_v56, %v3600_v47  ;;  %6273 = vmatprep.mubr.bf16.mxu1 %v7926_v0  ;;  %v7950_v56 = vcombine.high %v4025_v23, %v4029_v17  ;;  %v3806_v0 = vld [vmem:[%s12204_s7 + $0x38] sm:$0xff] }
 0x602   : > { %v7728_v24 = vcombine.high %v3802_v53, %v3806_v0 }
 0x603   : > { %5492 = vmatpush1.bf16.msra.mxu0 %v4069_v51  ;;  %v7973_v51 = vcombine.low %v4049_v8, %v4053_v22 }
 0x604   : > { %v3740_v39 = vpop.xlane.xlu1 %3739  ;;  %5493 = vmatprep.subr.bf16.mxu0 %v12233_v63  ;;  %v3774_v4 = vpop.xlane.xlu0 %3773 }
 0x605   : > { %v4104_v50 = vpack.c.bf16 %v3742_v31, %v3740_v39  ;;  %v7949_v31 = vcombine.low %v4025_v23, %v4029_v17  ;;  %v3807_v39 = vld [vmem:[%s12204_s7 + $0x40] sm:$0xff]  ;;  %v3822_v17 = vld [vmem:[%s12204_s7 + $0xb8] sm:$0xff] }
 0x607   : > { %6333 = vmatpush1.bf16.msra.mxu1 %v4104_v50 }
 0x608   : > { %v3748_v5 = vpop.xlane.xlu1 %3747  ;;  %6274 = vmatmul.mubr.bf16.gmra.mrb[100].mxu1 %v7925_v25  ;;  %6334 = vmatprep.subr.bf16.mxu1 %v12233_v63  ;;  %v3770_v49 = vpop.xlane.xlu0 %3769  ;;  %v3811_v25 = vld [vmem:[%s12204_s7 + $0x60] sm:$0xff] }
 0x609   : > { %6281 = vmatprep.mubr.bf16.mxu1 %v7934_v28  ;;  %v4106_v36 = vpack.c.bf16 %v3750_v60, %v3748_v5  ;;  %v7957_v60 = vcombine.low %v4033_v62, %v4037_v58  ;;  %v3830_v62 = vld [vmem:[%s12204_s7 + $0xf8] sm:$0xff]  ;;  %v3831_v58 = vld [vmem:[%s12204_s7 + $0x100] sm:$0xff] }
 0x60c   : > { %v3744_v42 = vpop.xlane.xlu1 %3743  ;;  %v3782_v38 = vpop.xlane.xlu0 %3781 }
 0x60d   : > { %v4105_v48 = vpack.c.bf16 %v3746_v13, %v3744_v42  ;;  %v3810_v42 = vld [vmem:[%s12204_s7 + $0x58] sm:$0xff] }
 0x60f   : > { %6335 = vmatpush1.bf16.msra.mxu1 %v4105_v48 }
 0x610   : > { %v3756_v19 = vpop.xlane.xlu1 %3755  ;;  %6336 = vmatprep.subr.bf16.mxu1 %v12233_v63  ;;  %6282 = vmatmul.mubr.bf16.gmra.mrb[104].mxu1 %v7933_v29  ;;  %v3778_v15 = vpop.xlane.xlu0 %3777 }
 0x611   : > { %6289 = vmatprep.mubr.bf16.mxu1 %v7942_v61  ;;  %v4108_v26 = vpack.c.bf16 %v3758_v44, %v3756_v19  ;;  %v3814_v61 = vld [vmem:[%s12204_s7 + $0x78] sm:$0xff]  ;;  %v7729_v19 = vcombine.low %v3807_v39, %v3811_v25 }
 0x613   : > { %6337 = vmatpush1.bf16.msra.mxu1 %v4106_v36  ;;  %v7736_v36 = vcombine.high %v3810_v42, %v3814_v61 }
 0x614   : > { %v3752_v18 = vpop.xlane.xlu1 %3751  ;;  %6338 = vmatprep.subr.bf16.mxu1 %v12233_v63  ;;  %v3790_v9 = vpop.xlane.xlu0 %3789 }
 0x615   : > { %v4107_v54 = vpack.c.bf16 %v3754_v10, %v3752_v18  ;;  %v3823_v18 = vld [vmem:[%s12204_s7 + $0xc0] sm:$0xff] }
 0x617   : > { %6339 = vmatpush1.bf16.msra.mxu1 %v4107_v54  ;;  %v7735_v54 = vcombine.low %v3810_v42, %v3814_v61  ;;  %v3874_v61 = vld [vmem:[%s12204_s7 + $0x258] sm:$0xff] }
 0x618   : > { %v3764_v20 = vpop.xlane.xlu1 %3763  ;;  %6340 = vmatprep.subr.bf16.mxu1 %v12233_v63  ;;  %6290 = vmatmul.mubr.bf16.gmra.mrb[108].mxu1 %v7941_v1  ;;  %v3786_v43 = vpop.xlane.xlu0 %3785  ;;  %v3827_v1 = vld [vmem:[%s12204_s7 + $0xe0] sm:$0xff] }
 0x619   : > { %6297 = vmatprep.mubr.bf16.mxu1 %v7950_v56  ;;  %v4110_v2 = vpack.c.bf16 %v3766_v45, %v3764_v20  ;;  %v7746_v20 = vcombine.high %v3823_v18, %v3827_v1 }
 0x61b   : > { %6341 = vmatpush1.bf16.msra.mxu1 %v4108_v26  ;;  %v3826_v26 = vld [vmem:[%s12204_s7 + $0xd8] sm:$0xff] }
 0x61c   : > { %v3760_v12 = vpop.xlane.xlu1 %3759  ;;  %6342 = vmatprep.subr.bf16.mxu1 %v12233_v63  ;;  %v3606_v10 = vpop.xlane.xlu0 %3605  ;;  %v7751_v21 = vcombine.low %v3826_v26, %v3830_v62 }
 0x61d   : > { %v4109_v59 = vpack.c.bf16 %v3762_v34, %v3760_v12  ;;  %v7730_v34 = vcombine.high %v3807_v39, %v3811_v25 }
 0x61f   : > { %6343 = vmatpush1.bf16.msra.mxu1 %v4109_v59  ;;  %v7752_v59 = vcombine.high %v3826_v26, %v3830_v62  ;;  %v3890_v26 = vld [vmem:[%s12204_s7 + $0x2d8] sm:$0xff] }
 0x620   : > { %v3772_v52 = vpop.xlane.xlu1 %3771  ;;  %6344 = vmatprep.subr.bf16.mxu1 %v12233_v63  ;;  %6298 = vmatmul.mubr.bf16.gmra.mrb[112].mxu1 %v7949_v31  ;;  %v3794_v5 = vpop.xlane.xlu0 %3793  ;;  %v7745_v31 = vcombine.low %v3823_v18, %v3827_v1  ;;  %v3887_v18 = vld [vmem:[%s12204_s7 + $0x2c0] sm:$0xff]  ;;  %v3894_v62 = vld [vmem:[%s12204_s7 + $0x2f8] sm:$0xff] }
 0x621   : > { %6305 = vmatprep.mubr.bf16.mxu1 %v7958_v37  ;;  %v4112_v13 = vpack.c.bf16 %v3774_v4, %v3772_v52  ;;  %v3815_v4 = vld [vmem:[%s12204_s7 + $0x80] sm:$0xff]  ;;  %v3834_v52 = vld [vmem:[%s12204_s7 + $0x118] sm:$0xff] }
 0x622   : > { %v7738_v23 = vcombine.high %v3815_v4, %v3819_v16  ;;  %v7737_v56 = vcombine.low %v3815_v4, %v3819_v16  ;;  %v3878_v4 = vld [vmem:[%s12204_s7 + $0x278] sm:$0xff]  ;;  %v3879_v16 = vld [vmem:[%s12204_s7 + $0x280] sm:$0xff] }
 0x623   : > { %6345 = vmatpush1.bf16.msra.mxu1 %v4110_v2  ;;  %v3838_v2 = vld [vmem:[%s12204_s7 + $0x138] sm:$0xff]  ;;  %v3891_v1 = vld [vmem:[%s12204_s7 + $0x2e0] sm:$0xff] }
 0x624   : > { %v3768_v3 = vpop.xlane.xlu1 %3767  ;;  %6346 = vmatprep.subr.bf16.mxu1 %v12233_v63  ;;  %v3798_v29 = vpop.xlane.xlu0 %3797  ;;  %v7759_v8 = vcombine.low %v3834_v52, %v3838_v2 }
 0x625   : > { %v4111_v27 = vpack.c.bf16 %v3770_v49, %v3768_v3 }
 0x627   : > { %6347 = vmatpush1.bf16.msra.mxu1 %v4111_v27 }
 0x628   : > { %v3780_v14 = vpop.xlane.xlu1 %3779  ;;  %6348 = vmatprep.subr.bf16.mxu1 %v12233_v63  ;;  %6306 = vmatmul.mubr.bf16.gmra.mrb[116].mxu1 %v7957_v60  ;;  %v7760_v60 = vcombine.high %v3834_v52, %v3838_v2  ;;  %v3898_v52 = vld [vmem:[%s12204_s7 + $0x318] sm:$0xff] }
 0x629   : > { %6313 = vmatprep.mubr.bf16.mxu1 %v7966_v32  ;;  %v4114_v57 = vpack.c.bf16 %v3782_v38, %v3780_v14  ;;  %v3835_v38 = vld [vmem:[%s12204_s7 + $0x120] sm:$0xff]  ;;  %v3842_v32 = vld [vmem:[%s12204_s7 + $0x158] sm:$0xff] }
 0x62a   : > { %v7754_v37 = vcombine.high %v3831_v58, %v3835_v38  ;;  %v7753_v3 = vcombine.low %v3831_v58, %v3835_v38  ;;  %v3847_v14 = vld [vmem:[%s12204_s7 + $0x180] sm:$0xff]  ;;  %v3902_v2 = vld [vmem:[%s12204_s7 + $0x338] sm:$0xff] }
 0x62b   : > { %6349 = vmatpush1.bf16.msra.mxu1 %v4112_v13  ;;  %v3851_v13 = vld [vmem:[%s12204_s7 + $0x1a0] sm:$0xff] }
 0x62c   : > { %v3776_v11 = vpop.xlane.xlu1 %3775  ;;  %6350 = vmatprep.subr.bf16.mxu1 %v12233_v63  ;;  %v3895_v58 = vld [vmem:[%s12204_s7 + $0x300] sm:$0xff] }
 0x62d   : > { %v4113_v44 = vpack.c.bf16 %v3778_v15, %v3776_v11  ;;  %v3839_v15 = vld [vmem:[%s12204_s7 + $0x140] sm:$0xff] }
 0x62e   : > { %v7762_v27 = vcombine.high %v3839_v15, %v3843_v41  ;;  %v7761_v22 = vcombine.low %v3839_v15, %v3843_v41  ;;  %v3899_v38 = vld [vmem:[%s12204_s7 + $0x320] sm:$0xff] }
 0x62f   : > { %6351 = vmatpush1.bf16.msra.mxu1 %v4113_v44  ;;  %v3850_v44 = vld [vmem:[%s12204_s7 + $0x198] sm:$0xff]  ;;  %v3903_v15 = vld [vmem:[%s12204_s7 + $0x340] sm:$0xff] }
 0x630   : > { %v3788_v46 = vpop.xlane.xlu1 %3787  ;;  %6352 = vmatprep.subr.bf16.mxu1 %v12233_v63  ;;  %6314 = vmatmul.mubr.bf16.gmra.mrb[120].mxu1 %v7965_v7  ;;  %v7770_v7 = vcombine.high %v3847_v14, %v3851_v13  ;;  %v3907_v41 = vld [vmem:[%s12204_s7 + $0x360] sm:$0xff] }
 0x631   : > { %6321 = vmatprep.mubr.bf16.mxu1 %v7974_v40  ;;  %v4116_v50 = vpack.c.bf16 %v3790_v9, %v3788_v46  ;;  %v3846_v9 = vld [vmem:[%s12204_s7 + $0x178] sm:$0xff]  ;;  %v3859_v46 = vld [vmem:[%s12204_s7 + $0x1e0] sm:$0xff] }
 0x632   : > { %v7768_v11 = vcombine.high %v3842_v32, %v3846_v9  ;;  %v3854_v40 = vld [vmem:[%s12204_s7 + $0x1b8] sm:$0xff] }
 0x633   : > { %6353 = vmatpush1.bf16.msra.mxu1 %v4114_v57  ;;  %v7767_v57 = vcombine.low %v3842_v32, %v3846_v9  ;;  %v3906_v32 = vld [vmem:[%s12204_s7 + $0x358] sm:$0xff] }
 0x634   : > { %v3784_v47 = vpop.xlane.xlu1 %3783  ;;  %6354 = vmatprep.subr.bf16.mxu1 %v12233_v63  ;;  %v3910_v9 = vld [vmem:[%s12204_s7 + $0x378] sm:$0xff] }
 0x635   : > { %v4115_v55 = vpack.c.bf16 %v3786_v43, %v3784_v47  ;;  %v3855_v43 = vld [vmem:[%s12204_s7 + $0x1c0] sm:$0xff]  ;;  %v3858_v47 = vld [vmem:[%s12204_s7 + $0x1d8] sm:$0xff] }
 0x636   : > { %v7777_v39 = vcombine.low %v3855_v43, %v3859_v46 }
 0x637   : > { %6355 = vmatpush1.bf16.msra.mxu1 %v4115_v55  ;;  %v3863_v55 = vld [vmem:[%s12204_s7 + $0x200] sm:$0xff] }
 0x638   : > { %v3604_v45 = vpop.xlane.xlu1 %3603  ;;  %6356 = vmatprep.subr.bf16.mxu1 %v12233_v63  ;;  %6322 = vmatmul.mubr.bf16.gmra.mrb[124].mxu1 %v7973_v51  ;;  %v3862_v51 = vld [vmem:[%s12204_s7 + $0x1f8] sm:$0xff] }
 0x639   : > { %v4070_v28 = vpack.c.bf16 %v3606_v10, %v3604_v45  ;;  %6362 = vmatprep.mubr.bf16.mxu1 %v7728_v24  ;;  %v7778_v10 = vcombine.high %v3855_v43, %v3859_v46  ;;  %v3867_v24 = vld [vmem:[%s12204_s7 + $0x220] sm:$0xff]  ;;  %v7775_v45 = vcombine.low %v3850_v44, %v3854_v40  ;;  %v7784_v25 = vcombine.high %v3858_v47, %v3862_v51 }
 0x63a   : > { %v7785_v42 = vcombine.low %v3863_v55, %v3867_v24  ;;  %v3919_v43 = vld [vmem:[%s12204_s7 + $0x3c0] sm:$0xff] }
 0x63b   : > { %5494 = vmatpush1.bf16.msra.mxu0 %v4070_v28  ;;  %6357 = vmatpush1.bf16.msra.mxu1 %v4116_v50  ;;  %v7786_v50 = vcombine.high %v3863_v55, %v3867_v24  ;;  %v3866_v28 = vld [vmem:[%s12204_s7 + $0x218] sm:$0xff]  ;;  %v3923_v46 = vld [vmem:[%s12204_s7 + $0x3e0] sm:$0xff] }
 0x63c   : > { %v3792_v35 = vpop.xlane.xlu1 %3791  ;;  %6358 = vmatprep.subr.bf16.mxu1 %v12233_v63  ;;  %v3927_v55 = vld [vmem:[%s12204_s7 + $0x400] sm:$0xff] }
 0x63d   : > { %v4117_v30 = vpack.c.bf16 %v3794_v5, %v3792_v35  ;;  %v3870_v5 = vld [vmem:[%s12204_s7 + $0x238] sm:$0xff]  ;;  %v3875_v35 = vld [vmem:[%s12204_s7 + $0x260] sm:$0xff] }
 0x63e   : > { %5496 = vmatmul.mubr.bf16.vlgmr.msra.gmra.mrb[152].mxu0 %v7721_v33  ;;  %v7727_v33 = vcombine.low %v3802_v53, %v3806_v0  ;;  %v7769_v53 = vcombine.low %v3847_v14, %v3851_v13  ;;  %v7776_v0 = vcombine.high %v3850_v44, %v3854_v40  ;;  %v3911_v14 = vld [vmem:[%s12204_s7 + $0x380] sm:$0xff]  ;;  %v3914_v44 = vld [vmem:[%s12204_s7 + $0x398] sm:$0xff] }
 0x63f   : > { %6359 = vmatpush1.bf16.msra.mxu1 %v4117_v30  ;;  %5503 = vmatprep.mubr.bf16.mxu0 %v7730_v34  ;;  %v3871_v34 = vld [vmem:[%s12204_s7 + $0x240] sm:$0xff]  ;;  %v7783_v30 = vcombine.low %v3858_v47, %v3862_v51  ;;  %v3918_v40 = vld [vmem:[%s12204_s7 + $0x3b8] sm:$0xff] }
 0x640   : > { %v3796_v48 = vpop.xlane.xlu1 %3795  ;;  %6360 = vmatprep.subr.bf16.mxu1 %v12233_v63  ;;  %v3818_v63 = vld [vmem:[%s12204_s7 + $0x98] sm:$0xff]  ;;  %v3915_v13 = vld [vmem:[%s12204_s7 + $0x3a0] sm:$0xff] }
 0x641   : > { %v4118_v6 = vpack.c.bf16 %v3798_v29, %v3796_v48  ;;  %v7744_v49 = vcombine.high %v3818_v63, %v3822_v17  ;;  %v7743_v12 = vcombine.low %v3818_v63, %v3822_v17  ;;  %v7792_v29 = vcombine.high %v3866_v28, %v3870_v5  ;;  %v3882_v63 = vld [vmem:[%s12204_s7 + $0x298] sm:$0xff]  ;;  %v3931_v24 = vld [vmem:[%s12204_s7 + $0x420] sm:$0xff] }
 0x642   : > { %v7794_v48 = vcombine.high %v3871_v34, %v3875_v35  ;;  %v3886_v17 = vld [vmem:[%s12204_s7 + $0x2b8] sm:$0xff] }
 0x643   : > { %6361 = vmatpush1.bf16.msra.mxu1 %v4118_v6  ;;  %v3883_v6 = vld [vmem:[%s12204_s7 + $0x2a0] sm:$0xff]  ;;  %v3922_v47 = vld [vmem:[%s12204_s7 + $0x3d8] sm:$0xff] }
 0x644   : > { %v3926_v51 = vld [vmem:[%s12204_s7 + $0x3f8] sm:$0xff] }
 0x646   : > { %6363 = vmatmul.mubr.bf16.vlgmr.msra.gmra.mrb[0].mxu1 %v7727_v33  ;;  %5504 = vmatmul.mubr.bf16.gmra.mrb[156].mxu0 %v7729_v19  ;;  %v7791_v33 = vcombine.low %v3866_v28, %v3870_v5  ;;  %v7793_v19 = vcombine.low %v3871_v34, %v3875_v35  ;;  %v3930_v28 = vld [vmem:[%s12204_s7 + $0x418] sm:$0xff]  ;;  %v3935_v34 = vld [vmem:[%s12204_s7 + $0x440] sm:$0xff] }
 0x647   : > { %6370 = vmatprep.mubr.bf16.mxu1 %v7736_v36  ;;  %5511 = vmatprep.mubr.bf16.mxu0 %v7738_v23  ;;  %v7800_v36 = vcombine.high %v3874_v61, %v3878_v4  ;;  %v7802_v23 = vcombine.high %v3879_v16, %v3883_v6  ;;  %v3934_v5 = vld [vmem:[%s12204_s7 + $0x438] sm:$0xff]  ;;  %v3939_v35 = vld [vmem:[%s12204_s7 + $0x460] sm:$0xff] }
 0x64e   : > { %6371 = vmatmul.mubr.bf16.gmra.mrb[4].mxu1 %v7735_v54  ;;  %5512 = vmatmul.mubr.bf16.gmra.mrb[160].mxu0 %v7737_v56  ;;  %v7799_v54 = vcombine.low %v3874_v61, %v3878_v4  ;;  %v7801_v56 = vcombine.low %v3879_v16, %v3883_v6  ;;  %v3938_v61 = vld [vmem:[%s12204_s7 + $0x458] sm:$0xff]  ;;  %v3943_v16 = vld [vmem:[%s12204_s7 + $0x480] sm:$0xff] }
 0x64f   : > { %6378 = vmatprep.mubr.bf16.mxu1 %v7744_v49  ;;  %5519 = vmatprep.mubr.bf16.mxu0 %v7746_v20  ;;  %v7808_v49 = vcombine.high %v3882_v63, %v3886_v17  ;;  %v7810_v20 = vcombine.high %v3887_v18, %v3891_v1  ;;  %v3942_v4 = vld [vmem:[%s12204_s7 + $0x478] sm:$0xff]  ;;  %v3947_v6 = vld [vmem:[%s12204_s7 + $0x4a0] sm:$0xff] }
 0x656   : > { %6379 = vmatmul.mubr.bf16.gmra.mrb[8].mxu1 %v7743_v12  ;;  %5520 = vmatmul.mubr.bf16.gmra.mrb[164].mxu0 %v7745_v31  ;;  %v7807_v12 = vcombine.low %v3882_v63, %v3886_v17  ;;  %v7809_v31 = vcombine.low %v3887_v18, %v3891_v1  ;;  %v3946_v63 = vld [vmem:[%s12204_s7 + $0x498] sm:$0xff]  ;;  %v3951_v18 = vld [vmem:[%s12204_s7 + $0x4c0] sm:$0xff] }
 0x657   : > { %6386 = vmatprep.mubr.bf16.mxu1 %v7752_v59  ;;  %5527 = vmatprep.mubr.bf16.mxu0 %v7754_v37  ;;  %v7816_v59 = vcombine.high %v3890_v26, %v3894_v62  ;;  %v7818_v37 = vcombine.high %v3895_v58, %v3899_v38  ;;  %v3950_v17 = vld [vmem:[%s12204_s7 + $0x4b8] sm:$0xff]  ;;  %v3955_v1 = vld [vmem:[%s12204_s7 + $0x4e0] sm:$0xff] }
 0x65e   : > { %6387 = vmatmul.mubr.bf16.gmra.mrb[12].mxu1 %v7751_v21  ;;  %5528 = vmatmul.mubr.bf16.gmra.mrb[168].mxu0 %v7753_v3  ;;  %v7815_v21 = vcombine.low %v3890_v26, %v3894_v62  ;;  %v7817_v3 = vcombine.low %v3895_v58, %v3899_v38  ;;  %v3954_v26 = vld [vmem:[%s12204_s7 + $0x4d8] sm:$0xff]  ;;  %v3959_v58 = vld [vmem:[%s12204_s7 + $0x500] sm:$0xff] }
 0x65f   : > { %6394 = vmatprep.mubr.bf16.mxu1 %v7760_v60  ;;  %5535 = vmatprep.mubr.bf16.mxu0 %v7762_v27  ;;  %v7824_v60 = vcombine.high %v3898_v52, %v3902_v2  ;;  %v7826_v27 = vcombine.high %v3903_v15, %v3907_v41  ;;  %v3958_v62 = vld [vmem:[%s12204_s7 + $0x4f8] sm:$0xff]  ;;  %v3963_v38 = vld [vmem:[%s12204_s7 + $0x520] sm:$0xff] }
 0x666   : > { %6395 = vmatmul.mubr.bf16.gmra.mrb[16].mxu1 %v7759_v8  ;;  %5536 = vmatmul.mubr.bf16.gmra.mrb[172].mxu0 %v7761_v22  ;;  %v7823_v8 = vcombine.low %v3898_v52, %v3902_v2  ;;  %v7825_v22 = vcombine.low %v3903_v15, %v3907_v41  ;;  %v3962_v52 = vld [vmem:[%s12204_s7 + $0x518] sm:$0xff]  ;;  %v3967_v15 = vld [vmem:[%s12204_s7 + $0x540] sm:$0xff] }
 0x667   : > { %6402 = vmatprep.mubr.bf16.mxu1 %v7768_v11  ;;  %5543 = vmatprep.mubr.bf16.mxu0 %v7770_v7  ;;  %v7832_v11 = vcombine.high %v3906_v32, %v3910_v9  ;;  %v7834_v7 = vcombine.high %v3911_v14, %v3915_v13  ;;  %v3966_v2 = vld [vmem:[%s12204_s7 + $0x538] sm:$0xff]  ;;  %v3971_v41 = vld [vmem:[%s12204_s7 + $0x560] sm:$0xff] }
 0x66e   : > { %6403 = vmatmul.mubr.bf16.gmra.mrb[20].mxu1 %v7767_v57  ;;  %5544 = vmatmul.mubr.bf16.gmra.mrb[176].mxu0 %v7769_v53  ;;  %v7831_v57 = vcombine.low %v3906_v32, %v3910_v9  ;;  %v7833_v53 = vcombine.low %v3911_v14, %v3915_v13  ;;  %v3970_v32 = vld [vmem:[%s12204_s7 + $0x558] sm:$0xff]  ;;  %v3975_v14 = vld [vmem:[%s12204_s7 + $0x580] sm:$0xff] }
 0x66f   : > { %6410 = vmatprep.mubr.bf16.mxu1 %v7776_v0  ;;  %5551 = vmatprep.mubr.bf16.mxu0 %v7778_v10  ;;  %v7840_v0 = vcombine.high %v3914_v44, %v3918_v40  ;;  %v7842_v10 = vcombine.high %v3919_v43, %v3923_v46  ;;  %v3974_v9 = vld [vmem:[%s12204_s7 + $0x578] sm:$0xff]  ;;  %v3979_v13 = vld [vmem:[%s12204_s7 + $0x5a0] sm:$0xff] }
 0x676   : > { %6411 = vmatmul.mubr.bf16.gmra.mrb[24].mxu1 %v7775_v45  ;;  %5552 = vmatmul.mubr.bf16.gmra.mrb[180].mxu0 %v7777_v39  ;;  %v7839_v45 = vcombine.low %v3914_v44, %v3918_v40  ;;  %v7841_v39 = vcombine.low %v3919_v43, %v3923_v46  ;;  %v3978_v44 = vld [vmem:[%s12204_s7 + $0x598] sm:$0xff]  ;;  %v3983_v43 = vld [vmem:[%s12204_s7 + $0x5c0] sm:$0xff] }
 0x677   : > { %6418 = vmatprep.mubr.bf16.mxu1 %v7784_v25  ;;  %5559 = vmatprep.mubr.bf16.mxu0 %v7786_v50  ;;  %v7848_v25 = vcombine.high %v3922_v47, %v3926_v51  ;;  %v7850_v50 = vcombine.high %v3927_v55, %v3931_v24  ;;  %v3982_v40 = vld [vmem:[%s12204_s7 + $0x5b8] sm:$0xff]  ;;  %v3987_v46 = vld [vmem:[%s12204_s7 + $0x5e0] sm:$0xff] }
 0x67e   : > { %6419 = vmatmul.mubr.bf16.gmra.mrb[28].mxu1 %v7783_v30  ;;  %5560 = vmatmul.mubr.bf16.gmra.mrb[184].mxu0 %v7785_v42  ;;  %v7847_v30 = vcombine.low %v3922_v47, %v3926_v51  ;;  %v7849_v42 = vcombine.low %v3927_v55, %v3931_v24  ;;  %v3986_v47 = vld [vmem:[%s12204_s7 + $0x5d8] sm:$0xff]  ;;  %v3991_v55 = vld [vmem:[%s12204_s7 + $0x600] sm:$0xff] }
 0x67f   : > { %6426 = vmatprep.mubr.bf16.mxu1 %v7792_v29  ;;  %5567 = vmatprep.mubr.bf16.mxu0 %v7794_v48  ;;  %v7856_v29 = vcombine.high %v3930_v28, %v3934_v5  ;;  %v7858_v48 = vcombine.high %v3935_v34, %v3939_v35  ;;  %v3990_v51 = vld [vmem:[%s12204_s7 + $0x5f8] sm:$0xff]  ;;  %v3995_v24 = vld [vmem:[%s12204_s7 + $0x620] sm:$0xff] }
 0x686   : > { %6427 = vmatmul.mubr.bf16.gmra.mrb[32].mxu1 %v7791_v33  ;;  %5568 = vmatmul.mubr.bf16.gmra.mrb[188].mxu0 %v7793_v19  ;;  %v7855_v33 = vcombine.low %v3930_v28, %v3934_v5  ;;  %v7857_v19 = vcombine.low %v3935_v34, %v3939_v35  ;;  %v3994_v28 = vld [vmem:[%s12204_s7 + $0x618] sm:$0xff]  ;;  %v3999_v34 = vld [vmem:[%s12204_s7 + $0x640] sm:$0xff] }
 0x687   : > { %6434 = vmatprep.mubr.bf16.mxu1 %v7800_v36  ;;  %5575 = vmatprep.mubr.bf16.mxu0 %v7802_v23  ;;  %v7864_v36 = vcombine.high %v3938_v61, %v3942_v4  ;;  %v7866_v23 = vcombine.high %v3943_v16, %v3947_v6  ;;  %v3998_v5 = vld [vmem:[%s12204_s7 + $0x638] sm:$0xff]  ;;  %v4003_v35 = vld [vmem:[%s12204_s7 + $0x660] sm:$0xff] }
 0x68e   : > { %6435 = vmatmul.mubr.bf16.gmra.mrb[36].mxu1 %v7799_v54  ;;  %5576 = vmatmul.mubr.bf16.gmra.mrb[192].mxu0 %v7801_v56  ;;  %v7863_v54 = vcombine.low %v3938_v61, %v3942_v4  ;;  %v7865_v56 = vcombine.low %v3943_v16, %v3947_v6  ;;  %v4002_v61 = vld [vmem:[%s12204_s7 + $0x658] sm:$0xff]  ;;  %v4007_v16 = vld [vmem:[%s12204_s7 + $0x680] sm:$0xff] }
 0x68f   : > { %6442 = vmatprep.mubr.bf16.mxu1 %v7808_v49  ;;  %5583 = vmatprep.mubr.bf16.mxu0 %v7810_v20  ;;  %v7872_v49 = vcombine.high %v3946_v63, %v3950_v17  ;;  %v7874_v20 = vcombine.high %v3951_v18, %v3955_v1  ;;  %v4006_v4 = vld [vmem:[%s12204_s7 + $0x678] sm:$0xff]  ;;  %v4011_v6 = vld [vmem:[%s12204_s7 + $0x6a0] sm:$0xff] }
 0x696   : > { %6443 = vmatmul.mubr.bf16.gmra.mrb[40].mxu1 %v7807_v12  ;;  %5584 = vmatmul.mubr.bf16.gmra.mrb[196].mxu0 %v7809_v31  ;;  %v7871_v12 = vcombine.low %v3946_v63, %v3950_v17  ;;  %v7873_v31 = vcombine.low %v3951_v18, %v3955_v1  ;;  %v4010_v63 = vld [vmem:[%s12204_s7 + $0x698] sm:$0xff]  ;;  %v4015_v18 = vld [vmem:[%s12204_s7 + $0x6c0] sm:$0xff] }
 0x697   : > { %6450 = vmatprep.mubr.bf16.mxu1 %v7816_v59  ;;  %5591 = vmatprep.mubr.bf16.mxu0 %v7818_v37  ;;  %v7880_v59 = vcombine.high %v3954_v26, %v3958_v62  ;;  %v7882_v37 = vcombine.high %v3959_v58, %v3963_v38  ;;  %v4014_v17 = vld [vmem:[%s12204_s7 + $0x6b8] sm:$0xff]  ;;  %v4019_v1 = vld [vmem:[%s12204_s7 + $0x6e0] sm:$0xff] }
 0x69e   : > { %6451 = vmatmul.mubr.bf16.gmra.mrb[44].mxu1 %v7815_v21  ;;  %5592 = vmatmul.mubr.bf16.gmra.mrb[200].mxu0 %v7817_v3  ;;  %v7879_v21 = vcombine.low %v3954_v26, %v3958_v62  ;;  %v7881_v3 = vcombine.low %v3959_v58, %v3963_v38  ;;  %v4018_v26 = vld [vmem:[%s12204_s7 + $0x6d8] sm:$0xff]  ;;  %v4023_v58 = vld [vmem:[%s12204_s7 + $0x700] sm:$0xff] }
 0x69f   : > { %6458 = vmatprep.mubr.bf16.mxu1 %v7824_v60  ;;  %5599 = vmatprep.mubr.bf16.mxu0 %v7826_v27  ;;  %v7888_v60 = vcombine.high %v3962_v52, %v3966_v2  ;;  %v7890_v27 = vcombine.high %v3967_v15, %v3971_v41  ;;  %v4022_v62 = vld [vmem:[%s12204_s7 + $0x6f8] sm:$0xff]  ;;  %v4027_v38 = vld [vmem:[%s12204_s7 + $0x720] sm:$0xff] }
 0x6a6   : > { %6459 = vmatmul.mubr.bf16.gmra.mrb[48].mxu1 %v7823_v8  ;;  %5600 = vmatmul.mubr.bf16.gmra.mrb[204].mxu0 %v7825_v22  ;;  %v7887_v8 = vcombine.low %v3962_v52, %v3966_v2  ;;  %v7889_v22 = vcombine.low %v3967_v15, %v3971_v41  ;;  %v4119_v2 = vld [vmem:[%s12205_s8] sm:$0xff]  ;;  %v7944_v15 = vcombine.high %v4018_v26, %v4022_v62 }
 0x6a7   : > { %6466 = vmatprep.mubr.bf16.mxu1 %v7832_v11  ;;  %5607 = vmatprep.mubr.bf16.mxu0 %v7834_v7  ;;  %v7896_v11 = vcombine.high %v3970_v32, %v3974_v9  ;;  %v7898_v7 = vcombine.high %v3975_v14, %v3979_v13  ;;  %v7946_v41 = vcombine.high %v4023_v58, %v4027_v38 }
 0x6ae   : > { %6467 = vmatmul.mubr.bf16.gmra.mrb[52].mxu1 %v7831_v57  ;;  %5608 = vmatmul.mubr.bf16.gmra.mrb[208].mxu0 %v7833_v53  ;;  %v7895_v57 = vcombine.low %v3970_v32, %v3974_v9  ;;  %v7897_v53 = vcombine.low %v3975_v14, %v3979_v13  ;;  %v4030_v32 = vld [vmem:[%s12204_s7 + $0x738] sm:$0xff]  ;;  %v4031_v9 = vld [vmem:[%s12204_s7 + $0x740] sm:$0xff] }
 0x6af   : > { %6474 = vmatprep.mubr.bf16.mxu1 %v7840_v0  ;;  %5615 = vmatprep.mubr.bf16.mxu0 %v7842_v10  ;;  %v7904_v0 = vcombine.high %v3978_v44, %v3982_v40  ;;  %v7906_v10 = vcombine.high %v3983_v43, %v3987_v46  ;;  %v4035_v14 = vld [vmem:[%s12204_s7 + $0x760] sm:$0xff] }
 0x6b6   : > { %6475 = vmatmul.mubr.bf16.gmra.mrb[56].mxu1 %v7839_v45  ;;  %5616 = vmatmul.mubr.bf16.gmra.mrb[212].mxu0 %v7841_v39  ;;  %v7903_v45 = vcombine.low %v3978_v44, %v3982_v40  ;;  %v7905_v39 = vcombine.low %v3983_v43, %v3987_v46  ;;  %v7943_v40 = vcombine.low %v4018_v26, %v4022_v62  ;;  %v4042_v26 = vld [vmem:[%s12204_s7 + $0x798] sm:$0xff] }
 0x6b7   : > { %6482 = vmatprep.mubr.bf16.mxu1 %v7848_v25  ;;  %5623 = vmatprep.mubr.bf16.mxu0 %v7850_v50  ;;  %v7912_v25 = vcombine.high %v3986_v47, %v3990_v51  ;;  %v7914_v50 = vcombine.high %v3991_v55, %v3995_v24  ;;  %v7945_v43 = vcombine.low %v4023_v58, %v4027_v38  ;;  %v4046_v58 = vld [vmem:[%s12204_s7 + $0x7b8] sm:$0xff]  ;;  %v4047_v38 = vld [vmem:[%s12204_s7 + $0x7c0] sm:$0xff] }
 0x6be   : > { %6483 = vmatmul.mubr.bf16.gmra.mrb[60].mxu1 %v7847_v30  ;;  %5624 = vmatmul.mubr.bf16.gmra.mrb[216].mxu0 %v7849_v42  ;;  %v7911_v30 = vcombine.low %v3986_v47, %v3990_v51  ;;  %v7913_v42 = vcombine.low %v3991_v55, %v3995_v24 }
 0x6bf   : > { %6490 = vmatprep.mubr.bf16.mxu1 %v7856_v29  ;;  %5631 = vmatprep.mubr.bf16.mxu0 %v7858_v48  ;;  %v7920_v29 = vcombine.high %v3994_v28, %v3998_v5  ;;  %v7922_v48 = vcombine.high %v3999_v34, %v4003_v35 }
 0x6c6   : > { %6491 = vmatmul.mubr.bf16.gmra.mrb[64].mxu1 %v7855_v33  ;;  %5632 = vmatmul.mubr.bf16.gmra.mrb[220].mxu0 %v7857_v19  ;;  %v7919_v33 = vcombine.low %v3994_v28, %v3998_v5  ;;  %v7921_v19 = vcombine.low %v3999_v34, %v4003_v35  ;;  %v4038_v5 = vld [vmem:[%s12204_s7 + $0x778] sm:$0xff]  ;;  %v4039_v34 = vld [vmem:[%s12204_s7 + $0x780] sm:$0xff] }
 0x6c7   : > { %6498 = vmatprep.mubr.bf16.mxu1 %v7864_v36  ;;  %5639 = vmatprep.mubr.bf16.mxu0 %v7866_v23  ;;  %v7928_v36 = vcombine.high %v4002_v61, %v4006_v4  ;;  %v7930_v23 = vcombine.high %v4007_v16, %v4011_v6  ;;  %v4043_v35 = vld [vmem:[%s12204_s7 + $0x7a0] sm:$0xff] }
 0x6ce   : > { %6499 = vmatmul.mubr.bf16.gmra.mrb[68].mxu1 %v7863_v54  ;;  %5640 = vmatmul.mubr.bf16.gmra.mrb[224].mxu0 %v7865_v56  ;;  %v7927_v54 = vcombine.low %v4002_v61, %v4006_v4  ;;  %v7929_v56 = vcombine.low %v4007_v16, %v4011_v6  ;;  %v7953_v6 = vcombine.low %v4031_v9, %v4035_v14 }
 0x6cf   : > { %6506 = vmatprep.mubr.bf16.mxu1 %v7872_v49  ;;  %5647 = vmatprep.mubr.bf16.mxu0 %v7874_v20  ;;  %v7936_v49 = vcombine.high %v4010_v63, %v4014_v17  ;;  %v7938_v20 = vcombine.high %v4015_v18, %v4019_v1 }
 0x6d6   : > { %6507 = vmatmul.mubr.bf16.gmra.mrb[72].mxu1 %v7871_v12  ;;  %5648 = vmatmul.mubr.bf16.gmra.mrb[228].mxu0 %v7873_v31 }
 0x6d7   : > { %6514 = vmatprep.mubr.bf16.mxu1 %v7880_v59  ;;  %5655 = vmatprep.mubr.bf16.mxu0 %v7882_v37  ;;  %v7935_v59 = vcombine.low %v4010_v63, %v4014_v17  ;;  %v7937_v37 = vcombine.low %v4015_v18, %v4019_v1  ;;  %v7962_v63 = vcombine.high %v4039_v34, %v4043_v35 }
 0x6de   : > { %6515 = vmatmul.mubr.bf16.gmra.mrb[76].mxu1 %v7879_v21  ;;  %5656 = vmatmul.mubr.bf16.gmra.mrb[232].mxu0 %v7881_v3 }
 0x6df   : > { %6522 = vmatprep.mubr.bf16.mxu1 %v7888_v60  ;;  %5663 = vmatprep.mubr.bf16.mxu0 %v7890_v27  ;;  %v4120_v60 = vld [vmem:[%s12205_s8 + $0x8] sm:$0xff]  ;;  %v4026_v27 = vld [vmem:[%s12204_s7 + $0x718] sm:$0xff] }
 0x6e0   : > { %v7951_v16 = vcombine.low %v4026_v27, %v4030_v32 }
 0x6e6   : > { %6523 = vmatmul.mubr.bf16.gmra.mrb[80].mxu1 %v7887_v8  ;;  %5664 = vmatmul.mubr.bf16.gmra.mrb[236].mxu0 %v7889_v22 }
 0x6e7   : > { %6530 = vmatprep.mubr.bf16.mxu1 %v7896_v11  ;;  %5671 = vmatprep.mubr.bf16.mxu0 %v7898_v7 }
 0x6ee   : > { %6531 = vmatmul.mubr.bf16.gmra.mrb[84].mxu1 %v7895_v57  ;;  %5672 = vmatmul.mubr.bf16.gmra.mrb[240].mxu0 %v7897_v53  ;;  %v4121_v57 = vld [vmem:[%s12205_s8 + $0x10] sm:$0xff] }
 0x6ef   : > { %6538 = vmatprep.mubr.bf16.mxu1 %v7904_v0  ;;  %5679 = vmatprep.mubr.bf16.mxu0 %v7906_v10  ;;  %v7952_v0 = vcombine.high %v4026_v27, %v4030_v32  ;;  %v7954_v10 = vcombine.high %v4031_v9, %v4035_v14  ;;  %v7968_v32 = vcombine.high %v4042_v26, %v4046_v58 }
 0x6f6   : > { %6539 = vmatmul.mubr.bf16.gmra.mrb[88].mxu1 %v7903_v45  ;;  %5680 = vmatmul.mubr.bf16.gmra.mrb[244].mxu0 %v7905_v39 }
 0x6f7   : > { %6546 = vmatprep.mubr.bf16.mxu1 %v7912_v25  ;;  %5687 = vmatprep.mubr.bf16.mxu0 %v7914_v50  ;;  %v4122_v25 = vld [vmem:[%s12205_s8 + $0x18] sm:$0xff] }
 0x6f8   : > { %v4034_v50 = vld [vmem:[%s12204_s7 + $0x758] sm:$0xff] }
 0x6fe   : > { %6547 = vmatmul.mubr.bf16.gmra.mrb[92].mxu1 %v7911_v30  ;;  %5688 = vmatmul.mubr.bf16.gmra.mrb[248].mxu0 %v7913_v42 }
 0x6ff   : > { %6554 = vmatprep.mubr.bf16.mxu1 %v7920_v29  ;;  %5695 = vmatprep.mubr.bf16.mxu0 %v7922_v48 }
 0x706   : > { %6555 = vmatmul.mubr.bf16.gmra.mrb[96].mxu1 %v7919_v33  ;;  %5696 = vmatmul.mubr.bf16.gmra.mrb[252].mxu0 %v7921_v19  ;;  %v4123_v19 = vld [vmem:[%s12205_s8 + $0x20] sm:$0xff] }
 0x707   : > { %6562 = vmatprep.mubr.bf16.mxu1 %v7928_v36  ;;  %5703 = vmatprep.mubr.bf16.mxu0 %v7930_v23  ;;  %v7960_v23 = vcombine.high %v4034_v50, %v4038_v5 }
 0x70e   : > { %6563 = vmatmul.mubr.bf16.gmra.mrb[100].mxu1 %v7927_v54  ;;  %5704 = vmatmul.mubr.bf16.gmra.mrb[0].mxu0 %v7929_v56 }
 0x70f   : > { %6570 = vmatprep.mubr.bf16.mxu1 %v7936_v49  ;;  %5711 = vmatprep.mubr.bf16.mxu0 %v7938_v20  ;;  %v4124_v20 = vld [vmem:[%s12205_s8 + $0x28] sm:$0xff] }
 0x711   : > { %v5497_v12 = vpop.f32.mrb[152].mxu0 }
 0x712   : > { %v5499_v31 = vpop.f32.mrb[153].mxu0  ;;  %v5498_v3 = vadd.f32 %v5497_v12, %v4119_v2  ;;  %v4051_v12 = vld [vmem:[%s12204_s7 + $0x7e0] sm:$0xff] }
 0x713   : > { %v5500_v52 = vpop.f32.mrb[154].mxu0  ;;  %v7970_v9 = vcombine.high %v4047_v38, %v4051_v12 }
 0x714   : > { %v5502_v21 = vpop.f32.mrb[155].mxu0  ;;  %v5501_v7 = vadd.f32 %v5500_v52, %v4120_v60  ;;  %v4125_v60 = vld [vmem:[%s12205_s8 + $0x30] sm:$0xff] }
 0x715   : > { %v7961_v21 = vcombine.low %v4039_v34, %v4043_v35 }
 0x716   : > { %6571 = vmatmul.mubr.bf16.gmra.mrb[104].mxu1 %v7935_v59  ;;  %5712 = vmatmul.mubr.bf16.gmra.mrb[4].mxu0 %v7937_v37 }
 0x717   : > { %6578 = vmatprep.mubr.bf16.mxu1 %v7944_v15  ;;  %5719 = vmatprep.mubr.bf16.mxu0 %v7946_v41  ;;  %v7959_v41 = vcombine.low %v4034_v50, %v4038_v5  ;;  %v9049_v5 = vld [vmem:[%s12206_s9 + $0x4] ss:$16 sps:$4 sm:$0xff]  }
 0x719   : > { %v6364_v13 = vpop.f32.mrb[0].mxu1  ;;  %v5505_v8 = vpop.f32.mrb[156].mxu0 }
 0x71a   : > { %v8560_v22 = vadd.f32 %v6364_v13, %v5498_v3  ;;  %v6366_v11 = vpop.f32.mrb[1].mxu1  ;;  %v5507_v44 = vpop.f32.mrb[157].mxu0  ;;  %v5506_v39 = vadd.f32 %v5505_v8, %v4121_v57 }
 0x71b   : > { %v6367_v46 = vpop.f32.mrb[2].mxu1  ;;  %v5508_v53 = vpop.f32.mrb[158].mxu0  ;;  %v4126_v44 = vld [vmem:[%s12205_s8 + $0x38] sm:$0xff] }
 0x71c   : > { %v8562_v47 = vadd.f32 %v6367_v46, %v5501_v7  ;;  %v6369_v51 = vpop.f32.mrb[3].mxu1  ;;  %v5510_v55 = vpop.f32.mrb[159].mxu0  ;;  %v6619_v24 = vmax.f32 %v8560_v22, 0.0  ;;  %v5509_v29 = vadd.f32 %v5508_v53, %v4122_v25  ;;  %v4054_v46 = vld [vmem:[%s12204_s7 + $0x7f8] sm:$0xff] }
 0x71d   : > { %v7967_v55 = vcombine.low %v4042_v26, %v4046_v58 }
 0x71e   : > { %v6620_v45 = vmax.f32 %v8562_v47, 0.0  ;;  %6579 = vmatmul.mubr.bf16.gmra.mrb[108].mxu1 %v7943_v40  ;;  %5720 = vmatmul.mubr.bf16.gmra.mrb[8].mxu0 %v7945_v43  ;;  %v4050_v43 = vld [vmem:[%s12204_s7 + $0x7d8] sm:$0xff] }
 0x71f   : > { %6586 = vmatprep.mubr.bf16.mxu1 %v7952_v0  ;;  %5727 = vmatprep.mubr.bf16.mxu0 %v7954_v10  ;;  %v7976_v50 = vcombine.high %v4050_v43, %v4054_v46 }
 0x720   : > { %v11509_v28 = vpack.c.bf16 %v6620_v45, %v6619_v24  ;;  %v7969_v24 = vcombine.low %v4047_v38, %v4051_v12  ;;  %v4130_v38 = vld [vmem:[%s12205_s8 + $0x58] sm:$0xff] }
 0x721   : > { %v6372_v30 = vpop.f32.mrb[4].mxu1  ;;  %v5513_v42 = vpop.f32.mrb[160].mxu0 }
 0x722   : > { %v8564_v48 = vadd.f32 %v6372_v30, %v5506_v39  ;;  %v6374_v61 = vpop.f32.mrb[5].mxu1  ;;  %v5515_v4 = vpop.f32.mrb[161].mxu0  ;;  %v5514_v49 = vadd.f32 %v5513_v42, %v4123_v19  ;;  %v4127_v39 = vld [vmem:[%s12205_s8 + $0x40] sm:$0xff] }
 0x723   : > { %v6375_v33 = vpop.f32.mrb[6].mxu1  ;;  %v5516_v36 = vpop.f32.mrb[162].mxu0  ;;  %v4128_v61 = vld [vmem:[%s12205_s8 + $0x48] sm:$0xff] }
 0x724   : > { %v8566_v17 = vadd.f32 %v6375_v33, %v5509_v29  ;;  %v6377_v18 = vpop.f32.mrb[7].mxu1  ;;  %v5518_v1 = vpop.f32.mrb[163].mxu0  ;;  %v6621_v54 = vmax.f32 %v8564_v48, 0.0  ;;  %v5517_v37 = vadd.f32 %v5516_v36, %v4124_v20 }
 0x725   : > { %v4129_v18 = vld [vmem:[%s12205_s8 + $0x50] sm:$0xff] }
 0x726   : > { %v6622_v56 = vmax.f32 %v8566_v17, 0.0  ;;  %6587 = vmatmul.mubr.bf16.gmra.mrb[112].mxu1 %v7951_v16  ;;  %5728 = vmatmul.mubr.bf16.gmra.mrb[12].mxu0 %v7953_v6 }
 0x727   : > { %6594 = vmatprep.mubr.bf16.mxu1 %v7960_v23  ;;  %5735 = vmatprep.mubr.bf16.mxu0 %v7962_v63  ;;  %v7975_v63 = vcombine.low %v4050_v43, %v4054_v46 }
 0x728   : > { %v11529_v62 = vpack.c.bf16 %v6622_v56, %v6621_v54 }
 0x729   : > { %v6380_v31 = vpop.f32.mrb[8].mxu1  ;;  %v5521_v59 = vpop.f32.mrb[164].mxu0 }
 0x72a   : > { %v8568_v52 = vadd.f32 %v6380_v31, %v5514_v49  ;;  %v6382_v2 = vpop.f32.mrb[9].mxu1  ;;  %v5523_v15 = vpop.f32.mrb[165].mxu0  ;;  %v5522_v7 = vadd.f32 %v5521_v59, %v4125_v60 }
 0x72b   : > { %v6383_v3 = vpop.f32.mrb[10].mxu1  ;;  %v5524_v27 = vpop.f32.mrb[166].mxu0 }
 0x72c   : > { %v8570_v14 = vadd.f32 %v6383_v3, %v5517_v37  ;;  %v6385_v13 = vpop.f32.mrb[11].mxu1  ;;  %v5526_v8 = vpop.f32.mrb[167].mxu0  ;;  %v6623_v22 = vmax.f32 %v8568_v52, 0.0  ;;  %v5525_v0 = vadd.f32 %v5524_v27, %v4126_v44 }
 0x72d   : > { %v4132_v8 = vld [vmem:[%s12205_s8 + $0x68] sm:$0xff] }
 0x72e   : > { %v6624_v11 = vmax.f32 %v8570_v14, 0.0  ;;  %6595 = vmatmul.mubr.bf16.gmra.mrb[116].mxu1 %v7959_v41  ;;  %5736 = vmatmul.mubr.bf16.gmra.mrb[16].mxu0 %v7961_v21  ;;  %v4131_v21 = vld [vmem:[%s12205_s8 + $0x60] sm:$0xff] }
 0x72f   : > { %6602 = vmatprep.mubr.bf16.mxu1 %v7968_v32  ;;  %5743 = vmatprep.mubr.bf16.mxu0 %v7970_v9 }
 0x730   : > { %v11546_v40 = vpack.c.bf16 %v6624_v11, %v6623_v22 }
 0x731   : > { %v6388_v57 = vpop.f32.mrb[12].mxu1  ;;  %v5529_v53 = vpop.f32.mrb[168].mxu0 }
 0x732   : > { %v8572_v10 = vadd.f32 %v6388_v57, %v5522_v7  ;;  %v6390_v47 = vpop.f32.mrb[13].mxu1  ;;  %v5531_v51 = vpop.f32.mrb[169].mxu0  ;;  %v5530_v48 = vadd.f32 %v5529_v53, %v4127_v39 }
 0x733   : > { %v6391_v45 = vpop.f32.mrb[14].mxu1  ;;  %v5532_v25 = vpop.f32.mrb[170].mxu0 }
 0x734   : > { %v8574_v34 = vadd.f32 %v6391_v45, %v5525_v0  ;;  %v6393_v35 = vpop.f32.mrb[15].mxu1  ;;  %v5534_v30 = vpop.f32.mrb[171].mxu0  ;;  %v6625_v42 = vmax.f32 %v8572_v10, 0.0  ;;  %v5533_v33 = vadd.f32 %v5532_v25, %v4128_v61  ;;  %v4133_v0 = vld [vmem:[%s12205_s8 + $0x70] sm:$0xff]  ;;  %v4134_v25 = vld [vmem:[%s12205_s8 + $0x78] sm:$0xff]  ;;  %v4135_v61 = vld [vmem:[%s12205_s8 + $0x80] sm:$0xff] }
 0x736   : > { %v6626_v29 = vmax.f32 %v8574_v34, 0.0  ;;  %6603 = vmatmul.mubr.bf16.gmra.mrb[120].mxu1 %v7967_v55  ;;  %5744 = vmatmul.mubr.bf16.gmra.mrb[20].mxu0 %v7969_v24 }
 0x737   : > { %6610 = vmatprep.mubr.bf16.mxu1 %v7976_v50  ;;  %7163 = vmatprep.mubr.bf16.mxu0 %v9049_v5 }
 0x738   : > { %v11563_v4 = vpack.c.bf16 %v6626_v29, %v6625_v42 }
 0x739   : > { %v6396_v16 = vpop.f32.mrb[16].mxu1  ;;  %v5537_v6 = vpop.f32.mrb[172].mxu0 }
 0x73a   : > { %v8576_v19 = vadd.f32 %v6396_v16, %v5530_v48  ;;  %v6398_v36 = vpop.f32.mrb[17].mxu1  ;;  %v5539_v23 = vpop.f32.mrb[173].mxu0  ;;  %v5538_v58 = vadd.f32 %v5537_v6, %v4129_v18 }
 0x73b   : > { %v6399_v17 = vpop.f32.mrb[18].mxu1  ;;  %v5540_v1 = vpop.f32.mrb[174].mxu0 }
 0x73c   : > { %v8578_v54 = vadd.f32 %v6399_v17, %v5533_v33  ;;  %v6401_v56 = vpop.f32.mrb[19].mxu1  ;;  %v5542_v49 = vpop.f32.mrb[175].mxu0  ;;  %v6627_v20 = vmax.f32 %v8576_v19, 0.0  ;;  %v5541_v37 = vadd.f32 %v5540_v1, %v4130_v38  ;;  %v4136_v17 = vld [vmem:[%s12205_s8 + $0x88] sm:$0xff]  ;;  %v4137_v38 = vld [vmem:[%s12205_s8 + $0x90] sm:$0xff] }
 0x73e   : > { %v6628_v26 = vmax.f32 %v8578_v54, 0.0  ;;  %6611 = vmatmul.mubr.bf16.gmra.mrb[124].mxu1 %v7975_v63 }
 0x740   : > { %v11571_v12 = vpack.c.bf16 %v6628_v26, %v6627_v20 }
 0x741   : > { %v6404_v31 = vpop.f32.mrb[20].mxu1  ;;  %v5545_v59 = vpop.f32.mrb[176].mxu0 }
 0x742   : > { %v8580_v52 = vadd.f32 %v6404_v31, %v5538_v58  ;;  %v6406_v2 = vpop.f32.mrb[21].mxu1  ;;  %v5547_v15 = vpop.f32.mrb[177].mxu0  ;;  %v5546_v13 = vadd.f32 %v5545_v59, %v4131_v21  ;;  %v4138_v21 = vld [vmem:[%s12205_s8 + $0x98] sm:$0xff] }
 0x743   : > { %v6407_v41 = vpop.f32.mrb[22].mxu1  ;;  %v5548_v3 = vpop.f32.mrb[178].mxu0 }
 0x744   : > { %v8582_v60 = vadd.f32 %v6407_v41, %v5541_v37  ;;  %v6409_v27 = vpop.f32.mrb[23].mxu1  ;;  %v5550_v32 = vpop.f32.mrb[179].mxu0  ;;  %v6629_v9 = vmax.f32 %v8580_v52, 0.0  ;;  %v5549_v44 = vadd.f32 %v5548_v3, %v4132_v8 }
 0x746   : > { %v6630_v14 = vmax.f32 %v8582_v60, 0.0 }
 0x748   : > { %v11579_v22 = vpack.c.bf16 %v6630_v14, %v6629_v9 }
 0x749   : > { %v6412_v11 = vpop.f32.mrb[24].mxu1  ;;  %v5553_v7 = vpop.f32.mrb[180].mxu0 }
 0x74a   : > { %v8584_v43 = vadd.f32 %v6412_v11, %v5546_v13  ;;  %v6414_v46 = vpop.f32.mrb[25].mxu1  ;;  %v5555_v57 = vpop.f32.mrb[181].mxu0  ;;  %v5554_v39 = vadd.f32 %v5553_v7, %v4133_v0  ;;  %v4139_v11 = vld [vmem:[%s12205_s8 + $0xa0] sm:$0xff] }
 0x74b   : > { %v6415_v53 = vpop.f32.mrb[26].mxu1  ;;  %v5556_v10 = vpop.f32.mrb[182].mxu0 }
 0x74c   : > { %v8586_v47 = vadd.f32 %v6415_v53, %v5549_v44  ;;  %v6417_v51 = vpop.f32.mrb[27].mxu1  ;;  %v5558_v55 = vpop.f32.mrb[183].mxu0  ;;  %v6631_v24 = vmax.f32 %v8584_v43, 0.0  ;;  %v5557_v35 = vadd.f32 %v5556_v10, %v4134_v25  ;;  %v4140_v10 = vld [vmem:[%s12205_s8 + $0xa8] sm:$0xff] }
 0x74e   : > { %v6632_v45 = vmax.f32 %v8586_v47, 0.0 }
 0x750   : > { %v11587_v50 = vpack.c.bf16 %v6632_v45, %v6631_v24 }
 0x751   : > { %v6420_v5 = vpop.f32.mrb[28].mxu1  ;;  %v5561_v34 = vpop.f32.mrb[184].mxu0 }
 0x752   : > { %v8588_v30 = vadd.f32 %v6420_v5, %v5554_v39  ;;  %v6422_v42 = vpop.f32.mrb[29].mxu1  ;;  %v5563_v29 = vpop.f32.mrb[185].mxu0  ;;  %v5562_v63 = vadd.f32 %v5561_v34, %v4135_v61  ;;  %v4141_v5 = vld [vmem:[%s12205_s8 + $0xb0] sm:$0xff] }
 0x753   : > { %v6423_v48 = vpop.f32.mrb[30].mxu1  ;;  %v5564_v16 = vpop.f32.mrb[186].mxu0 }
 0x754   : > { %v8590_v6 = vadd.f32 %v6423_v48, %v5557_v35  ;;  %v6425_v33 = vpop.f32.mrb[31].mxu1  ;;  %v5566_v19 = vpop.f32.mrb[187].mxu0  ;;  %v6633_v36 = vmax.f32 %v8588_v30, 0.0  ;;  %v5565_v56 = vadd.f32 %v5564_v16, %v4136_v17  ;;  %v4142_v16 = vld [vmem:[%s12205_s8 + $0xb8] sm:$0xff] }
 0x756   : > { %v6634_v23 = vmax.f32 %v8590_v6, 0.0 }
 0x758   : > { %v11595_v18 = vpack.c.bf16 %v6634_v23, %v6633_v36 }
 0x759   : > { %v6428_v1 = vpop.f32.mrb[32].mxu1  ;;  %v5569_v54 = vpop.f32.mrb[188].mxu0 }
 0x75a   : > { %v8592_v49 = vadd.f32 %v6428_v1, %v5562_v63  ;;  %v6430_v20 = vpop.f32.mrb[33].mxu1  ;;  %v5571_v26 = vpop.f32.mrb[189].mxu0  ;;  %v5570_v41 = vadd.f32 %v5569_v54, %v4137_v38  ;;  %v4143_v1 = vld [vmem:[%s12205_s8 + $0xc0] sm:$0xff] }
 0x75b   : > { %v6431_v58 = vpop.f32.mrb[34].mxu1  ;;  %v5572_v31 = vpop.f32.mrb[190].mxu0 }
 0x75c   : > { %v8594_v59 = vadd.f32 %v6431_v58, %v5565_v56  ;;  %v6433_v37 = vpop.f32.mrb[35].mxu1  ;;  %v5574_v52 = vpop.f32.mrb[191].mxu0  ;;  %v6635_v2 = vmax.f32 %v8592_v49, 0.0  ;;  %v5573_v32 = vadd.f32 %v5572_v31, %v4138_v21  ;;  %v4144_v31 = vld [vmem:[%s12205_s8 + $0xc8] sm:$0xff] }
 0x75e   : > { %v6636_v15 = vmax.f32 %v8594_v59, 0.0 }
 0x760   : > { %v6755_v3 = vpack.c.bf16 %v6636_v15, %v6635_v2 }
 0x761   : > { %v6436_v60 = vpop.f32.mrb[36].mxu1  ;;  %v5577_v27 = vpop.f32.mrb[192].mxu0 }
 0x762   : > { %v8596_v9 = vadd.f32 %v6436_v60, %v5570_v41  ;;  %v6438_v14 = vpop.f32.mrb[37].mxu1  ;;  %8135 = vmatprep.subr.bf16.mxu0 %v6755_v3  ;;  %v5579_v13 = vpop.f32.mrb[193].mxu0  ;;  %v5578_v0 = vadd.f32 %v5577_v27, %v4139_v11  ;;  %v4145_v3 = vld [vmem:[%s12205_s8 + $0xd0] sm:$0xff]  ;;  %v4146_v11 = vld [vmem:[%s12205_s8 + $0xd8] sm:$0xff] }
 0x763   : > { %v6439_v8 = vpop.f32.mrb[38].mxu1  ;;  %8136 = vmatpush3.bf16.msra.mxu0 %v11509_v28  ;;  %v5580_v7 = vpop.f32.mrb[194].mxu0 }
 0x764   : > { %v8598_v44 = vadd.f32 %v6439_v8, %v5573_v32  ;;  %v6441_v43 = vpop.f32.mrb[39].mxu1  ;;  %v5582_v46 = vpop.f32.mrb[195].mxu0  ;;  %v6637_v57 = vmax.f32 %v8596_v9, 0.0  ;;  %v5581_v24 = vadd.f32 %v5580_v7, %v4140_v10  ;;  %v4147_v10 = vld [vmem:[%s12205_s8 + $0xe0] sm:$0xff] }
 0x766   : > { %v6638_v53 = vmax.f32 %v8598_v44, 0.0 }
 0x768   : > { %v6756_v47 = vpack.c.bf16 %v6638_v53, %v6637_v57 }
 0x769   : > { %v6444_v51 = vpop.f32.mrb[40].mxu1  ;;  %v5585_v55 = vpop.f32.mrb[196].mxu0 }
 0x76a   : > { %v8600_v28 = vadd.f32 %v6444_v51, %v5578_v0  ;;  %v6446_v45 = vpop.f32.mrb[41].mxu1  ;;  %8137 = vmatprep.subr.bf16.mxu0 %v6756_v47  ;;  %v5587_v39 = vpop.f32.mrb[197].mxu0  ;;  %v5586_v61 = vadd.f32 %v5585_v55, %v4141_v5 }
 0x76b   : > { %v6447_v25 = vpop.f32.mrb[42].mxu1  ;;  %8138 = vmatpush3.bf16.msra.mxu0 %v11529_v62  ;;  %v5588_v34 = vpop.f32.mrb[198].mxu0 }
 0x76c   : > { %v8602_v35 = vadd.f32 %v6447_v25, %v5581_v24  ;;  %v6449_v30 = vpop.f32.mrb[43].mxu1  ;;  %v5590_v42 = vpop.f32.mrb[199].mxu0  ;;  %v6639_v29 = vmax.f32 %v8600_v28, 0.0  ;;  %v5589_v36 = vadd.f32 %v5588_v34, %v4142_v16  ;;  %v4148_v25 = vld [vmem:[%s12205_s8 + $0xe8] sm:$0xff] }
 0x76e   : > { %v6640_v48 = vmax.f32 %v8602_v35, 0.0 }
 0x770   : > { %v6757_v6 = vpack.c.bf16 %v6640_v48, %v6639_v29 }
 0x771   : > { %v6452_v33 = vpop.f32.mrb[44].mxu1  ;;  %v5593_v19 = vpop.f32.mrb[200].mxu0 }
 0x772   : > { %v8604_v62 = vadd.f32 %v6452_v33, %v5586_v61  ;;  %v6454_v23 = vpop.f32.mrb[45].mxu1  ;;  %8139 = vmatprep.subr.bf16.mxu0 %v6757_v6  ;;  %v5595_v63 = vpop.f32.mrb[201].mxu0  ;;  %v5594_v38 = vadd.f32 %v5593_v19, %v4143_v1  ;;  %v4149_v61 = vld [vmem:[%s12205_s8 + $0xf0] sm:$0xff] }
 0x773   : > { %v6455_v17 = vpop.f32.mrb[46].mxu1  ;;  %8140 = vmatpush3.bf16.msra.mxu0 %v11546_v40  ;;  %v5596_v54 = vpop.f32.mrb[202].mxu0  ;;  %v4150_v63 = vld [vmem:[%s12205_s8 + $0xf8] sm:$0xff] }
 0x774   : > { %v8606_v56 = vadd.f32 %v6455_v17, %v5589_v36  ;;  %v6457_v49 = vpop.f32.mrb[47].mxu1  ;;  %v5598_v20 = vpop.f32.mrb[203].mxu0  ;;  %v6641_v26 = vmax.f32 %v8604_v62, 0.0  ;;  %v5597_v2 = vadd.f32 %v5596_v54, %v4144_v31 }
 0x776   : > { %v6642_v58 = vmax.f32 %v8606_v56, 0.0 }
 0x778   : > { %v6758_v59 = vpack.c.bf16 %v6642_v58, %v6641_v26  ;;  %v4151_v58 = vld [vmem:[%s12205_s8 + $0x100] sm:$0xff] }
 0x779   : > { %v6460_v37 = vpop.f32.mrb[48].mxu1  ;;  %v5601_v52 = vpop.f32.mrb[204].mxu0 }
 0x77a   : > { %v8608_v40 = vadd.f32 %v6460_v37, %v5594_v38  ;;  %v6462_v15 = vpop.f32.mrb[49].mxu1  ;;  %8141 = vmatprep.subr.bf16.mxu0 %v6758_v59  ;;  %v5603_v41 = vpop.f32.mrb[205].mxu0  ;;  %v5602_v8 = vadd.f32 %v5601_v52, %v4145_v3 }
 0x77b   : > { %v6463_v21 = vpop.f32.mrb[50].mxu1  ;;  %8142 = vmatpush3.bf16.msra.mxu0 %v11563_v4  ;;  %v5604_v60 = vpop.f32.mrb[206].mxu0  ;;  %v4152_v15 = vld [vmem:[%s12205_s8 + $0x108] sm:$0xff] }
 0x77c   : > { %v8610_v27 = vadd.f32 %v6463_v21, %v5597_v2  ;;  %v6465_v32 = vpop.f32.mrb[51].mxu1  ;;  %v5606_v9 = vpop.f32.mrb[207].mxu0  ;;  %v6643_v14 = vmax.f32 %v8608_v40, 0.0  ;;  %v5605_v46 = vadd.f32 %v5604_v60, %v4146_v11  ;;  %v9052_v11 = vld [vmem:[%s12206_s9 + $0x24] ss:$16 sps:$4 sm:$0xff]  }
 0x77d   : > { %v9047_v32 = vld [vmem:[%s12206_s9] ss:$16 sps:$4 sm:$0xff]  }
 0x77e   : > { %v6644_v13 = vmax.f32 %v8610_v27, 0.0 }
 0x780   : > { %v6759_v7 = vpack.c.bf16 %v6644_v13, %v6643_v14  ;;  %v4153_v13 = vld [vmem:[%s12205_s8 + $0x110] sm:$0xff] }
 0x781   : > { %v6468_v44 = vpop.f32.mrb[52].mxu1  ;;  %v5609_v43 = vpop.f32.mrb[208].mxu0 }
 0x782   : > { %v8612_v4 = vadd.f32 %v6468_v44, %v5602_v8  ;;  %v6470_v57 = vpop.f32.mrb[53].mxu1  ;;  %8143 = vmatprep.subr.bf16.mxu0 %v6759_v7  ;;  %v5611_v53 = vpop.f32.mrb[209].mxu0  ;;  %v5610_v39 = vadd.f32 %v5609_v43, %v4147_v10 }
 0x783   : > { %v6471_v0 = vpop.f32.mrb[54].mxu1  ;;  %8144 = vmatpush3.bf16.msra.mxu0 %v11571_v12  ;;  %v5612_v47 = vpop.f32.mrb[210].mxu0 }
 0x784   : > { %v8614_v51 = vadd.f32 %v6471_v0, %v5605_v46  ;;  %v6473_v55 = vpop.f32.mrb[55].mxu1  ;;  %v5614_v24 = vpop.f32.mrb[211].mxu0  ;;  %v6645_v28 = vmax.f32 %v8612_v4, 0.0  ;;  %v5613_v30 = vadd.f32 %v5612_v47, %v4148_v25 }
 0x785   : > { %v9050_v24 = vld [vmem:[%s12206_s9 + $0x20] ss:$16 sps:$4 sm:$0xff]  }
 0x786   : > { %v6646_v45 = vmax.f32 %v8614_v51, 0.0 }
 0x788   : > { %v6760_v5 = vpack.c.bf16 %v6646_v45, %v6645_v28 }
 0x789   : > { %v6476_v34 = vpop.f32.mrb[56].mxu1  ;;  %v5617_v35 = vpop.f32.mrb[212].mxu0 }
 0x78a   : > { %v8616_v12 = vadd.f32 %v6476_v34, %v5610_v39  ;;  %v6478_v42 = vpop.f32.mrb[57].mxu1  ;;  %8145 = vmatprep.subr.bf16.mxu0 %v6760_v5  ;;  %v5619_v29 = vpop.f32.mrb[213].mxu0  ;;  %v5618_v23 = vadd.f32 %v5617_v35, %v4149_v61  ;;  %v4155_v39 = vld [vmem:[%s12205_s8 + $0x120] sm:$0xff] }
 0x78b   : > { %v6479_v48 = vpop.f32.mrb[58].mxu1  ;;  %8146 = vmatpush3.bf16.msra.mxu0 %v11579_v22  ;;  %v5620_v16 = vpop.f32.mrb[214].mxu0  ;;  %v9055_v5 = vld [vmem:[%s12206_s9 + $0x44] ss:$16 sps:$4 sm:$0xff]  }
 0x78c   : > { %v8618_v6 = vadd.f32 %v6479_v48, %v5613_v30  ;;  %v6481_v33 = vpop.f32.mrb[59].mxu1  ;;  %v5622_v19 = vpop.f32.mrb[215].mxu0  ;;  %v6647_v36 = vmax.f32 %v8616_v12, 0.0  ;;  %v5621_v56 = vadd.f32 %v5620_v16, %v4150_v63  ;;  %v4156_v48 = vld [vmem:[%s12205_s8 + $0x128] sm:$0xff] }
 0x78e   : > { %v6648_v62 = vmax.f32 %v8618_v6, 0.0 }
 0x790   : > { %v6761_v17 = vpack.c.bf16 %v6648_v62, %v6647_v36  ;;  %v9053_v62 = vld [vmem:[%s12206_s9 + $0x40] ss:$16 sps:$4 sm:$0xff]  }
 0x791   : > { %v6484_v1 = vpop.f32.mrb[60].mxu1  ;;  %v5625_v54 = vpop.f32.mrb[216].mxu0 }
 0x792   : > { %v8620_v22 = vadd.f32 %v6484_v1, %v5618_v23  ;;  %v6486_v49 = vpop.f32.mrb[61].mxu1  ;;  %8147 = vmatprep.subr.bf16.mxu0 %v6761_v17  ;;  %v5627_v20 = vpop.f32.mrb[217].mxu0  ;;  %v5626_v40 = vadd.f32 %v5625_v54, %v4151_v58  ;;  %v4157_v17 = vld [vmem:[%s12205_s8 + $0x130] sm:$0xff] }
 0x793   : > { %v6487_v26 = vpop.f32.mrb[62].mxu1  ;;  %8148 = vmatpush3.bf16.msra.mxu0 %v11587_v50  ;;  %v5628_v38 = vpop.f32.mrb[218].mxu0  ;;  %v9058_v54 = vld [vmem:[%s12206_s9 + $0x64] ss:$16 sps:$4 sm:$0xff]  }
 0x794   : > { %v8622_v31 = vadd.f32 %v6487_v26, %v5621_v56  ;;  %v6489_v59 = vpop.f32.mrb[63].mxu1  ;;  %v5630_v37 = vpop.f32.mrb[219].mxu0  ;;  %v6649_v52 = vmax.f32 %v8620_v22, 0.0  ;;  %v5629_v60 = vadd.f32 %v5628_v38, %v4152_v15  ;;  %v4158_v38 = vld [vmem:[%s12205_s8 + $0x138] sm:$0xff]  ;;  %v9056_v15 = vld [vmem:[%s12206_s9 + $0x60] ss:$16 sps:$4 sm:$0xff]  }
 0x796   : > { %v6650_v2 = vmax.f32 %v8622_v31, 0.0 }
 0x798   : > { %v6762_v41 = vpack.c.bf16 %v6650_v2, %v6649_v52 }
 0x799   : > { %v6492_v21 = vpop.f32.mrb[64].mxu1  ;;  %v5633_v3 = vpop.f32.mrb[220].mxu0 }
 0x79a   : > { %v8624_v50 = vadd.f32 %v6492_v21, %v5626_v40  ;;  %v6494_v27 = vpop.f32.mrb[65].mxu1  ;;  %8149 = vmatprep.subr.bf16.mxu0 %v6762_v41  ;;  %v5635_v9 = vpop.f32.mrb[221].mxu0  ;;  %v5634_v57 = vadd.f32 %v5633_v3, %v4153_v13  ;;  %v4159_v3 = vld [vmem:[%s12205_s8 + $0x140] sm:$0xff] }
 0x79b   : > { %v6495_v14 = vpop.f32.mrb[66].mxu1  ;;  %8150 = vmatpush3.bf16.msra.mxu0 %v11595_v18  ;;  %v5636_v8 = vpop.f32.mrb[222].mxu0  ;;  %v4154_v18 = vld [vmem:[%s12205_s8 + $0x118] sm:$0xff] }
 0x79c   : > { %v8626_v7 = vadd.f32 %v6495_v14, %v5629_v60  ;;  %v6497_v44 = vpop.f32.mrb[67].mxu1  ;;  %v5638_v43 = vpop.f32.mrb[223].mxu0  ;;  %v6651_v46 = vmax.f32 %v8624_v50, 0.0  ;;  %v5637_v47 = vadd.f32 %v5636_v8, %v4154_v18  ;;  %v9061_v50 = vld [vmem:[%s12206_s9 + $0x84] ss:$16 sps:$4 sm:$0xff]  }
 0x79d   : > { %v9059_v18 = vld [vmem:[%s12206_s9 + $0x80] ss:$16 sps:$4 sm:$0xff]  }
 0x79e   : > { %v6652_v4 = vmax.f32 %v8626_v7, 0.0  ;;  %7164 = vmatmul.mubr.bf16.vlgmr.msra.gmra.mrb[24].mxu0 %v9047_v32 }
 0x79f   : > { %7171 = vmatprep.mubr.bf16.mxu0 %v9052_v11  ;;  %v4160_v11 = vld [vmem:[%s12205_s8 + $0x148] sm:$0xff] }
 0x7a0   : > { %v11665_v53 = vpack.c.bf16 %v6652_v4, %v6651_v46 }
 0x7a1   : > { %v6500_v0 = vpop.f32.mrb[68].mxu1  ;;  %v5641_v10 = vpop.f32.mrb[224].mxu0 }
 0x7a2   : > { %v8628_v51 = vadd.f32 %v6500_v0, %v5634_v57  ;;  %v6502_v55 = vpop.f32.mrb[69].mxu1  ;;  %v5643_v28 = vpop.f32.mrb[225].mxu0  ;;  %v5642_v29 = vadd.f32 %v5641_v10, %v4155_v39 }
 0x7a3   : > { %v6503_v45 = vpop.f32.mrb[70].mxu1  ;;  %v5644_v25 = vpop.f32.mrb[226].mxu0  ;;  %v9064_v55 = vld [vmem:[%s12206_s9 + $0xa4] ss:$16 sps:$4 sm:$0xff]  }
 0x7a4   : > { %v8630_v34 = vadd.f32 %v6503_v45, %v5637_v47  ;;  %v6505_v35 = vpop.f32.mrb[71].mxu1  ;;  %v5646_v30 = vpop.f32.mrb[227].mxu0  ;;  %v6653_v12 = vmax.f32 %v8628_v51, 0.0  ;;  %v5645_v33 = vadd.f32 %v5644_v25, %v4156_v48  ;;  %v4161_v47 = vld [vmem:[%s12205_s8 + $0x150] sm:$0xff] }
 0x7a6   : > { %v6654_v42 = vmax.f32 %v8630_v34, 0.0  ;;  %7172 = vmatmul.mubr.bf16.gmra.mrb[28].mxu0 %v9050_v24  ;;  %v4162_v34 = vld [vmem:[%s12205_s8 + $0x158] sm:$0xff] }
 0x7a7   : > { %7179 = vmatprep.mubr.bf16.mxu0 %v9055_v5 }
 0x7a8   : > { %v11679_v61 = vpack.c.bf16 %v6654_v42, %v6653_v12 }
 0x7a9   : > { %v6508_v16 = vpop.f32.mrb[72].mxu1  ;;  %v5649_v6 = vpop.f32.mrb[228].mxu0 }
 0x7aa   : > { %v8632_v19 = vadd.f32 %v6508_v16, %v5642_v29  ;;  %v6510_v36 = vpop.f32.mrb[73].mxu1  ;;  %v5651_v23 = vpop.f32.mrb[229].mxu0  ;;  %v5650_v58 = vadd.f32 %v5649_v6, %v4157_v17  ;;  %v9062_v16 = vld [vmem:[%s12206_s9 + $0xa0] ss:$16 sps:$4 sm:$0xff]  }
 0x7ab   : > { %v6511_v63 = vpop.f32.mrb[74].mxu1  ;;  %v5652_v1 = vpop.f32.mrb[230].mxu0 }
 0x7ac   : > { %v8634_v56 = vadd.f32 %v6511_v63, %v5645_v33  ;;  %v6513_v22 = vpop.f32.mrb[75].mxu1  ;;  %v5654_v49 = vpop.f32.mrb[231].mxu0  ;;  %v6655_v20 = vmax.f32 %v8632_v19, 0.0  ;;  %v5653_v52 = vadd.f32 %v5652_v1, %v4158_v38  ;;  %v4163_v19 = vld [vmem:[%s12205_s8 + $0x160] sm:$0xff] }
 0x7ad   : > { %v4164_v22 = vld [vmem:[%s12205_s8 + $0x168] sm:$0xff] }
 0x7ae   : > { %v6656_v26 = vmax.f32 %v8634_v56, 0.0  ;;  %7180 = vmatmul.mubr.bf16.gmra.mrb[32].mxu0 %v9053_v62  ;;  %v9067_v62 = vld [vmem:[%s12206_s9 + $0xc4] ss:$16 sps:$4 sm:$0xff]  }
 0x7af   : > { %7187 = vmatprep.mubr.bf16.mxu0 %v9058_v54 }
 0x7b0   : > { %v11693_v31 = vpack.c.bf16 %v6656_v26, %v6655_v20 }
 0x7b1   : > { %v6516_v59 = vpop.f32.mrb[76].mxu1  ;;  %v5657_v37 = vpop.f32.mrb[232].mxu0 }
 0x7b2   : > { %v8636_v2 = vadd.f32 %v6516_v59, %v5650_v58  ;;  %v6518_v40 = vpop.f32.mrb[77].mxu1  ;;  %v5659_v41 = vpop.f32.mrb[233].mxu0  ;;  %v5658_v8 = vadd.f32 %v5657_v37, %v4159_v3  ;;  %v9065_v37 = vld [vmem:[%s12206_s9 + $0xc0] ss:$16 sps:$4 sm:$0xff]  }
 0x7b3   : > { %v6519_v21 = vpop.f32.mrb[78].mxu1  ;;  %v5660_v60 = vpop.f32.mrb[234].mxu0  ;;  %v4165_v40 = vld [vmem:[%s12205_s8 + $0x170] sm:$0xff] }
 0x7b4   : > { %v8638_v27 = vadd.f32 %v6519_v21, %v5653_v52  ;;  %v6521_v32 = vpop.f32.mrb[79].mxu1  ;;  %v5662_v9 = vpop.f32.mrb[235].mxu0  ;;  %v6657_v14 = vmax.f32 %v8636_v2, 0.0  ;;  %v5661_v46 = vadd.f32 %v5660_v60, %v4160_v11  ;;  %v9070_v41 = vld [vmem:[%s12206_s9 + $0xe4] ss:$16 sps:$4 sm:$0xff]  }
 0x7b5   : > { %v4166_v9 = vld [vmem:[%s12205_s8 + $0x178] sm:$0xff] }
 0x7b6   : > { %v6658_v13 = vmax.f32 %v8638_v27, 0.0  ;;  %7188 = vmatmul.mubr.bf16.gmra.mrb[36].mxu0 %v9056_v15 }
 0x7b7   : > { %7195 = vmatprep.mubr.bf16.mxu0 %v9061_v50 }
 0x7b8   : > { %v11707_v7 = vpack.c.bf16 %v6658_v13, %v6657_v14 }
 0x7b9   : > { %v6524_v44 = vpop.f32.mrb[80].mxu1  ;;  %v5665_v43 = vpop.f32.mrb[236].mxu0 }
 0x7ba   : > { %v8640_v4 = vadd.f32 %v6524_v44, %v5658_v8  ;;  %v6526_v57 = vpop.f32.mrb[81].mxu1  ;;  %v5667_v0 = vpop.f32.mrb[237].mxu0  ;;  %v5666_v5 = vadd.f32 %v5665_v43, %v4161_v47 }
 0x7bb   : > { %v6527_v10 = vpop.f32.mrb[82].mxu1  ;;  %v5668_v51 = vpop.f32.mrb[238].mxu0 }
 0x7bc   : > { %v8642_v24 = vadd.f32 %v6527_v10, %v5661_v46  ;;  %v6529_v28 = vpop.f32.mrb[83].mxu1  ;;  %v5670_v45 = vpop.f32.mrb[239].mxu0  ;;  %v6659_v39 = vmax.f32 %v8640_v4, 0.0  ;;  %v5669_v42 = vadd.f32 %v5668_v51, %v4162_v34  ;;  %v9068_v46 = vld [vmem:[%s12206_s9 + $0xe0] ss:$16 sps:$4 sm:$0xff]  }
 0x7bd   : > { %v9073_v10 = vld [vmem:[%s12206_s9 + $0x104] ss:$16 sps:$4 sm:$0xff]  }
 0x7be   : > { %v6660_v25 = vmax.f32 %v8642_v24, 0.0  ;;  %7196 = vmatmul.mubr.bf16.gmra.mrb[40].mxu0 %v9059_v18  ;;  %v4167_v18 = vld [vmem:[%s12205_s8 + $0x180] sm:$0xff] }
 0x7bf   : > { %7203 = vmatprep.mubr.bf16.mxu0 %v9064_v55 }
 0x7c0   : > { %v11721_v35 = vpack.c.bf16 %v6660_v25, %v6659_v39  ;;  %v4168_v39 = vld [vmem:[%s12205_s8 + $0x188] sm:$0xff] }
 0x7c1   : > { %v6532_v30 = vpop.f32.mrb[84].mxu1  ;;  %v5673_v12 = vpop.f32.mrb[240].mxu0 }
 0x7c2   : > { %v8644_v29 = vadd.f32 %v6532_v30, %v5666_v5  ;;  %v6534_v48 = vpop.f32.mrb[85].mxu1  ;;  %v5675_v6 = vpop.f32.mrb[241].mxu0  ;;  %v5674_v56 = vadd.f32 %v5673_v12, %v4163_v19  ;;  %v9076_v19 = vld [vmem:[%s12206_s9 + $0x124] ss:$16 sps:$4 sm:$0xff]  }
 0x7c3   : > { %v6535_v33 = vpop.f32.mrb[86].mxu1  ;;  %v5676_v36 = vpop.f32.mrb[242].mxu0  ;;  %v4169_v6 = vld [vmem:[%s12205_s8 + $0x190] sm:$0xff] }
 0x7c4   : > { %v8646_v23 = vadd.f32 %v6535_v33, %v5669_v42  ;;  %v6537_v63 = vpop.f32.mrb[87].mxu1  ;;  %v5678_v17 = vpop.f32.mrb[243].mxu0  ;;  %v6661_v1 = vmax.f32 %v8644_v29, 0.0  ;;  %v5677_v58 = vadd.f32 %v5676_v36, %v4164_v22  ;;  %v9071_v29 = vld [vmem:[%s12206_s9 + $0x100] ss:$16 sps:$4 sm:$0xff]  }
 0x7c6   : > { %v6662_v54 = vmax.f32 %v8646_v23, 0.0  ;;  %7204 = vmatmul.mubr.bf16.gmra.mrb[44].mxu0 %v9062_v16 }
 0x7c7   : > { %7211 = vmatprep.mubr.bf16.mxu0 %v9067_v62 }
 0x7c8   : > { %v11735_v49 = vpack.c.bf16 %v6662_v54, %v6661_v1  ;;  %v4170_v54 = vld [vmem:[%s12205_s8 + $0x198] sm:$0xff] }
 0x7c9   : > { %v6540_v20 = vpop.f32.mrb[88].mxu1  ;;  %v5681_v26 = vpop.f32.mrb[244].mxu0 }
 0x7ca   : > { %v8648_v38 = vadd.f32 %v6540_v20, %v5674_v56  ;;  %v6542_v59 = vpop.f32.mrb[89].mxu1  ;;  %v5683_v52 = vpop.f32.mrb[245].mxu0  ;;  %v5682_v32 = vadd.f32 %v5681_v26, %v4165_v40 }
 0x7cb   : > { %v6543_v2 = vpop.f32.mrb[90].mxu1  ;;  %v5684_v15 = vpop.f32.mrb[246].mxu0  ;;  %v9074_v59 = vld [vmem:[%s12206_s9 + $0x120] ss:$16 sps:$4 sm:$0xff]  }
 0x7cc   : > { %v8650_v21 = vadd.f32 %v6543_v2, %v5677_v58  ;;  %v6545_v3 = vpop.f32.mrb[91].mxu1  ;;  %v5686_v60 = vpop.f32.mrb[247].mxu0  ;;  %v6663_v50 = vmax.f32 %v8648_v38, 0.0  ;;  %v5685_v11 = vadd.f32 %v5684_v15, %v4166_v9  ;;  %v4171_v2 = vld [vmem:[%s12205_s8 + $0x1a0] sm:$0xff] }
 0x7cd   : > { %v9079_v15 = vld [vmem:[%s12206_s9 + $0x144] ss:$16 sps:$4 sm:$0xff]  }
 0x7ce   : > { %v6664_v27 = vmax.f32 %v8650_v21, 0.0  ;;  %7212 = vmatmul.mubr.bf16.gmra.mrb[48].mxu0 %v9065_v37 }
 0x7cf   : > { %7219 = vmatprep.mubr.bf16.mxu0 %v9070_v41 }
 0x7d0   : > { %v11749_v14 = vpack.c.bf16 %v6664_v27, %v6663_v50 }
 0x7d1   : > { %v6548_v13 = vpop.f32.mrb[92].mxu1  ;;  %v5689_v8 = vpop.f32.mrb[248].mxu0 }
 0x7d2   : > { %v8652_v44 = vadd.f32 %v6548_v13, %v5682_v32  ;;  %v6550_v43 = vpop.f32.mrb[93].mxu1  ;;  %v5691_v4 = vpop.f32.mrb[249].mxu0  ;;  %v5690_v45 = vadd.f32 %v5689_v8, %v4167_v18 }
 0x7d3   : > { %v6551_v57 = vpop.f32.mrb[94].mxu1  ;;  %v5692_v0 = vpop.f32.mrb[250].mxu0  ;;  %v9077_v43 = vld [vmem:[%s12206_s9 + $0x140] ss:$16 sps:$4 sm:$0xff]  }
 0x7d4   : > { %v8654_v47 = vadd.f32 %v6551_v57, %v5685_v11  ;;  %v6553_v51 = vpop.f32.mrb[95].mxu1  ;;  %v5694_v55 = vpop.f32.mrb[251].mxu0  ;;  %v6665_v24 = vmax.f32 %v8652_v44, 0.0  ;;  %v5693_v30 = vadd.f32 %v5692_v0, %v4168_v39  ;;  %v4173_v57 = vld [vmem:[%s12205_s8 + $0x1b0] sm:$0xff] }
 0x7d5   : > { %v9082_v0 = vld [vmem:[%s12206_s9 + $0x164] ss:$16 sps:$4 sm:$0xff]  }
 0x7d6   : > { %v6666_v28 = vmax.f32 %v8654_v47, 0.0  ;;  %7220 = vmatmul.mubr.bf16.gmra.mrb[52].mxu0 %v9068_v46 }
 0x7d7   : > { %7227 = vmatprep.mubr.bf16.mxu0 %v9073_v10 }
 0x7d8   : > { %v11763_v25 = vpack.c.bf16 %v6666_v28, %v6665_v24 }
 0x7d9   : > { %v6556_v5 = vpop.f32.mrb[96].mxu1  ;;  %v5697_v34 = vpop.f32.mrb[252].mxu0 }
 0x7da   : > { %v8656_v12 = vadd.f32 %v6556_v5, %v5690_v45  ;;  %v6558_v42 = vpop.f32.mrb[97].mxu1  ;;  %v5699_v48 = vpop.f32.mrb[253].mxu0  ;;  %v5698_v1 = vadd.f32 %v5697_v34, %v4169_v6 }
 0x7db   : > { %v6559_v16 = vpop.f32.mrb[98].mxu1  ;;  %v5700_v33 = vpop.f32.mrb[254].mxu0  ;;  %v9080_v42 = vld [vmem:[%s12206_s9 + $0x160] ss:$16 sps:$4 sm:$0xff]  }
 0x7dc   : > { %v8658_v36 = vadd.f32 %v6559_v16, %v5693_v30  ;;  %v6561_v62 = vpop.f32.mrb[99].mxu1  ;;  %v5702_v23 = vpop.f32.mrb[255].mxu0  ;;  %v6667_v63 = vmax.f32 %v8656_v12, 0.0  ;;  %v5701_v26 = vadd.f32 %v5700_v33, %v4170_v54  ;;  %v4175_v16 = vld [vmem:[%s12205_s8 + $0x1c0] sm:$0xff] }
 0x7dd   : > { %v9085_v33 = vld [vmem:[%s12206_s9 + $0x184] ss:$16 sps:$4 sm:$0xff]  }
 0x7de   : > { %v6668_v17 = vmax.f32 %v8658_v36, 0.0  ;;  %7228 = vmatmul.mubr.bf16.gmra.mrb[56].mxu0 %v9071_v29 }
 0x7df   : > { %7235 = vmatprep.mubr.bf16.mxu0 %v9076_v19 }
 0x7e0   : > { %v6771_v56 = vpack.c.bf16 %v6668_v17, %v6667_v63 }
 0x7e1   : > { %v6564_v22 = vpop.f32.mrb[100].mxu1  ;;  %v5705_v20 = vpop.f32.mrb[0].mxu0 }
 0x7e2   : > { %v8660_v58 = vadd.f32 %v6564_v22, %v5698_v1  ;;  %v6566_v38 = vpop.f32.mrb[101].mxu1  ;;  %8247 = vmatprep.subr.bf16.mxu0 %v6771_v56  ;;  %v5707_v37 = vpop.f32.mrb[1].mxu0  ;;  %v5706_v27 = vadd.f32 %v5705_v20, %v4171_v2  ;;  %v9088_v2 = vld [vmem:[%s12206_s9 + $0x1a4] ss:$16 sps:$4 sm:$0xff]  }
 0x7e3   : > { %v6567_v52 = vpop.f32.mrb[102].mxu1  ;;  %8248 = vmatpush3.bf16.msra.mxu0 %v11665_v53  ;;  %v5708_v40 = vpop.f32.mrb[2].mxu0  ;;  %v4172_v53 = vld [vmem:[%s12205_s8 + $0x1a8] sm:$0xff]  ;;  %v4177_v37 = vld [vmem:[%s12205_s8 + $0x1d0] sm:$0xff] }
 0x7e4   : > { %v8662_v41 = vadd.f32 %v6567_v52, %v5701_v26  ;;  %v6569_v21 = vpop.f32.mrb[103].mxu1  ;;  %v5710_v3 = vpop.f32.mrb[3].mxu0  ;;  %v6669_v60 = vmax.f32 %v8660_v58, 0.0  ;;  %v5709_v8 = vadd.f32 %v5708_v40, %v4172_v53  ;;  %v9083_v58 = vld [vmem:[%s12206_s9 + $0x180] ss:$16 sps:$4 sm:$0xff]  }
 0x7e6   : > { %v6670_v50 = vmax.f32 %v8662_v41, 0.0  ;;  %7236 = vmatmul.mubr.bf16.gmra.mrb[60].mxu0 %v9074_v59 }
 0x7e7   : > { %7243 = vmatprep.mubr.bf16.mxu0 %v9079_v15 }
 0x7e8   : > { %v6772_v32 = vpack.c.bf16 %v6670_v50, %v6669_v60 }
 0x7e9   : > { %v6572_v9 = vpop.f32.mrb[104].mxu1  ;;  %v5713_v13 = vpop.f32.mrb[4].mxu0 }
 0x7ea   : > { %v8664_v11 = vadd.f32 %v6572_v9, %v5706_v27  ;;  %v6574_v44 = vpop.f32.mrb[105].mxu1  ;;  %8249 = vmatprep.subr.bf16.mxu0 %v6772_v32  ;;  %v5715_v46 = vpop.f32.mrb[5].mxu0  ;;  %v5714_v28 = vadd.f32 %v5713_v13, %v4173_v57 }
 0x7eb   : > { %v6575_v4 = vpop.f32.mrb[106].mxu1  ;;  %8250 = vmatpush3.bf16.msra.mxu0 %v11679_v61  ;;  %v5716_v18 = vpop.f32.mrb[6].mxu0  ;;  %v4174_v61 = vld [vmem:[%s12205_s8 + $0x1b8] sm:$0xff] }
 0x7ec   : > { %v8666_v10 = vadd.f32 %v6575_v4, %v5709_v8  ;;  %v6577_v47 = vpop.f32.mrb[107].mxu1  ;;  %v5718_v51 = vpop.f32.mrb[7].mxu0  ;;  %v6671_v55 = vmax.f32 %v8664_v11, 0.0  ;;  %v5717_v34 = vadd.f32 %v5716_v18, %v4174_v61  ;;  %v9086_v8 = vld [vmem:[%s12206_s9 + $0x1a0] ss:$16 sps:$4 sm:$0xff]  }
 0x7ed   : > { %v9091_v4 = vld [vmem:[%s12206_s9 + $0x1c4] ss:$16 sps:$4 sm:$0xff]  }
 0x7ee   : > { %v6672_v24 = vmax.f32 %v8666_v10, 0.0  ;;  %7244 = vmatmul.mubr.bf16.gmra.mrb[64].mxu0 %v9077_v43  ;;  %v4179_v43 = vld [vmem:[%s12205_s8 + $0x1e0] sm:$0xff] }
 0x7ef   : > { %7251 = vmatprep.mubr.bf16.mxu0 %v9082_v0 }
 0x7f0   : > { %v6773_v45 = vpack.c.bf16 %v6672_v24, %v6671_v55 }
 0x7f1   : > { %v6580_v39 = vpop.f32.mrb[108].mxu1  ;;  %v5721_v5 = vpop.f32.mrb[8].mxu0 }
 0x7f2   : > { %v8668_v30 = vadd.f32 %v6580_v39, %v5714_v28  ;;  %v6582_v12 = vpop.f32.mrb[109].mxu1  ;;  %8251 = vmatprep.subr.bf16.mxu0 %v6773_v45  ;;  %v5723_v29 = vpop.f32.mrb[9].mxu0  ;;  %v5722_v17 = vadd.f32 %v5721_v5, %v4175_v16  ;;  %v9089_v5 = vld [vmem:[%s12206_s9 + $0x1c0] ss:$16 sps:$4 sm:$0xff]  }
 0x7f3   : > { %v6583_v48 = vpop.f32.mrb[110].mxu1  ;;  %8252 = vmatpush3.bf16.msra.mxu0 %v11693_v31  ;;  %v5724_v6 = vpop.f32.mrb[10].mxu0  ;;  %v4176_v31 = vld [vmem:[%s12205_s8 + $0x1c8] sm:$0xff]  ;;  %v4181_v12 = vld [vmem:[%s12205_s8 + $0x1f0] sm:$0xff] }
 0x7f4   : > { %v8670_v19 = vadd.f32 %v6583_v48, %v5717_v34  ;;  %v6585_v36 = vpop.f32.mrb[111].mxu1  ;;  %v5726_v62 = vpop.f32.mrb[11].mxu0  ;;  %v6673_v23 = vmax.f32 %v8668_v30, 0.0  ;;  %v5725_v22 = vadd.f32 %v5724_v6, %v4176_v31  ;;  %v9094_v29 = vld [vmem:[%s12206_s9 + $0x1e4] ss:$16 sps:$4 sm:$0xff]  }
 0x7f6   : > { %v6674_v63 = vmax.f32 %v8670_v19, 0.0  ;;  %7252 = vmatmul.mubr.bf16.gmra.mrb[68].mxu0 %v9080_v42 }
 0x7f7   : > { %7259 = vmatprep.mubr.bf16.mxu0 %v9085_v33 }
 0x7f8   : > { %v6774_v1 = vpack.c.bf16 %v6674_v63, %v6673_v23 }
 0x7f9   : > { %v6588_v54 = vpop.f32.mrb[112].mxu1  ;;  %v5729_v56 = vpop.f32.mrb[12].mxu0 }
 0x7fa   : > { %v8672_v20 = vadd.f32 %v6588_v54, %v5722_v17  ;;  %v6590_v26 = vpop.f32.mrb[113].mxu1  ;;  %8253 = vmatprep.subr.bf16.mxu0 %v6774_v1  ;;  %v5731_v38 = vpop.f32.mrb[13].mxu0  ;;  %v5730_v60 = vadd.f32 %v5729_v56, %v4177_v37  ;;  %v9092_v1 = vld [vmem:[%s12206_s9 + $0x1e0] ss:$16 sps:$4 sm:$0xff]   ;;  %v9097_v56 = vld [vmem:[%s12206_s9 + $0xc] ss:$16 sps:$4 sm:$0xff]  }
 0x7fb   : > { %v6591_v59 = vpop.f32.mrb[114].mxu1  ;;  %8254 = vmatpush3.bf16.msra.mxu0 %v11707_v7  ;;  %v5732_v52 = vpop.f32.mrb[14].mxu0  ;;  %v4178_v7 = vld [vmem:[%s12205_s8 + $0x1d8] sm:$0xff] }
 0x7fc   : > { %v8674_v40 = vadd.f32 %v6591_v59, %v5725_v22  ;;  %v6593_v15 = vpop.f32.mrb[115].mxu1  ;;  %v5734_v41 = vpop.f32.mrb[15].mxu0  ;;  %v6675_v21 = vmax.f32 %v8672_v20, 0.0  ;;  %v5733_v32 = vadd.f32 %v5732_v52, %v4178_v7  ;;  %v9095_v59 = vld [vmem:[%s12206_s9 + $0x8] ss:$16 sps:$4 sm:$0xff]  }
 0x7fd   : > { %v9098_v37 = vld [vmem:[%s12206_s9 + $0x28] ss:$16 sps:$4 sm:$0xff]   ;;  %v9103_v52 = vld [vmem:[%s12206_s9 + $0x4c] ss:$16 sps:$4 sm:$0xff]  }
 0x7fe   : > { %v6676_v3 = vmax.f32 %v8674_v40, 0.0  ;;  %7260 = vmatmul.mubr.bf16.gmra.mrb[72].mxu0 %v9083_v58  ;;  %v9104_v40 = vld [vmem:[%s12206_s9 + $0x68] ss:$16 sps:$4 sm:$0xff]   ;;  %v9109_v15 = vld [vmem:[%s12206_s9 + $0x8c] ss:$16 sps:$4 sm:$0xff]  }
 0x7ff   : > { %7267 = vmatprep.mubr.bf16.mxu0 %v9088_v2  ;;  %v9106_v2 = vld [vmem:[%s12206_s9 + $0x6c] ss:$16 sps:$4 sm:$0xff]   ;;  %v9107_v41 = vld [vmem:[%s12206_s9 + $0x88] ss:$16 sps:$4 sm:$0xff]  }
 0x800   : > { %v6775_v50 = vpack.c.bf16 %v6676_v3, %v6675_v21  ;;  %v9112_v21 = vld [vmem:[%s12206_s9 + $0xac] ss:$16 sps:$4 sm:$0xff]   ;;  %v9110_v3 = vld [vmem:[%s12206_s9 + $0xa8] ss:$16 sps:$4 sm:$0xff]  }
 0x801   : > { %v6596_v27 = vpop.f32.mrb[116].mxu1  ;;  %v5737_v53 = vpop.f32.mrb[16].mxu0  ;;  %v9113_v7 = vld [vmem:[%s12206_s9 + $0xc8] ss:$16 sps:$4 sm:$0xff]  }
 0x802   : > { %v8676_v9 = vadd.f32 %v6596_v27, %v5730_v60  ;;  %v6598_v13 = vpop.f32.mrb[117].mxu1  ;;  %8255 = vmatprep.subr.bf16.mxu0 %v6775_v50  ;;  %v5739_v11 = vpop.f32.mrb[17].mxu0  ;;  %v5738_v51 = vadd.f32 %v5737_v53, %v4179_v43  ;;  %v9115_v60 = vld [vmem:[%s12206_s9 + $0xcc] ss:$16 sps:$4 sm:$0xff]   ;;  %v9116_v27 = vld [vmem:[%s12206_s9 + $0xe8] ss:$16 sps:$4 sm:$0xff]  }
 0x803   : > { %v6599_v44 = vpop.f32.mrb[118].mxu1  ;;  %8256 = vmatpush3.bf16.msra.mxu0 %v11721_v35  ;;  %v5740_v46 = vpop.f32.mrb[18].mxu0  ;;  %v4180_v35 = vld [vmem:[%s12205_s8 + $0x1e8] sm:$0xff] }
 0x804   : > { %v8678_v57 = vadd.f32 %v6599_v44, %v5733_v32  ;;  %v6601_v18 = vpop.f32.mrb[119].mxu1  ;;  %v5742_v0 = vpop.f32.mrb[19].mxu0  ;;  %v6677_v10 = vmax.f32 %v8676_v9, 0.0  ;;  %v5741_v61 = vadd.f32 %v5740_v46, %v4180_v35  ;;  %v9118_v50 = vld [vmem:[%s12206_s9 + $0xec] ss:$16 sps:$4 sm:$0xff]  }
 0x805   : > { %v9121_v53 = vld [vmem:[%s12206_s9 + $0x10c] ss:$16 sps:$4 sm:$0xff]   ;;  %v9119_v32 = vld [vmem:[%s12206_s9 + $0x108] ss:$16 sps:$4 sm:$0xff]  }
 0x806   : > { %v6678_v47 = vmax.f32 %v8678_v57, 0.0  ;;  %7268 = vmatmul.mubr.bf16.gmra.mrb[76].mxu0 %v9086_v8  ;;  %v9124_v9 = vld [vmem:[%s12206_s9 + $0x12c] ss:$16 sps:$4 sm:$0xff]   ;;  %v9122_v13 = vld [vmem:[%s12206_s9 + $0x128] ss:$16 sps:$4 sm:$0xff]  }
 0x807   : > { %7275 = vmatprep.mubr.bf16.mxu0 %v9091_v4  ;;  %v9127_v8 = vld [vmem:[%s12206_s9 + $0x14c] ss:$16 sps:$4 sm:$0xff]   ;;  %v9125_v11 = vld [vmem:[%s12206_s9 + $0x148] ss:$16 sps:$4 sm:$0xff]  }
 0x808   : > { %v6776_v55 = vpack.c.bf16 %v6678_v47, %v6677_v10  ;;  %v9130_v44 = vld [vmem:[%s12206_s9 + $0x16c] ss:$16 sps:$4 sm:$0xff]   ;;  %v9128_v46 = vld [vmem:[%s12206_s9 + $0x168] ss:$16 sps:$4 sm:$0xff]  }
 0x809   : > { %v6604_v24 = vpop.f32.mrb[120].mxu1  ;;  %v5745_v28 = vpop.f32.mrb[20].mxu0  ;;  %v9133_v57 = vld [vmem:[%s12206_s9 + $0x18c] ss:$16 sps:$4 sm:$0xff]   ;;  %v9131_v35 = vld [vmem:[%s12206_s9 + $0x188] ss:$16 sps:$4 sm:$0xff]  }
 0x80a   : > { %v8680_v45 = vadd.f32 %v6604_v24, %v5738_v51  ;;  %v6606_v39 = vpop.f32.mrb[121].mxu1  ;;  %8257 = vmatprep.subr.bf16.mxu0 %v6776_v55  ;;  %v5747_v34 = vpop.f32.mrb[21].mxu0  ;;  %v5746_v36 = vadd.f32 %v5745_v28, %v4181_v12  ;;  %v9136_v24 = vld [vmem:[%s12206_s9 + $0x1ac] ss:$16 sps:$4 sm:$0xff]  }
 0x80b   : > { %v6607_v30 = vpop.f32.mrb[122].mxu1  ;;  %8258 = vmatpush3.bf16.msra.mxu0 %v11735_v49  ;;  %v5748_v42 = vpop.f32.mrb[22].mxu0  ;;  %v4182_v49 = vld [vmem:[%s12205_s8 + $0x1f8] sm:$0xff] }
 0x80c   : > { %v8682_v48 = vadd.f32 %v6607_v30, %v5741_v61  ;;  %v6609_v16 = vpop.f32.mrb[123].mxu1  ;;  %v5750_v6 = vpop.f32.mrb[23].mxu0  ;;  %v6679_v33 = vmax.f32 %v8680_v45, 0.0  ;;  %v5749_v63 = vadd.f32 %v5748_v42, %v4182_v49  ;;  %v9134_v34 = vld [vmem:[%s12206_s9 + $0x1a8] ss:$16 sps:$4 sm:$0xff]  }
 0x80d   : > { %v9139_v12 = vld [vmem:[%s12206_s9 + $0x1cc] ss:$16 sps:$4 sm:$0xff]  }
 0x80e   : > { %v6680_v19 = vmax.f32 %v8682_v48, 0.0  ;;  %7276 = vmatmul.mubr.bf16.gmra.mrb[80].mxu0 %v9089_v5 }
 0x80f   : > { %7283 = vmatprep.mubr.bf16.mxu0 %v9094_v29 }
 0x810   : > { %v6777_v62 = vpack.c.bf16 %v6680_v19, %v6679_v33  ;;  %v9137_v33 = vld [vmem:[%s12206_s9 + $0x1c8] ss:$16 sps:$4 sm:$0xff]  }
 0x811   : > { %v6612_v23 = vpop.f32.mrb[124].mxu1 }
 0x812   : > { %v8684_v17 = vadd.f32 %v6612_v23, %v5746_v36  ;;  %v6614_v31 = vpop.f32.mrb[125].mxu1  ;;  %8259 = vmatprep.subr.bf16.mxu0 %v6777_v62  ;;  %v9142_v36 = vld [vmem:[%s12206_s9 + $0x1ec] ss:$16 sps:$4 sm:$0xff]  }
 0x813   : > { %v6615_v54 = vpop.f32.mrb[126].mxu1  ;;  %8260 = vmatpush3.bf16.msra.mxu0 %v11749_v14  ;;  %v9100_v14 = vld [vmem:[%s12206_s9 + $0x2c] ss:$16 sps:$4 sm:$0xff]   ;;  %v9140_v31 = vld [vmem:[%s12206_s9 + $0x1e8] ss:$16 sps:$4 sm:$0xff]  }
 0x814   : > { %v8686_v22 = vadd.f32 %v6615_v54, %v5749_v63  ;;  %v6617_v20 = vpop.f32.mrb[127].mxu1  ;;  %v6681_v26 = vmax.f32 %v8684_v17, 0.0 }
 0x816   : > { %v6682_v58 = vmax.f32 %v8686_v22, 0.0  ;;  %7284 = vmatmul.mubr.bf16.gmra.mrb[84].mxu0 %v9092_v1 }
 0x817   : > { %7324 = vmatprep.mubr.bf16.mxu0 %v9097_v56 }
 0x818   : > { %v6778_v38 = vpack.c.bf16 %v6682_v58, %v6681_v26 }
 0x81a   : > { %8261 = vmatprep.subr.bf16.mxu0 %v6778_v38 }
 0x81b   : > { %8262 = vmatpush3.bf16.msra.mxu0 %v11763_v25  ;;  %v9101_v25 = vld [vmem:[%s12206_s9 + $0x48] ss:$16 sps:$4 sm:$0xff]  }
 0x81e   : > { %7325 = vmatmul.mubr.bf16.vlgmr.msra.gmra.mrb[88].mxu0 %v9095_v59 }
 0x81f   : > { %7332 = vmatprep.mubr.bf16.mxu0 %v9100_v14 }
 0x826   : > { %7333 = vmatmul.mubr.bf16.gmra.mrb[92].mxu0 %v9098_v37 }
 0x827   : > { %7340 = vmatprep.mubr.bf16.mxu0 %v9103_v52 }
 0x82e   : > { %7341 = vmatmul.mubr.bf16.gmra.mrb[96].mxu0 %v9101_v25 }
 0x82f   : > { %7348 = vmatprep.mubr.bf16.mxu0 %v9106_v2 }
 0x836   : > { %7349 = vmatmul.mubr.bf16.gmra.mrb[100].mxu0 %v9104_v40 }
 0x837   : > { %7356 = vmatprep.mubr.bf16.mxu0 %v9109_v15 }
 0x83e   : > { %7357 = vmatmul.mubr.bf16.gmra.mrb[104].mxu0 %v9107_v41 }
 0x83f   : > { %7364 = vmatprep.mubr.bf16.mxu0 %v9112_v21 }
 0x846   : > { %7365 = vmatmul.mubr.bf16.gmra.mrb[108].mxu0 %v9110_v3 }
 0x847   : > { %7372 = vmatprep.mubr.bf16.mxu0 %v9115_v60 }
 0x84e   : > { %7373 = vmatmul.mubr.bf16.gmra.mrb[112].mxu0 %v9113_v7 }
 0x84f   : > { %7380 = vmatprep.mubr.bf16.mxu0 %v9118_v50 }
 0x856   : > { %7381 = vmatmul.mubr.bf16.gmra.mrb[116].mxu0 %v9116_v27 }
 0x857   : > { %7388 = vmatprep.mubr.bf16.mxu0 %v9121_v53 }
 0x85e   : > { %7389 = vmatmul.mubr.bf16.gmra.mrb[120].mxu0 %v9119_v32 }
 0x85f   : > { %7396 = vmatprep.mubr.bf16.mxu0 %v9124_v9 }
 0x866   : > { %7397 = vmatmul.mubr.bf16.gmra.mrb[124].mxu0 %v9122_v13 }
 0x867   : > { %7404 = vmatprep.mubr.bf16.mxu0 %v9127_v8 }
 0x86e   : > { %7405 = vmatmul.mubr.bf16.gmra.mrb[128].mxu0 %v9125_v11 }
 0x86f   : > { %7412 = vmatprep.mubr.bf16.mxu0 %v9130_v44 }
 0x871   : > { %v8151_v43 = vpop.f32.mrb[24].mxu0 }
 0x872   : > { %v8152_v4 = vpop.f32.mrb[25].mxu0 }
 0x873   : > { %v11935_v18 = vadd.f32 %v8152_v4, %v8151_v43  ;;  %v8154_v0 = vpop.f32.mrb[26].mxu0 }
 0x874   : > { %v8155_v10 = vpop.f32.mrb[27].mxu0 }
 0x875   : > { %v11937_v47 = vadd.f32 %v8155_v10, %v8154_v0 }
 0x876   : > { %7413 = vmatmul.mubr.bf16.gmra.mrb[132].mxu0 %v9128_v46 }
 0x877   : > { %7420 = vmatprep.mubr.bf16.mxu0 %v9133_v57 }
 0x879   : > { %v8157_v51 = vpop.f32.mrb[28].mxu0 }
 0x87a   : > { %v8158_v55 = vpop.f32.mrb[29].mxu0 }
 0x87b   : > { %v11945_v28 = vadd.f32 %v8158_v55, %v8157_v51  ;;  %v8160_v61 = vpop.f32.mrb[30].mxu0 }
 0x87c   : > { %v8161_v45 = vpop.f32.mrb[31].mxu0 }
 0x87d   : > { %v11947_v39 = vadd.f32 %v8161_v45, %v8160_v61 }
 0x87e   : > { %7421 = vmatmul.mubr.bf16.gmra.mrb[136].mxu0 %v9131_v35 }
 0x87f   : > { %7428 = vmatprep.mubr.bf16.mxu0 %v9136_v24 }
 0x881   : > { %v8163_v5 = vpop.f32.mrb[32].mxu0 }
 0x882   : > { %v8164_v30 = vpop.f32.mrb[33].mxu0 }
 0x883   : > { %v11955_v42 = vadd.f32 %v8164_v30, %v8163_v5  ;;  %v8166_v29 = vpop.f32.mrb[34].mxu0 }
 0x884   : > { %v8167_v48 = vpop.f32.mrb[35].mxu0 }
 0x885   : > { %v11957_v16 = vadd.f32 %v8167_v48, %v8166_v29 }
 0x886   : > { %7429 = vmatmul.mubr.bf16.gmra.mrb[140].mxu0 %v9134_v34 }
 0x887   : > { %7436 = vmatprep.mubr.bf16.mxu0 %v9139_v12 }
 0x889   : > { %v8169_v6 = vpop.f32.mrb[36].mxu0 }
 0x88a   : > { %v8170_v19 = vpop.f32.mrb[37].mxu0 }
 0x88b   : > { %v11965_v49 = vadd.f32 %v8170_v19, %v8169_v6  ;;  %v8172_v62 = vpop.f32.mrb[38].mxu0 }
 0x88c   : > { %v8173_v23 = vpop.f32.mrb[39].mxu0 }
 0x88d   : > { %v11967_v63 = vadd.f32 %v8173_v23, %v8172_v62 }
 0x88e   : > { %7437 = vmatmul.mubr.bf16.gmra.mrb[144].mxu0 %v9137_v33 }
 0x88f   : > { %7444 = vmatprep.mubr.bf16.mxu0 %v9142_v36 }
 0x891   : > { %v8175_v17 = vpop.f32.mrb[40].mxu0 }
 0x892   : > { %v8176_v1 = vpop.f32.mrb[41].mxu0 }
 0x893   : > { %v11972_v54 = vadd.f32 %v8176_v1, %v8175_v17  ;;  %v8178_v56 = vpop.f32.mrb[42].mxu0 }
 0x894   : > { %v8179_v22 = vpop.f32.mrb[43].mxu0 }
 0x895   : > { %v11974_v20 = vadd.f32 %v8179_v22, %v8178_v56 }
 0x896   : > { %7445 = vmatmul.mubr.bf16.gmra.mrb[148].mxu0 %v9140_v31 }
 0x899   : > { %v8181_v26 = vpop.f32.mrb[44].mxu0 }
 0x89a   : > { %v8182_v58 = vpop.f32.mrb[45].mxu0 }
 0x89b   : > { %v11976_v38 = vadd.f32 %v8182_v58, %v8181_v26  ;;  %v8184_v59 = vpop.f32.mrb[46].mxu0 }
 0x89c   : > { %v8185_v14 = vpop.f32.mrb[47].mxu0 }
 0x89d   : > { %v11978_v37 = vadd.f32 %v8185_v14, %v8184_v59 }
 0x8a1   : > { %v8187_v52 = vpop.f32.mrb[48].mxu0 }
 0x8a2   : > { %v8188_v25 = vpop.f32.mrb[49].mxu0 }
 0x8a3   : > { %v11980_v2 = vadd.f32 %v8188_v25, %v8187_v52  ;;  %v8190_v40 = vpop.f32.mrb[50].mxu0 }
 0x8a4   : > { %v8191_v15 = vpop.f32.mrb[51].mxu0 }
 0x8a5   : > { %v11982_v41 = vadd.f32 %v8191_v15, %v8190_v40 }
 0x8a9   : > { %v8193_v21 = vpop.f32.mrb[52].mxu0 }
 0x8aa   : > { %v8194_v3 = vpop.f32.mrb[53].mxu0 }
 0x8ab   : > { %v11984_v60 = vadd.f32 %v8194_v3, %v8193_v21  ;;  %v8196_v7 = vpop.f32.mrb[54].mxu0 }
 0x8ac   : > { %v8197_v50 = vpop.f32.mrb[55].mxu0 }
 0x8ad   : > { %v11986_v27 = vadd.f32 %v8197_v50, %v8196_v7 }
 0x8b1   : > { %v8199_v53 = vpop.f32.mrb[56].mxu0 }
 0x8b2   : > { %v8200_v32 = vpop.f32.mrb[57].mxu0 }
 0x8b3   : > { %v11988_v9 = vadd.f32 %v8200_v32, %v8199_v53  ;;  %v8202_v13 = vpop.f32.mrb[58].mxu0  ;;  %v6779_v53 = vld [vmem:[%s12207_s10] sm:$0xff] }
 0x8b4   : > { %v8203_v8 = vpop.f32.mrb[59].mxu0 }
 0x8b5   : > { %v11990_v11 = vadd.f32 %v8203_v8, %v8202_v13  ;;  %v6780_v13 = vld [vmem:[%s12207_s10 + $0x8] sm:$0xff] }
 0x8b9   : > { %v8205_v44 = vpop.f32.mrb[60].mxu0 }
 0x8ba   : > { %v8206_v43 = vpop.f32.mrb[61].mxu0 }
 0x8bb   : > { %v11992_v46 = vadd.f32 %v8206_v43, %v8205_v44  ;;  %v8208_v4 = vpop.f32.mrb[62].mxu0  ;;  %v7166_v44 = vadd.f32 %v11935_v18, %v6779_v53 }
 0x8bc   : > { %v8209_v57 = vpop.f32.mrb[63].mxu0 }
 0x8bd   : > { %v11994_v0 = vadd.f32 %v8209_v57, %v8208_v4 }
 0x8c1   : > { %v8211_v10 = vpop.f32.mrb[64].mxu0 }
 0x8c2   : > { %v8212_v51 = vpop.f32.mrb[65].mxu0 }
 0x8c3   : > { %v11996_v35 = vadd.f32 %v8212_v51, %v8211_v10  ;;  %v8214_v55 = vpop.f32.mrb[66].mxu0  ;;  %v7169_v10 = vadd.f32 %v11937_v47, %v6780_v13 }
 0x8c4   : > { %v8215_v24 = vpop.f32.mrb[67].mxu0 }
 0x8c5   : > { %v11998_v61 = vadd.f32 %v8215_v24, %v8214_v55  ;;  %v9145_v24 = vld [vmem:[%s12208_s11 + $0x4] ss:$8 sps:$4 sm:$0xff]  }
 0x8c6   : > { %7547 = vmatprep.mubr.bf16.mxu0 %v9145_v24 }
 0x8c9   : > { %v8217_v45 = vpop.f32.mrb[68].mxu0 }
 0x8ca   : > { %v8218_v5 = vpop.f32.mrb[69].mxu0 }
 0x8cb   : > { %v12000_v34 = vadd.f32 %v8218_v5, %v8217_v45  ;;  %v8220_v30 = vpop.f32.mrb[70].mxu0  ;;  %v6781_v5 = vld [vmem:[%s12207_s10 + $0x10] sm:$0xff] }
 0x8cc   : > { %v8221_v12 = vpop.f32.mrb[71].mxu0 }
 0x8cd   : > { %v12002_v29 = vadd.f32 %v8221_v12, %v8220_v30 }
 0x8d1   : > { %v8223_v48 = vpop.f32.mrb[72].mxu0 }
 0x8d2   : > { %v8224_v6 = vpop.f32.mrb[73].mxu0 }
 0x8d3   : > { %v12004_v33 = vadd.f32 %v8224_v6, %v8223_v48  ;;  %v8226_v19 = vpop.f32.mrb[74].mxu0  ;;  %v6782_v48 = vld [vmem:[%s12207_s10 + $0x18] sm:$0xff]  ;;  %v7174_v6 = vadd.f32 %v11945_v28, %v6781_v5  ;;  %v6784_v28 = vld [vmem:[%s12207_s10 + $0x28] sm:$0xff] }
 0x8d4   : > { %v8227_v36 = vpop.f32.mrb[75].mxu0 }
 0x8d5   : > { %v12006_v62 = vadd.f32 %v8227_v36, %v8226_v19 }
 0x8d9   : > { %v8229_v23 = vpop.f32.mrb[76].mxu0 }
 0x8da   : > { %v8230_v17 = vpop.f32.mrb[77].mxu0 }
 0x8db   : > { %v12008_v31 = vadd.f32 %v8230_v17, %v8229_v23  ;;  %v8232_v1 = vpop.f32.mrb[78].mxu0 }
 0x8dc   : > { %v8233_v56 = vpop.f32.mrb[79].mxu0 }
 0x8dd   : > { %v12010_v22 = vadd.f32 %v8233_v56, %v8232_v1  ;;  %v7177_v1 = vadd.f32 %v11947_v39, %v6782_v48 }
 0x8e1   : > { %v8235_v26 = vpop.f32.mrb[80].mxu0 }
 0x8e2   : > { %v8236_v58 = vpop.f32.mrb[81].mxu0 }
 0x8e3   : > { %v12012_v59 = vadd.f32 %v8236_v58, %v8235_v26  ;;  %v8238_v14 = vpop.f32.mrb[82].mxu0 }
 0x8e4   : > { %v8239_v52 = vpop.f32.mrb[83].mxu0 }
 0x8e5   : > { %v12014_v25 = vadd.f32 %v8239_v52, %v8238_v14  ;;  %v6783_v14 = vld [vmem:[%s12207_s10 + $0x20] sm:$0xff] }
 0x8e9   : > { %v8241_v40 = vpop.f32.mrb[84].mxu0 }
 0x8ea   : > { %v8242_v15 = vpop.f32.mrb[85].mxu0 }
 0x8eb   : > { %v12016_v21 = vadd.f32 %v8242_v15, %v8241_v40  ;;  %v8244_v3 = vpop.f32.mrb[86].mxu0 }
 0x8ec   : > { %v8245_v7 = vpop.f32.mrb[87].mxu0 }
 0x8ed   : > { %v12018_v50 = vadd.f32 %v8245_v7, %v8244_v3  ;;  %v7182_v7 = vadd.f32 %v11955_v42, %v6783_v14  ;;  %v6786_v42 = vld [vmem:[%s12207_s10 + $0x38] sm:$0xff] }
 0x8f1   : > { %v8263_v32 = vpop.f32.mrb[88].mxu0 }
 0x8f2   : > { %v8264_v8 = vpop.f32.mrb[89].mxu0 }
 0x8f3   : > { %v8265_v43 = vadd.f32 %v8264_v8, %v8263_v32  ;;  %v8266_v4 = vpop.f32.mrb[90].mxu0  ;;  %v7185_v8 = vadd.f32 %v11957_v16, %v6784_v28 }
 0x8f4   : > { %v8267_v57 = vpop.f32.mrb[91].mxu0 }
 0x8f5   : > { %v7327_v51 = vadd.f32 %v8265_v43, %v7166_v44  ;;  %v8268_v55 = vadd.f32 %v8267_v57, %v8266_v4  ;;  %v6785_v57 = vld [vmem:[%s12207_s10 + $0x30] sm:$0xff] }
 0x8f7   : > { %v7330_v45 = vadd.f32 %v8268_v55, %v7169_v10  ;;  %v7453_v30 = vmax.f32 %v7327_v51, 0.0 }
 0x8f9   : > { %v7454_v12 = vmax.f32 %v7330_v45, 0.0  ;;  %v8269_v18 = vpop.f32.mrb[92].mxu0  ;;  %v7190_v45 = vadd.f32 %v11965_v49, %v6785_v57  ;;  %v6788_v49 = vld [vmem:[%s12207_s10 + $0x48] sm:$0xff] }
 0x8fa   : > { %v8270_v47 = vpop.f32.mrb[93].mxu0 }
 0x8fb   : > { %v12038_v19 = vpack.c.bf16 %v7454_v12, %v7453_v30  ;;  %v8271_v36 = vadd.f32 %v8270_v47, %v8269_v18  ;;  %v8272_v23 = vpop.f32.mrb[94].mxu0  ;;  %v7193_v18 = vadd.f32 %v11967_v63, %v6786_v42 }
 0x8fc   : > { %v8273_v17 = vpop.f32.mrb[95].mxu0 }
 0x8fd   : > { %v7335_v56 = vadd.f32 %v8271_v36, %v7174_v6  ;;  %v8274_v26 = vadd.f32 %v8273_v17, %v8272_v23  ;;  %v6787_v36 = vld [vmem:[%s12207_s10 + $0x40] sm:$0xff] }
 0x8ff   : > { %v7338_v58 = vadd.f32 %v8274_v26, %v7177_v1  ;;  %v7455_v52 = vmax.f32 %v7335_v56, 0.0  ;;  %v7198_v26 = vadd.f32 %v11972_v54, %v6787_v36  ;;  %v6790_v54 = vld [vmem:[%s12207_s10 + $0x58] sm:$0xff] }
 0x901   : > { %v7456_v40 = vmax.f32 %v7338_v58, 0.0  ;;  %v8275_v15 = vpop.f32.mrb[96].mxu0 }
 0x902   : > { %v8276_v3 = vpop.f32.mrb[97].mxu0 }
 0x903   : > { %v12048_v53 = vpack.c.bf16 %v7456_v40, %v7455_v52  ;;  %v8277_v39 = vadd.f32 %v8276_v3, %v8275_v15  ;;  %v8278_v32 = vpop.f32.mrb[98].mxu0  ;;  %v7201_v40 = vadd.f32 %v11974_v20, %v6788_v49  ;;  %v6793_v49 = vld [vmem:[%s12207_s10 + $0x70] sm:$0xff] }
 0x904   : > { %v8279_v13 = vpop.f32.mrb[99].mxu0 }
 0x905   : > { %v7343_v44 = vadd.f32 %v8277_v39, %v7182_v7  ;;  %v8280_v43 = vadd.f32 %v8279_v13, %v8278_v32  ;;  %v6789_v7 = vld [vmem:[%s12207_s10 + $0x50] sm:$0xff] }
 0x907   : > { %v7346_v4 = vadd.f32 %v8280_v43, %v7185_v8  ;;  %v7457_v10 = vmax.f32 %v7343_v44, 0.0  ;;  %v7206_v44 = vadd.f32 %v11976_v38, %v6789_v7  ;;  %v6792_v38 = vld [vmem:[%s12207_s10 + $0x68] sm:$0xff] }
 0x908   : > { %v7217_v36 = vadd.f32 %v11982_v41, %v6792_v38 }
 0x909   : > { %v7458_v51 = vmax.f32 %v7346_v4, 0.0  ;;  %v8281_v55 = vpop.f32.mrb[100].mxu0 }
 0x90a   : > { %v8282_v24 = vpop.f32.mrb[101].mxu0 }
 0x90b   : > { %v12058_v5 = vpack.c.bf16 %v7458_v51, %v7457_v10  ;;  %v8283_v16 = vadd.f32 %v8282_v24, %v8281_v55  ;;  %v8284_v30 = vpop.f32.mrb[102].mxu0  ;;  %v7209_v10 = vadd.f32 %v11978_v37, %v6790_v54  ;;  %v6791_v24 = vld [vmem:[%s12207_s10 + $0x60] sm:$0xff] }
 0x90c   : > { %v8285_v12 = vpop.f32.mrb[103].mxu0 }
 0x90d   : > { %v7351_v48 = vadd.f32 %v8283_v16, %v7190_v45  ;;  %v8286_v47 = vadd.f32 %v8285_v12, %v8284_v30 }
 0x90f   : > { %v7354_v6 = vadd.f32 %v8286_v47, %v7193_v18  ;;  %v7459_v23 = vmax.f32 %v7351_v48, 0.0  ;;  %v7214_v18 = vadd.f32 %v11980_v2, %v6791_v24  ;;  %v6794_v2 = vld [vmem:[%s12207_s10 + $0x78] sm:$0xff] }
 0x911   : > { %v7460_v17 = vmax.f32 %v7354_v6, 0.0  ;;  %v8287_v1 = vpop.f32.mrb[104].mxu0 }
 0x912   : > { %v8288_v56 = vpop.f32.mrb[105].mxu0 }
 0x913   : > { %v12068_v58 = vpack.c.bf16 %v7460_v17, %v7459_v23  ;;  %v8289_v63 = vadd.f32 %v8288_v56, %v8287_v1  ;;  %v8290_v14 = vpop.f32.mrb[106].mxu0 }
 0x914   : > { %v8291_v52 = vpop.f32.mrb[107].mxu0 }
 0x915   : > { %v7359_v15 = vadd.f32 %v8289_v63, %v7198_v26  ;;  %v8292_v28 = vadd.f32 %v8291_v52, %v8290_v14  ;;  %v7222_v52 = vadd.f32 %v11984_v60, %v6793_v49  ;;  %v6796_v60 = vld [vmem:[%s12207_s10 + $0x88] sm:$0xff] }
 0x917   : > { %v7362_v3 = vadd.f32 %v8292_v28, %v7201_v40  ;;  %v7461_v39 = vmax.f32 %v7359_v15, 0.0 }
 0x919   : > { %v7462_v32 = vmax.f32 %v7362_v3, 0.0  ;;  %v8293_v13 = vpop.f32.mrb[108].mxu0  ;;  %v7225_v3 = vadd.f32 %v11986_v27, %v6794_v2 }
 0x91a   : > { %v8294_v8 = vpop.f32.mrb[109].mxu0 }
 0x91b   : > { %v12078_v43 = vpack.c.bf16 %v7462_v32, %v7461_v39  ;;  %v8295_v20 = vadd.f32 %v8294_v8, %v8293_v13  ;;  %v8296_v4 = vpop.f32.mrb[110].mxu0  ;;  %v6795_v13 = vld [vmem:[%s12207_s10 + $0x80] sm:$0xff] }
 0x91c   : > { %v8297_v57 = vpop.f32.mrb[111].mxu0 }
 0x91d   : > { %v7367_v51 = vadd.f32 %v8295_v20, %v7206_v44  ;;  %v8298_v55 = vadd.f32 %v8297_v57, %v8296_v4  ;;  %v7230_v4 = vadd.f32 %v11988_v9, %v6795_v13  ;;  %v6798_v9 = vld [vmem:[%s12207_s10 + $0x98] sm:$0xff] }
 0x91f   : > { %v7370_v42 = vadd.f32 %v8298_v55, %v7209_v10  ;;  %v7463_v45 = vmax.f32 %v7367_v51, 0.0  ;;  %v7233_v55 = vadd.f32 %v11990_v11, %v6796_v60 }
 0x921   : > { %v7464_v16 = vmax.f32 %v7370_v42, 0.0  ;;  %v8299_v30 = vpop.f32.mrb[112].mxu0 }
 0x922   : > { %v8300_v12 = vpop.f32.mrb[113].mxu0 }
 0x923   : > { %v12088_v48 = vpack.c.bf16 %v7464_v16, %v7463_v45  ;;  %v8301_v37 = vadd.f32 %v8300_v12, %v8299_v30  ;;  %v8302_v47 = vpop.f32.mrb[114].mxu0  ;;  %v6797_v16 = vld [vmem:[%s12207_s10 + $0x90] sm:$0xff] }
 0x924   : > { %v8303_v6 = vpop.f32.mrb[115].mxu0 }
 0x925   : > { %v7375_v23 = vadd.f32 %v8301_v37, %v7214_v18  ;;  %v8304_v17 = vadd.f32 %v8303_v6, %v8302_v47  ;;  %v7238_v37 = vadd.f32 %v11992_v46, %v6797_v16  ;;  %v6800_v46 = vld [vmem:[%s12207_s10 + $0xa8] sm:$0xff] }
 0x927   : > { %v7378_v1 = vadd.f32 %v8304_v17, %v7217_v36  ;;  %v7465_v56 = vmax.f32 %v7375_v23, 0.0  ;;  %v7241_v23 = vadd.f32 %v11994_v0, %v6798_v9 }
 0x929   : > { %v7466_v26 = vmax.f32 %v7378_v1, 0.0  ;;  %v8305_v63 = vpop.f32.mrb[116].mxu0 }
 0x92a   : > { %v8306_v14 = vpop.f32.mrb[117].mxu0 }
 0x92b   : > { %v12098_v40 = vpack.c.bf16 %v7466_v26, %v7465_v56  ;;  %v8307_v41 = vadd.f32 %v8306_v14, %v8305_v63  ;;  %v8308_v15 = vpop.f32.mrb[118].mxu0  ;;  %v6799_v56 = vld [vmem:[%s12207_s10 + $0xa0] sm:$0xff] }
 0x92c   : > { %v8309_v28 = vpop.f32.mrb[119].mxu0  ;;  %v7246_v0 = vadd.f32 %v11996_v35, %v6799_v56  ;;  %v6802_v35 = vld [vmem:[%s12207_s10 + $0xb8] sm:$0xff] }
 0x92d   : > { %v7383_v7 = vadd.f32 %v8307_v41, %v7222_v52  ;;  %v8310_v39 = vadd.f32 %v8309_v28, %v8308_v15 }
 0x92f   : > { %v7386_v32 = vadd.f32 %v8310_v39, %v7225_v3  ;;  %v7467_v54 = vmax.f32 %v7383_v7, 0.0 }
 0x931   : > { %v7468_v8 = vmax.f32 %v7386_v32, 0.0  ;;  %v8311_v44 = vpop.f32.mrb[120].mxu0  ;;  %v6801_v32 = vld [vmem:[%s12207_s10 + $0xb0] sm:$0xff] }
 0x932   : > { %v8312_v20 = vpop.f32.mrb[121].mxu0 }
 0x933   : > { %v12108_v57 = vpack.c.bf16 %v7468_v8, %v7467_v54  ;;  %v8313_v27 = vadd.f32 %v8312_v20, %v8311_v44  ;;  %v8314_v10 = vpop.f32.mrb[122].mxu0 }
 0x934   : > { %v8315_v51 = vpop.f32.mrb[123].mxu0 }
 0x935   : > { %v7391_v42 = vadd.f32 %v8313_v27, %v7230_v4  ;;  %v8316_v24 = vadd.f32 %v8315_v51, %v8314_v10 }
 0x937   : > { %v7394_v45 = vadd.f32 %v8316_v24, %v7233_v55  ;;  %v7469_v30 = vmax.f32 %v7391_v42, 0.0  ;;  %v6803_v42 = vld [vmem:[%s12207_s10 + $0xc0] sm:$0xff] }
 0x939   : > { %v7470_v38 = vmax.f32 %v7394_v45, 0.0  ;;  %v8317_v12 = vpop.f32.mrb[124].mxu0 }
 0x93a   : > { %v8318_v18 = vpop.f32.mrb[125].mxu0 }
 0x93b   : > { %v8319_v47 = vadd.f32 %v8318_v18, %v8317_v12  ;;  %v8320_v6 = vpop.f32.mrb[126].mxu0  ;;  %v7495_v11 = vpack.c.bf16 %v7470_v38, %v7469_v30 }
 0x93c   : > { %v8321_v36 = vpop.f32.mrb[127].mxu0 }
 0x93d   : > { %v7399_v17 = vadd.f32 %v8319_v47, %v7238_v37  ;;  %v8322_v1 = vadd.f32 %v8321_v36, %v8320_v6  ;;  %8359 = vmatprep.subr.bf16.mxu0 %v7495_v11  ;;  %v6805_v11 = vld [vmem:[%s12207_s10 + $0xd0] sm:$0xff] }
 0x93e   : > { %8360 = vmatpush3.bf16.msra.mxu0 %v12038_v19  ;;  %v7249_v19 = vadd.f32 %v11998_v61, %v6800_v46  ;;  %v7254_v61 = vadd.f32 %v12000_v34, %v6801_v32  ;;  %v6804_v34 = vld [vmem:[%s12207_s10 + $0xc8] sm:$0xff] }
 0x93f   : > { %v7402_v49 = vadd.f32 %v8322_v1, %v7241_v23  ;;  %v7471_v26 = vmax.f32 %v7399_v17, 0.0 }
 0x941   : > { %v7472_v63 = vmax.f32 %v7402_v49, 0.0  ;;  %v8323_v2 = vpop.f32.mrb[128].mxu0 }
 0x942   : > { %v8324_v14 = vpop.f32.mrb[129].mxu0 }
 0x943   : > { %v8325_v52 = vadd.f32 %v8324_v14, %v8323_v2  ;;  %v8326_v41 = vpop.f32.mrb[130].mxu0  ;;  %v7496_v15 = vpack.c.bf16 %v7472_v63, %v7471_v26 }
 0x944   : > { %v8327_v28 = vpop.f32.mrb[131].mxu0 }
 0x945   : > { %v7407_v3 = vadd.f32 %v8325_v52, %v7246_v0  ;;  %v8328_v7 = vadd.f32 %v8327_v28, %v8326_v41  ;;  %8361 = vmatprep.subr.bf16.mxu0 %v7496_v15  ;;  %v6807_v0 = vld [vmem:[%s12207_s10 + $0xe0] sm:$0xff] }
 0x946   : > { %8362 = vmatpush3.bf16.msra.mxu0 %v12048_v53  ;;  %v7257_v53 = vadd.f32 %v12002_v29, %v6802_v35  ;;  %v7262_v29 = vadd.f32 %v12004_v33, %v6803_v42  ;;  %v6806_v33 = vld [vmem:[%s12207_s10 + $0xd8] sm:$0xff] }
 0x947   : > { %v7410_v39 = vadd.f32 %v8328_v7, %v7249_v19  ;;  %v7473_v13 = vmax.f32 %v7407_v3, 0.0 }
 0x949   : > { %v7474_v54 = vmax.f32 %v7410_v39, 0.0  ;;  %v8329_v8 = vpop.f32.mrb[132].mxu0 }
 0x94a   : > { %v8330_v44 = vpop.f32.mrb[133].mxu0 }
 0x94b   : > { %v8331_v60 = vadd.f32 %v8330_v44, %v8329_v8  ;;  %v8332_v20 = vpop.f32.mrb[134].mxu0  ;;  %v7497_v4 = vpack.c.bf16 %v7474_v54, %v7473_v13  ;;  %v6809_v8 = vld [vmem:[%s12207_s10 + $0xf0] sm:$0xff] }
 0x94c   : > { %v8333_v27 = vpop.f32.mrb[135].mxu0 }
 0x94d   : > { %v7415_v10 = vadd.f32 %v8331_v60, %v7254_v61  ;;  %v8334_v51 = vadd.f32 %v8333_v27, %v8332_v20  ;;  %8363 = vmatprep.subr.bf16.mxu0 %v7497_v4 }
 0x94e   : > { %8364 = vmatpush3.bf16.msra.mxu0 %v12058_v5  ;;  %v7265_v5 = vadd.f32 %v12006_v62, %v6804_v34  ;;  %v7270_v62 = vadd.f32 %v12008_v31, %v6805_v11  ;;  %v6808_v31 = vld [vmem:[%s12207_s10 + $0xe8] sm:$0xff] }
 0x94f   : > { %v7418_v55 = vadd.f32 %v8334_v51, %v7257_v53  ;;  %v7475_v24 = vmax.f32 %v7415_v10, 0.0 }
 0x951   : > { %v7476_v45 = vmax.f32 %v7418_v55, 0.0  ;;  %v8335_v16 = vpop.f32.mrb[136].mxu0 }
 0x952   : > { %v8336_v30 = vpop.f32.mrb[137].mxu0 }
 0x953   : > { %v8337_v38 = vadd.f32 %v8336_v30, %v8335_v16  ;;  %v8338_v12 = vpop.f32.mrb[138].mxu0  ;;  %v7498_v9 = vpack.c.bf16 %v7476_v45, %v7475_v24 }
 0x954   : > { %v8339_v18 = vpop.f32.mrb[139].mxu0 }
 0x955   : > { %v7423_v37 = vadd.f32 %v8337_v38, %v7262_v29  ;;  %v8340_v47 = vadd.f32 %v8339_v18, %v8338_v12  ;;  %8365 = vmatprep.subr.bf16.mxu0 %v7498_v9  ;;  %v7504_v29 = vld [vmem:[%s12209_s12 + $0x8] sm:$0xff] }
 0x956   : > { %8366 = vmatpush3.bf16.msra.mxu0 %v12068_v58  ;;  %v7273_v58 = vadd.f32 %v12010_v22, %v6806_v33  ;;  %v7278_v22 = vadd.f32 %v12012_v59, %v6807_v0  ;;  %v6810_v59 = vld [vmem:[%s12207_s10 + $0xf8] sm:$0xff] }
 0x957   : > { %v7426_v6 = vadd.f32 %v8340_v47, %v7265_v5  ;;  %v7477_v36 = vmax.f32 %v7423_v37, 0.0  ;;  %v7289_v53 = vadd.f32 %v12018_v50, %v6810_v59  ;;  %v7503_v50 = vld [vmem:[%s12209_s12] sm:$0xff] }
 0x959   : > { %v7478_v23 = vmax.f32 %v7426_v6, 0.0  ;;  %v8341_v17 = vpop.f32.mrb[140].mxu0 }
 0x95a   : > { %v8342_v1 = vpop.f32.mrb[141].mxu0 }
 0x95b   : > { %v8343_v49 = vadd.f32 %v8342_v1, %v8341_v17  ;;  %v8344_v56 = vpop.f32.mrb[142].mxu0  ;;  %v7499_v26 = vpack.c.bf16 %v7478_v23, %v7477_v36 }
 0x95c   : > { %v8345_v63 = vpop.f32.mrb[143].mxu0 }
 0x95d   : > { %v7431_v2 = vadd.f32 %v8343_v49, %v7270_v62  ;;  %v8346_v46 = vadd.f32 %v8345_v63, %v8344_v56  ;;  %8367 = vmatprep.subr.bf16.mxu0 %v7499_v26 }
 0x95e   : > { %8368 = vmatpush3.bf16.msra.mxu0 %v12078_v43  ;;  %v7281_v43 = vadd.f32 %v12014_v25, %v6808_v31  ;;  %v7286_v25 = vadd.f32 %v12016_v21, %v6809_v8  ;;  %v9143_v21 = vld [vmem:[%s12208_s11] ss:$8 sps:$4 sm:$0xff]  }
 0x95f   : > { %v7434_v14 = vadd.f32 %v8346_v46, %v7273_v58  ;;  %v7479_v52 = vmax.f32 %v7431_v2, 0.0 }
 0x961   : > { %v7480_v41 = vmax.f32 %v7434_v14, 0.0  ;;  %v8347_v15 = vpop.f32.mrb[144].mxu0 }
 0x962   : > { %v8348_v28 = vpop.f32.mrb[145].mxu0 }
 0x963   : > { %v8349_v19 = vadd.f32 %v8348_v28, %v8347_v15  ;;  %v8350_v3 = vpop.f32.mrb[146].mxu0  ;;  %v7500_v7 = vpack.c.bf16 %v7480_v41, %v7479_v52 }
 0x964   : > { %v8351_v39 = vpop.f32.mrb[147].mxu0 }
 0x965   : > { %v7439_v32 = vadd.f32 %v8349_v19, %v7278_v22  ;;  %v8352_v13 = vadd.f32 %v8351_v39, %v8350_v3  ;;  %8369 = vmatprep.subr.bf16.mxu0 %v7500_v7 }
 0x966   : > { %8370 = vmatpush3.bf16.msra.mxu0 %v12088_v48 }
 0x967   : > { %v7442_v54 = vadd.f32 %v8352_v13, %v7281_v43  ;;  %v7481_v35 = vmax.f32 %v7439_v32, 0.0 }
 0x969   : > { %v7482_v44 = vmax.f32 %v7442_v54, 0.0  ;;  %v8353_v61 = vpop.f32.mrb[148].mxu0 }
 0x96a   : > { %v8354_v60 = vpop.f32.mrb[149].mxu0 }
 0x96b   : > { %v8355_v20 = vadd.f32 %v8354_v60, %v8353_v61  ;;  %v8356_v4 = vpop.f32.mrb[150].mxu0  ;;  %v7501_v27 = vpack.c.bf16 %v7482_v44, %v7481_v35 }
 0x96c   : > { %v8357_v48 = vpop.f32.mrb[151].mxu0 }
 0x96d   : > { %v7447_v10 = vadd.f32 %v8355_v20, %v7286_v25  ;;  %v8358_v51 = vadd.f32 %v8357_v48, %v8356_v4  ;;  %8371 = vmatprep.subr.bf16.mxu0 %v7501_v27 }
 0x96e   : > { %8372 = vmatpush3.bf16.msra.mxu0 %v12098_v40 }
 0x96f   : > { %v7450_v55 = vadd.f32 %v8358_v51, %v7289_v53  ;;  %v7483_v42 = vmax.f32 %v7447_v10, 0.0 }
 0x971   : > { %v7484_v24 = vmax.f32 %v7450_v55, 0.0 }
 0x973   : > { %v7502_v45 = vpack.c.bf16 %v7484_v24, %v7483_v42 }
 0x975   : > { %8373 = vmatprep.subr.bf16.mxu0 %v7502_v45 }
 0x976   : > { %8374 = vmatpush3.bf16.msra.mxu0 %v12108_v57 }
 0x979   : > { %7548 = vmatmul.mubr.bf16.vlgmr.msra.gmra.mrb[152].mxu0 %v9143_v21 }
 0xa4c   : > { %v8375_v16 = vpop.f32.mrb[152].mxu0 }
 0xa4d   : > { %v8376_v34 = vpop.f32.mrb[153].mxu0 }
 0xa4e   : > { %v8377_v40 = vadd.f32 %v8376_v34, %v8375_v16  ;;  %v8378_v30 = vpop.f32.mrb[154].mxu0 }
 0xa4f   : > { %v8379_v57 = vpop.f32.mrb[155].mxu0 }
 0xa50   : > { %v7550_v38 = vadd.f32 %v8377_v40, %v7503_v50  ;;  %v8380_v12 = vadd.f32 %v8379_v57, %v8378_v30 }
 0xa52   : > { %7557 = vst.msk [vmem:[%s460_s30] sm:$0xff] %vm7556_vm5, %v7550_v38  ;;  %v7553_v9 = vadd.f32 %v8380_v12, %v7504_v29 }
 0xa54   : > { %7558 = vst.msk [vmem:[%s460_s30 + $0x8] sm:$0xff] %vm7556_vm5, %v7553_v9 }
 0xa55 PF: > { %s23_s27 = sadd.s32 1, %s9168_s27   ;;  %s12293_s25 = smov %s9164_s26 }
 0xa56   : > { %p20_p5 = scmp.ge.s32.totalorder %s23_s27, 4   ;;  %s12294_s26 = smov %s12296_s28 }
 0xa58   :  { %22 = sbr.rel (!%p20_p5) target bundleno = 2 (0x2), region = 110 }

</bundles_post_ra>
